<compile_context>
chip_gen: v7x
topology: tpu7x:2x2x1
jax: 0.10.0
libtpu: 0.0.40
codegen_flags: <defaults>
</compile_context>

<pallas_src>
import functools

import jax
import jax.numpy as jnp
from jax.experimental import pallas as pl
from jax.experimental.pallas import tpu as pltpu

NUM_LAYERS = 3

# Operand dtype for all MXU dots (accumulation + gate math stay f32 via
# preferred_element_type).  Set to jnp.bfloat16 on v6e/v7x for ~2x MXU rate.
MATMUL_DTYPE = jnp.float32


def _round_up(n, m):
    return ((n + m - 1) // m) * m


def _sigmoid(x):
    # sigma(x) == 0.5*(tanh(x/2) + 1): mathematically exact, and guaranteed to
    # cost a single EUP (tanh) push instead of exp + reciprocal.
    return 0.5 * jnp.tanh(0.5 * x) + 0.5


def _lstm_kernel(x_ref,                    # (t_chunk, Bt, I)        raw inputs
                 wx_ref, bx_ref,           # (I, NL*4H), (1, NL*4H)  x-projection (resident)
                 whh0_ref,                 # (H, 4H)                 layer-0 h_lt rows
                 whh_ref,                  # (NL-1, 2H, 4H)          layers 1.. [h_below; h_lt]
                 peep_ref,                 # (NL, 1, 3H)             packed [p_ci|p_cf|p_co]
                 why_ref, bhy_ref,         # (3H, H), (1, H)         linear_hy (resident)
                 y_ref,                    # out: (t_chunk, Bt, H)
                 pre_scr,                  # scratch: (t_chunk*Bt, NL*4H)
                 hall_scr,                 # scratch: (t_chunk*Bt, NL*H)
                 h_scr, c_scr,             # scratch: (Bt, NL*H) recurrent state slabs
                 *, hidden, t_chunk):
    H = hidden
    Bt = h_scr.shape[0]
    G3 = 3 * H
    G4 = 4 * H

    # Re-initialise the recurrent state at the start of each batch chunk's time
    # sweep (time is the innermost grid axis, so state carries across chunks).
    @pl.when(pl.program_id(1) == 0)
    def _():
        h_scr[...] = jnp.zeros_like(h_scr)
        c_scr[...] = jnp.zeros_like(c_scr)

    # ---- Prologue: fused x-projection for the whole time chunk (one GEMM). ---
    # Reading the narrow x block (I lanes) instead of a precomputed 12H-wide
    # pre-activation slab removes that slab's HBM write + re-read entirely.
    x_flat = x_ref[...].reshape(t_chunk * Bt, x_ref.shape[-1])
    pre_scr[...] = (jnp.dot(x_flat.astype(wx_ref.dtype), wx_ref[...],
                            preferred_element_type=jnp.float32)
                    + bx_ref[...])

    # Hoist loop-invariant broadcasts out of the time loop (JAX does not CSE
    # broadcast_in_dim).  Peepholes are packed per layer to match [i|f|o].
    peeps = [jnp.broadcast_to(peep_ref[j], (Bt, G3)) for j in range(NUM_LAYERS)]

    # ---- Serial recurrence over the time chunk. ------------------------------
    def step(t, carry):
        row = pl.multiple_of(t * Bt, Bt)
        pre_t = pre_scr[pl.ds(row, Bt), :]                 # (Bt, NL*4H)
        for j in range(NUM_LAYERS):                        # static unroll over layers
            c = c_scr[:, j * H:(j + 1) * H]                # previous-timestep cell
            gates = pre_t[:, j * G4:(j + 1) * G4]          # x part (+bias), order [i|f|o|g]
            if j == 0:
                # "h from the layer below" is identically zero for layer 0 in
                # the reference module -> only the h_lt rows participate.
                h_in = h_scr[:, 0:H]
                w = whh0_ref[...]
            else:
                # h_{j-1} (current timestep, already written) and h_j (previous
                # timestep) are adjacent in the state slab -> ONE fused dot.
                h_in = h_scr[:, (j - 1) * H:(j + 1) * H]
                w = whh_ref[j - 1]
            gates = gates + jnp.dot(h_in.astype(w.dtype), w,
                                    preferred_element_type=jnp.float32)

            # One fused sigmoid over the contiguous [i|f|o] slab (1 EUP push).
            c3 = jnp.concatenate([c, c, c], axis=-1)
            ifo = _sigmoid(gates[:, 0:G3] + peeps[j] * c3)
            i_t = ifo[:, 0:H]
            f_t = ifo[:, H:2 * H]
            o_t = ifo[:, 2 * H:G3]                          # peephole uses pre-update c (as in torch code)
            c_t = i_t * jnp.tanh(gates[:, G3:G4]) + f_t * c
            h_t = o_t * jnp.tanh(c_t)

            h_scr[:, j * H:(j + 1) * H] = h_t
            c_scr[:, j * H:(j + 1) * H] = c_t

        # The state slab *is* h_cat = [h0|h1|h2] for this timestep.
        hall_scr[pl.ds(row, Bt), :] = h_scr[...]
        return carry

    jax.lax.fori_loop(0, t_chunk, step, 0,
                      unroll=True if t_chunk <= 8 else 8)

    # ---- Epilogue: fused linear_hy over the whole chunk (one GEMM). ----------
    # Keeps the 3H-wide h slab in VMEM instead of round-tripping through HBM.
    y = (jnp.dot(hall_scr[...].astype(why_ref.dtype), why_ref[...],
                 preferred_element_type=jnp.float32)
         + bhy_ref[...])
    y_ref[...] = y.reshape(t_chunk, Bt, H).astype(y_ref.dtype)
    # NOTE: for H that is a multiple of 128 this store is fully lane-dense;
    # with small H (e.g. 32) the last dim is sub-128 by the output contract.


def _prepare_fused_params(params, input_size, hidden):
    """Fuse per-gate weights (order [i,f,o,g]) and split x-rows from h-rows."""
    H = hidden
    w_gates = jnp.concatenate(
        [params["W_i"], params["W_f"], params["W_o"], params["W_g"]], axis=-1)   # (NL, vec, 4H)
    b_gates = jnp.concatenate(
        [params["b_i"], params["b_f"], params["b_o"], params["b_g"]], axis=-1)   # (NL, 1, 4H)
    # x rows -> one wide (I, NL*4H) weight for the in-kernel prologue GEMM.
    w_x = jnp.concatenate(
        [w_gates[j, :input_size, :] for j in range(NUM_LAYERS)], axis=-1)         # (I, NL*4H)
    b_x = jnp.concatenate(
        [b_gates[j] for j in range(NUM_LAYERS)], axis=-1)                         # (1, NL*4H)
    # h rows ([h_below ; h_lt]) stay resident in the recurrent kernel.
    w_hh = w_gates[:, input_size:input_size + 2 * H, :]                           # (NL, 2H, 4H)
    w_hh0 = w_hh[0, H:2 * H, :]          # layer 0: h_below is always zero
    w_hh_rest = w_hh[1:]                 # (NL-1, 2H, 4H)
    # Peepholes packed per layer as [p_ci | p_cf | p_co] to match [i|f|o].
    peep = jnp.concatenate(
        [params["p_ci"], params["p_cf"], params["p_co"]], axis=-1)                # (NL, 1, 3H)
    return {
        "w_x": w_x.astype(MATMUL_DTYPE),
        "b_x": b_x.astype(jnp.float32),
        "w_hh0": w_hh0.astype(MATMUL_DTYPE),
        "w_hh": w_hh_rest.astype(MATMUL_DTYPE),
        "peep": peep.astype(jnp.float32),
        "w_hy": params["W_hy"].astype(MATMUL_DTYPE),
        "b_hy": params["b_hy"].astype(jnp.float32),
    }


def lstm_forward(x, params, *, t_chunk=8, batch_tile=None,
                 vmem_limit_bytes=48 * 1024 * 1024):
    """x: (seq_len, batch, input_size) float32 -> (seq_len, batch, hidden)."""
    seq_len, batch, input_size = x.shape
    hidden = params["b_hy"].shape[-1]
    H = hidden

    f = _prepare_fused_params(params, input_size, hidden)

    # Pad batch to a sublane multiple (or to the requested tile) and seq_len to
    # a multiple of t_chunk.  Padded rows/timesteps never interact with real
    # ones and are sliced away.
    if batch_tile is None:
        bp = _round_up(batch, 8)
        batch_tile = bp        # one batch chunk.  On v7x (2 TensorCores) pass
                               # batch_tile = _round_up(batch, 16) // 2 so both
                               # cores own an independent batch slice.
    else:
        assert batch_tile % 8 == 0
        bp = _round_up(batch, batch_tile)
    sp = _round_up(seq_len, t_chunk)
    if (sp, bp) != (seq_len, batch):
        x = jnp.pad(x, ((0, sp - seq_len), (0, bp - batch), (0, 0)))

    n_b = bp // batch_tile
    n_t = sp // t_chunk

    kernel = functools.partial(_lstm_kernel, hidden=H, t_chunk=t_chunk)

    def const(shape):
        return pl.BlockSpec(shape, lambda b, t: tuple(0 for _ in shape))

    y = pl.pallas_call(
        kernel,
        out_shape=jax.ShapeDtypeStruct((sp, bp, H), jnp.float32),
        grid_spec=pltpu.PrefetchScalarGridSpec(
            num_scalar_prefetch=0,
            grid=(n_b, n_t),
            in_specs=[
                pl.BlockSpec((t_chunk, batch_tile, input_size),
                             lambda b, t: (t, b, 0)),        # raw x block
                const((input_size, NUM_LAYERS * 4 * H)),     # w_x   (resident)
                const((1, NUM_LAYERS * 4 * H)),              # b_x
                const((H, 4 * H)),                           # w_hh layer 0 (h_lt rows)
                const((NUM_LAYERS - 1, 2 * H, 4 * H)),       # w_hh layers 1..NL-1
                const((NUM_LAYERS, 1, 3 * H)),               # packed peepholes
                const((3 * H, H)),                           # w_hy  (fused epilogue)
                const((1, H)),                               # b_hy
            ],
            out_specs=pl.BlockSpec((t_chunk, batch_tile, H),
                                   lambda b, t: (t, b, 0)),
            scratch_shapes=[
                pltpu.VMEM((t_chunk * batch_tile, NUM_LAYERS * 4 * H), jnp.float32),  # pre
                pltpu.VMEM((t_chunk * batch_tile, NUM_LAYERS * H), jnp.float32),      # h_all
                pltpu.VMEM((batch_tile, NUM_LAYERS * H), jnp.float32),                # h state
                pltpu.VMEM((batch_tile, NUM_LAYERS * H), jnp.float32),                # c state
            ],
        ),
        compiler_params=pltpu.CompilerParams(
            # time is a true recurrence -> "arbitrary"; batch chunks are
            # independent -> "parallel" (splits across TCs when n_b >= 2).
            dimension_semantics=("parallel", "arbitrary"),
            vmem_limit_bytes=vmem_limit_bytes,
        ),
    )(x, f["w_x"], f["b_x"], f["w_hh0"], f["w_hh"], f["peep"], f["w_hy"], f["b_hy"])

    return y[:seq_len, :batch]


def init_params(key, input_size, hidden):
    """Deterministic synthetic parameters (shapes mirror the PyTorch module)."""
    vec_sz = input_size + 2 * hidden
    keys = jax.random.split(key, 16)
    k = iter(keys)
    bound_gate = 1.0 / jnp.sqrt(vec_sz)
    bound_hy = 1.0 / jnp.sqrt(hidden * NUM_LAYERS)

    def uni(kk, shape, bound):
        return jax.random.uniform(kk, shape, jnp.float32, -bound, bound)

    params = {
        # nn.Linear weights are (out, in); stored transposed as (in, out).
        # Row order matches torch.cat([x, h_ln, h_lt], dim=-1).
        "W_i": uni(next(k), (NUM_LAYERS, vec_sz, hidden), bound_gate),
        "b_i": uni(next(k), (NUM_LAYERS, 1, hidden), bound_gate),
        "W_f": uni(next(k), (NUM_LAYERS, vec_sz, hidden), bound_gate),
        "b_f": uni(next(k), (NUM_LAYERS, 1, hidden), bound_gate),
        "W_o": uni(next(k), (NUM_LAYERS, vec_sz, hidden), bound_gate),
        "b_o": uni(next(k), (NUM_LAYERS, 1, hidden), bound_gate),
        "W_g": uni(next(k), (NUM_LAYERS, vec_sz, hidden), bound_gate),
        "b_g": uni(next(k), (NUM_LAYERS, 1, hidden), bound_gate),
        # torch.randn peephole-like params
        "p_ci": jax.random.normal(next(k), (NUM_LAYERS, 1, hidden), jnp.float32),
        "p_cf": jax.random.normal(next(k), (NUM_LAYERS, 1, hidden), jnp.float32),
        "p_co": jax.random.normal(next(k), (NUM_LAYERS, 1, hidden), jnp.float32),
        "W_hy": uni(next(k), (hidden * NUM_LAYERS, hidden), bound_hy),
        "b_hy": uni(next(k), (1, hidden), bound_hy),
    }
    return params


def lstm_reference(x, params):
    """Pure-JAX reference mirroring the PyTorch forward, for validation."""
    seq_len, batch, _ = x.shape
    hidden = params["b_hy"].shape[-1]
    hp = jax.lax.Precision.HIGHEST
    h = jnp.zeros((NUM_LAYERS, batch, hidden), jnp.float32)
    c = jnp.zeros((NUM_LAYERS, batch, hidden), jnp.float32)
    ys = []
    for t in range(seq_len):
        x_t = x[t]
        h_below = jnp.zeros((batch, hidden), jnp.float32)  # last_hn1 never updates
        new_h, new_c = [], []
        for j in range(NUM_LAYERS):
            inp = jnp.concatenate([x_t, h_below, h[j]], axis=-1)
            ig = jnp.dot(inp, params["W_i"][j], precision=hp) + params["b_i"][j]
            fg = jnp.dot(inp, params["W_f"][j], precision=hp) + params["b_f"][j]
            og = jnp.dot(inp, params["W_o"][j], precision=hp) + params["b_o"][j]
            gg = jnp.dot(inp, params["W_g"][j], precision=hp) + params["b_g"][j]
            i_t = jax.nn.sigmoid(ig + params["p_ci"][j] * c[j])
            f_t = jax.nn.sigmoid(fg + params["p_cf"][j] * c[j])
            c_t = i_t * jnp.tanh(gg) + f_t * c[j]
            o_t = jax.nn.sigmoid(og + params["p_co"][j] * c[j])
            h_t = o_t * jnp.tanh(c_t)
            new_h.append(h_t)
            new_c.append(c_t)
            h_below = h_t
        h = jnp.stack(new_h)
        c = jnp.stack(new_c)
        ys.append(jnp.dot(jnp.concatenate(new_h, axis=-1), params["W_hy"],
                          precision=hp) + params["b_hy"])
    return jnp.stack(ys)


if __name__ == "__main__":
    seq_len, batch, input_size, hidden = 8, 4, 16, 32

    key = jax.random.PRNGKey(0)
    k_x, k_p = jax.random.split(key)
    x = jax.random.normal(k_x, (seq_len, batch, input_size), jnp.float32)
    params = init_params(k_p, input_size, hidden)

    fwd = jax.jit(functools.partial(lstm_forward, t_chunk=8))
    y = jax.block_until_ready(fwd(x, params))

    y_ref = lstm_reference(x, params)
    assert y.shape == (seq_len, batch, hidden)
    # All matmuls (x-proj, recurrence, hy-proj) now run at MXU default precision
    # with f32 accumulation, vs. a HIGHEST-precision reference; the tolerance
    # accounts for that (use ~3e-2 if MATMUL_DTYPE is flipped to bfloat16).
    max_err = float(jnp.max(jnp.abs(y - y_ref)))
    assert jnp.allclose(y, y_ref, rtol=1e-2, atol=1e-2), (
        f"mismatch vs reference (max abs err {max_err})")

    print("KERNEL_OK")
</pallas_src>

<mosaic_0001>
module attributes {stable_mosaic.version = 11 : i64} {
  func.func @_lstm_kernel(%arg0: i32, %arg1: i32, %arg2: memref<8x8x16xf32, #tpu.memory_space<vmem>>, %arg3: memref<16x384xf32, #tpu.memory_space<vmem>>, %arg4: memref<1x384xf32, #tpu.memory_space<vmem>>, %arg5: memref<32x128xf32, #tpu.memory_space<vmem>>, %arg6: memref<2x64x128xf32, #tpu.memory_space<vmem>>, %arg7: memref<3x1x96xf32, #tpu.memory_space<vmem>>, %arg8: memref<96x32xf32, #tpu.memory_space<vmem>>, %arg9: memref<1x32xf32, #tpu.memory_space<vmem>>, %arg10: memref<8x8x32xf32, #tpu.memory_space<vmem>>, %arg11: memref<64x384xf32, #tpu.memory_space<vmem>>, %arg12: memref<64x96xf32, #tpu.memory_space<vmem>>, %arg13: memref<8x96xf32, #tpu.memory_space<vmem>>, %arg14: memref<8x96xf32, #tpu.memory_space<vmem>>) attributes {dimension_semantics = [#tpu.dimension_semantics<parallel>, #tpu.dimension_semantics<arbitrary>], iteration_bounds = array<i64: 1, 1>, scalar_prefetch = 0 : i64, scratch_operands = 4 : i64, tpu.core_type = #tpu.core_type<tc>, window_params = [{transform_indices = @transform_0, window_bounds = array<i64: 8, 8, 16>}, {pipeline_mode = #tpu.pipeline_mode<synchronous>, transform_indices = @transform_1, window_bounds = array<i64: 16, 384>}, {pipeline_mode = #tpu.pipeline_mode<synchronous>, transform_indices = @transform_2, window_bounds = array<i64: 1, 384>}, {pipeline_mode = #tpu.pipeline_mode<synchronous>, transform_indices = @transform_3, window_bounds = array<i64: 32, 128>}, {pipeline_mode = #tpu.pipeline_mode<synchronous>, transform_indices = @transform_4, window_bounds = array<i64: 2, 64, 128>}, {pipeline_mode = #tpu.pipeline_mode<synchronous>, transform_indices = @transform_5, window_bounds = array<i64: 3, 1, 96>}, {pipeline_mode = #tpu.pipeline_mode<synchronous>, transform_indices = @transform_6, window_bounds = array<i64: 96, 32>}, {pipeline_mode = #tpu.pipeline_mode<synchronous>, transform_indices = @transform_7, window_bounds = array<i64: 1, 32>}, {transform_indices = @transform_8, window_bounds = array<i64: 8, 8, 32>}]} {
    %c0_i32 = arith.constant 0 : i32
    %0 = arith.cmpi eq, %arg1, %c0_i32 : i32
    %1 = arith.extui %0 : i1 to i32
    %c0_i32_0 = arith.constant 0 : i32
    %2 = arith.cmpi ne, %1, %c0_i32_0 : i32
    scf.if %2 {
      %cst_417 = arith.constant 0.000000e+00 : f32
      %799 = vector.broadcast %cst_417 : f32 to vector<8x96xf32>
      %c0_418 = arith.constant 0 : index
      %c0_419 = arith.constant 0 : index
      %800 = vector.load %arg13[%c0_418, %c0_419] : memref<8x96xf32, #tpu.memory_space<vmem>>, vector<8x96xf32>
      tpu.vector_store %arg13[%c0_418, %c0_419], %799 {strides = array<i32>} : memref<8x96xf32, #tpu.memory_space<vmem>>, vector<8x96xf32>,
      %cst_420 = arith.constant 0.000000e+00 : f32
      %801 = vector.broadcast %cst_420 : f32 to vector<8x96xf32>
      %c0_421 = arith.constant 0 : index
      %c0_422 = arith.constant 0 : index
      %802 = vector.load %arg14[%c0_421, %c0_422] : memref<8x96xf32, #tpu.memory_space<vmem>>, vector<8x96xf32>
      tpu.vector_store %arg14[%c0_421, %c0_422], %801 {strides = array<i32>} : memref<8x96xf32, #tpu.memory_space<vmem>>, vector<8x96xf32>,
    } else {
    }
    %c0 = arith.constant 0 : index
    %c0_1 = arith.constant 0 : index
    %c0_2 = arith.constant 0 : index
    %3 = vector.load %arg2[%c0, %c0_1, %c0_2] : memref<8x8x16xf32, #tpu.memory_space<vmem>>, vector<8x8x16xf32>
    %4 = vector.shape_cast %3 : vector<8x8x16xf32> to vector<64x16xf32>
    %c0_3 = arith.constant 0 : index
    %c0_4 = arith.constant 0 : index
    %5 = vector.load %arg3[%c0_3, %c0_4] : memref<16x384xf32, #tpu.memory_space<vmem>>, vector<16x384xf32>
    %cst = arith.constant dense<0.000000e+00> : vector<64x384xf32>
    %6 = tpu.matmul %4, %5, %cst {dimension_numbers = #tpu.dot_dimension_numbers<[1], [0], [0], [1], [0, 0, 1, 1], [], []>} : vector<64x16xf32>, vector<16x384xf32>, vector<64x384xf32> -> vector<64x384xf32>
    %c0_5 = arith.constant 0 : index
    %c0_6 = arith.constant 0 : index
    %7 = vector.load %arg4[%c0_5, %c0_6] : memref<1x384xf32, #tpu.memory_space<vmem>>, vector<1x384xf32>
    %8 = vector.broadcast %7 : vector<1x384xf32> to vector<64x384xf32>
    %9 = arith.addf %6, %8 : vector<64x384xf32>
    %c0_7 = arith.constant 0 : index
    %c0_8 = arith.constant 0 : index
    %10 = vector.load %arg11[%c0_7, %c0_8] : memref<64x384xf32, #tpu.memory_space<vmem>>, vector<64x384xf32>
    tpu.vector_store %arg11[%c0_7, %c0_8], %9 {strides = array<i32>} : memref<64x384xf32, #tpu.memory_space<vmem>>, vector<64x384xf32>,
    %c0_9 = arith.constant 0 : index
    %c0_10 = arith.constant 0 : index
    %c0_11 = arith.constant 0 : index
    %11 = vector.load %arg7[%c0_9, %c0_10, %c0_11] : memref<3x1x96xf32, #tpu.memory_space<vmem>>, vector<1x1x96xf32>
    %12 = vector.shape_cast %11 : vector<1x1x96xf32> to vector<1x96xf32>
    %13 = vector.shape_cast %12 : vector<1x96xf32> to vector<1x96xf32>
    %14 = vector.broadcast %13 : vector<1x96xf32> to vector<8x96xf32>
    %c1 = arith.constant 1 : index
    %c0_12 = arith.constant 0 : index
    %c0_13 = arith.constant 0 : index
    %15 = vector.load %arg7[%c1, %c0_12, %c0_13] : memref<3x1x96xf32, #tpu.memory_space<vmem>>, vector<1x1x96xf32>
    %16 = vector.shape_cast %15 : vector<1x1x96xf32> to vector<1x96xf32>
    %17 = vector.shape_cast %16 : vector<1x96xf32> to vector<1x96xf32>
    %18 = vector.broadcast %17 : vector<1x96xf32> to vector<8x96xf32>
    %c2 = arith.constant 2 : index
    %c0_14 = arith.constant 0 : index
    %c0_15 = arith.constant 0 : index
    %19 = vector.load %arg7[%c2, %c0_14, %c0_15] : memref<3x1x96xf32, #tpu.memory_space<vmem>>, vector<1x1x96xf32>
    %20 = vector.shape_cast %19 : vector<1x1x96xf32> to vector<1x96xf32>
    %21 = vector.shape_cast %20 : vector<1x96xf32> to vector<1x96xf32>
    %22 = vector.broadcast %21 : vector<1x96xf32> to vector<8x96xf32>
    %c0_i32_16 = arith.constant 0 : i32
    %c8_i32 = arith.constant 8 : i32
    %23 = arith.muli %c0_i32_16, %c8_i32 : i32
    %24 = tpu.assume_multiple %23, 8 : i32
    %25 = arith.index_cast %24 : i32 to index
    %c0_17 = arith.constant 0 : index
    %26 = vector.load %arg11[%25, %c0_17] : memref<64x384xf32, #tpu.memory_space<vmem>>, vector<8x384xf32>
    %c0_18 = arith.constant 0 : index
    %c0_19 = arith.constant 0 : index
    %27 = vector.load %arg14[%c0_18, %c0_19] : memref<8x96xf32, #tpu.memory_space<vmem>>, vector<8x32xf32>
    %28 = vector.extract_strided_slice %26 {offsets = [0, 0], sizes = [8, 128], strides = [1, 1]} : vector<8x384xf32> to vector<8x128xf32>
    %c0_20 = arith.constant 0 : index
    %c0_21 = arith.constant 0 : index
    %29 = vector.load %arg13[%c0_20, %c0_21] : memref<8x96xf32, #tpu.memory_space<vmem>>, vector<8x32xf32>
    %c0_22 = arith.constant 0 : index
    %c0_23 = arith.constant 0 : index
    %30 = vector.load %arg5[%c0_22, %c0_23] : memref<32x128xf32, #tpu.memory_space<vmem>>, vector<32x128xf32>
    %cst_24 = arith.constant dense<0.000000e+00> : vector<8x128xf32>
    %31 = tpu.matmul %29, %30, %cst_24 {dimension_numbers = #tpu.dot_dimension_numbers<[1], [0], [0], [1], [0, 0, 1, 1], [], []>} : vector<8x32xf32>, vector<32x128xf32>, vector<8x128xf32> -> vector<8x128xf32>
    %32 = arith.addf %28, %31 : vector<8x128xf32>
    %33 = tpu.concatenate %27, %27, %27 in 1 : vector<8x32xf32>, vector<8x32xf32>, vector<8x32xf32> -> vector<8x96xf32>
    %34 = vector.extract_strided_slice %32 {offsets = [0, 0], sizes = [8, 96], strides = [1, 1]} : vector<8x128xf32> to vector<8x96xf32>
    %35 = arith.mulf %14, %33 : vector<8x96xf32>
    %36 = arith.addf %34, %35 : vector<8x96xf32>
    %cst_25 = arith.constant 5.000000e-01 : f32
    %37 = vector.broadcast %cst_25 : f32 to vector<8x96xf32>
    %38 = arith.mulf %37, %36 : vector<8x96xf32>
    %39 = math.tanh %38 : vector<8x96xf32>
    %cst_26 = arith.constant 5.000000e-01 : f32
    %40 = vector.broadcast %cst_26 : f32 to vector<8x96xf32>
    %41 = arith.mulf %40, %39 : vector<8x96xf32>
    %cst_27 = arith.constant 5.000000e-01 : f32
    %42 = vector.broadcast %cst_27 : f32 to vector<8x96xf32>
    %43 = arith.addf %41, %42 : vector<8x96xf32>
    %44 = vector.extract_strided_slice %43 {offsets = [0, 0], sizes = [8, 32], strides = [1, 1]} : vector<8x96xf32> to vector<8x32xf32>
    %45 = vector.extract_strided_slice %43 {offsets = [0, 32], sizes = [8, 32], strides = [1, 1]} : vector<8x96xf32> to vector<8x32xf32>
    %46 = vector.extract_strided_slice %43 {offsets = [0, 64], sizes = [8, 32], strides = [1, 1]} : vector<8x96xf32> to vector<8x32xf32>
    %47 = vector.extract_strided_slice %32 {offsets = [0, 96], sizes = [8, 32], strides = [1, 1]} : vector<8x128xf32> to vector<8x32xf32>
    %48 = math.tanh %47 : vector<8x32xf32>
    %49 = arith.mulf %44, %48 : vector<8x32xf32>
    %50 = arith.mulf %45, %27 : vector<8x32xf32>
    %51 = arith.addf %49, %50 : vector<8x32xf32>
    %52 = math.tanh %51 : vector<8x32xf32>
    %53 = arith.mulf %46, %52 : vector<8x32xf32>
    %c0_28 = arith.constant 0 : index
    %c0_29 = arith.constant 0 : index
    %54 = vector.load %arg13[%c0_28, %c0_29] : memref<8x96xf32, #tpu.memory_space<vmem>>, vector<8x32xf32>
    tpu.vector_store %arg13[%c0_28, %c0_29], %53 {strides = array<i32>} : memref<8x96xf32, #tpu.memory_space<vmem>>, vector<8x32xf32>,
    %c0_30 = arith.constant 0 : index
    %c0_31 = arith.constant 0 : index
    %55 = vector.load %arg14[%c0_30, %c0_31] : memref<8x96xf32, #tpu.memory_space<vmem>>, vector<8x32xf32>
    tpu.vector_store %arg14[%c0_30, %c0_31], %51 {strides = array<i32>} : memref<8x96xf32, #tpu.memory_space<vmem>>, vector<8x32xf32>,
    %c0_32 = arith.constant 0 : index
    %c32 = arith.constant 32 : index
    %56 = vector.load %arg14[%c0_32, %c32] : memref<8x96xf32, #tpu.memory_space<vmem>>, vector<8x32xf32>
    %57 = vector.extract_strided_slice %26 {offsets = [0, 128], sizes = [8, 128], strides = [1, 1]} : vector<8x384xf32> to vector<8x128xf32>
    %c0_33 = arith.constant 0 : index
    %c0_34 = arith.constant 0 : index
    %58 = vector.load %arg13[%c0_33, %c0_34] : memref<8x96xf32, #tpu.memory_space<vmem>>, vector<8x64xf32>
    %c0_35 = arith.constant 0 : index
    %c0_36 = arith.constant 0 : index
    %c0_37 = arith.constant 0 : index
    %59 = vector.load %arg6[%c0_35, %c0_36, %c0_37] : memref<2x64x128xf32, #tpu.memory_space<vmem>>, vector<1x64x128xf32>
    %60 = vector.shape_cast %59 : vector<1x64x128xf32> to vector<64x128xf32>
    %cst_38 = arith.constant dense<0.000000e+00> : vector<8x128xf32>
    %61 = tpu.matmul %58, %60, %cst_38 {dimension_numbers = #tpu.dot_dimension_numbers<[1], [0], [0], [1], [0, 0, 1, 1], [], []>} : vector<8x64xf32>, vector<64x128xf32>, vector<8x128xf32> -> vector<8x128xf32>
    %62 = arith.addf %57, %61 : vector<8x128xf32>
    %63 = tpu.concatenate %56, %56, %56 in 1 : vector<8x32xf32>, vector<8x32xf32>, vector<8x32xf32> -> vector<8x96xf32>
    %64 = vector.extract_strided_slice %62 {offsets = [0, 0], sizes = [8, 96], strides = [1, 1]} : vector<8x128xf32> to vector<8x96xf32>
    %65 = arith.mulf %18, %63 : vector<8x96xf32>
    %66 = arith.addf %64, %65 : vector<8x96xf32>
    %cst_39 = arith.constant 5.000000e-01 : f32
    %67 = vector.broadcast %cst_39 : f32 to vector<8x96xf32>
    %68 = arith.mulf %67, %66 : vector<8x96xf32>
    %69 = math.tanh %68 : vector<8x96xf32>
    %cst_40 = arith.constant 5.000000e-01 : f32
    %70 = vector.broadcast %cst_40 : f32 to vector<8x96xf32>
    %71 = arith.mulf %70, %69 : vector<8x96xf32>
    %cst_41 = arith.constant 5.000000e-01 : f32
    %72 = vector.broadcast %cst_41 : f32 to vector<8x96xf32>
    %73 = arith.addf %71, %72 : vector<8x96xf32>
    %74 = vector.extract_strided_slice %73 {offsets = [0, 0], sizes = [8, 32], strides = [1, 1]} : vector<8x96xf32> to vector<8x32xf32>
    %75 = vector.extract_strided_slice %73 {offsets = [0, 32], sizes = [8, 32], strides = [1, 1]} : vector<8x96xf32> to vector<8x32xf32>
    %76 = vector.extract_strided_slice %73 {offsets = [0, 64], sizes = [8, 32], strides = [1, 1]} : vector<8x96xf32> to vector<8x32xf32>
    %77 = vector.extract_strided_slice %62 {offsets = [0, 96], sizes = [8, 32], strides = [1, 1]} : vector<8x128xf32> to vector<8x32xf32>
    %78 = math.tanh %77 : vector<8x32xf32>
    %79 = arith.mulf %74, %78 : vector<8x32xf32>
    %80 = arith.mulf %75, %56 : vector<8x32xf32>
    %81 = arith.addf %79, %80 : vector<8x32xf32>
    %82 = math.tanh %81 : vector<8x32xf32>
    %83 = arith.mulf %76, %82 : vector<8x32xf32>
    %c0_42 = arith.constant 0 : index
    %c32_43 = arith.constant 32 : index
    %84 = vector.load %arg13[%c0_42, %c32_43] : memref<8x96xf32, #tpu.memory_space<vmem>>, vector<8x32xf32>
    tpu.vector_store %arg13[%c0_42, %c32_43], %83 {strides = array<i32>} : memref<8x96xf32, #tpu.memory_space<vmem>>, vector<8x32xf32>,
    %c0_44 = arith.constant 0 : index
    %c32_45 = arith.constant 32 : index
    %85 = vector.load %arg14[%c0_44, %c32_45] : memref<8x96xf32, #tpu.memory_space<vmem>>, vector<8x32xf32>
    tpu.vector_store %arg14[%c0_44, %c32_45], %81 {strides = array<i32>} : memref<8x96xf32, #tpu.memory_space<vmem>>, vector<8x32xf32>,
    %c0_46 = arith.constant 0 : index
    %c64 = arith.constant 64 : index
    %86 = vector.load %arg14[%c0_46, %c64] : memref<8x96xf32, #tpu.memory_space<vmem>>, vector<8x32xf32>
    %87 = vector.extract_strided_slice %26 {offsets = [0, 256], sizes = [8, 128], strides = [1, 1]} : vector<8x384xf32> to vector<8x128xf32>
    %c0_47 = arith.constant 0 : index
    %c32_48 = arith.constant 32 : index
    %88 = vector.load %arg13[%c0_47, %c32_48] : memref<8x96xf32, #tpu.memory_space<vmem>>, vector<8x64xf32>
    %c1_49 = arith.constant 1 : index
    %c0_50 = arith.constant 0 : index
    %c0_51 = arith.constant 0 : index
    %89 = vector.load %arg6[%c1_49, %c0_50, %c0_51] : memref<2x64x128xf32, #tpu.memory_space<vmem>>, vector<1x64x128xf32>
    %90 = vector.shape_cast %89 : vector<1x64x128xf32> to vector<64x128xf32>
    %cst_52 = arith.constant dense<0.000000e+00> : vector<8x128xf32>
    %91 = tpu.matmul %88, %90, %cst_52 {dimension_numbers = #tpu.dot_dimension_numbers<[1], [0], [0], [1], [0, 0, 1, 1], [], []>} : vector<8x64xf32>, vector<64x128xf32>, vector<8x128xf32> -> vector<8x128xf32>
    %92 = arith.addf %87, %91 : vector<8x128xf32>
    %93 = tpu.concatenate %86, %86, %86 in 1 : vector<8x32xf32>, vector<8x32xf32>, vector<8x32xf32> -> vector<8x96xf32>
    %94 = vector.extract_strided_slice %92 {offsets = [0, 0], sizes = [8, 96], strides = [1, 1]} : vector<8x128xf32> to vector<8x96xf32>
    %95 = arith.mulf %22, %93 : vector<8x96xf32>
    %96 = arith.addf %94, %95 : vector<8x96xf32>
    %cst_53 = arith.constant 5.000000e-01 : f32
    %97 = vector.broadcast %cst_53 : f32 to vector<8x96xf32>
    %98 = arith.mulf %97, %96 : vector<8x96xf32>
    %99 = math.tanh %98 : vector<8x96xf32>
    %cst_54 = arith.constant 5.000000e-01 : f32
    %100 = vector.broadcast %cst_54 : f32 to vector<8x96xf32>
    %101 = arith.mulf %100, %99 : vector<8x96xf32>
    %cst_55 = arith.constant 5.000000e-01 : f32
    %102 = vector.broadcast %cst_55 : f32 to vector<8x96xf32>
    %103 = arith.addf %101, %102 : vector<8x96xf32>
    %104 = vector.extract_strided_slice %103 {offsets = [0, 0], sizes = [8, 32], strides = [1, 1]} : vector<8x96xf32> to vector<8x32xf32>
    %105 = vector.extract_strided_slice %103 {offsets = [0, 32], sizes = [8, 32], strides = [1, 1]} : vector<8x96xf32> to vector<8x32xf32>
    %106 = vector.extract_strided_slice %103 {offsets = [0, 64], sizes = [8, 32], strides = [1, 1]} : vector<8x96xf32> to vector<8x32xf32>
    %107 = vector.extract_strided_slice %92 {offsets = [0, 96], sizes = [8, 32], strides = [1, 1]} : vector<8x128xf32> to vector<8x32xf32>
    %108 = math.tanh %107 : vector<8x32xf32>
    %109 = arith.mulf %104, %108 : vector<8x32xf32>
    %110 = arith.mulf %105, %86 : vector<8x32xf32>
    %111 = arith.addf %109, %110 : vector<8x32xf32>
    %112 = math.tanh %111 : vector<8x32xf32>
    %113 = arith.mulf %106, %112 : vector<8x32xf32>
    %c0_56 = arith.constant 0 : index
    %c64_57 = arith.constant 64 : index
    %114 = vector.load %arg13[%c0_56, %c64_57] : memref<8x96xf32, #tpu.memory_space<vmem>>, vector<8x32xf32>
    tpu.vector_store %arg13[%c0_56, %c64_57], %113 {strides = array<i32>} : memref<8x96xf32, #tpu.memory_space<vmem>>, vector<8x32xf32>,
    %c0_58 = arith.constant 0 : index
    %c64_59 = arith.constant 64 : index
    %115 = vector.load %arg14[%c0_58, %c64_59] : memref<8x96xf32, #tpu.memory_space<vmem>>, vector<8x32xf32>
    tpu.vector_store %arg14[%c0_58, %c64_59], %111 {strides = array<i32>} : memref<8x96xf32, #tpu.memory_space<vmem>>, vector<8x32xf32>,
    %c0_60 = arith.constant 0 : index
    %c0_61 = arith.constant 0 : index
    %116 = vector.load %arg13[%c0_60, %c0_61] : memref<8x96xf32, #tpu.memory_space<vmem>>, vector<8x96xf32>
    %117 = arith.index_cast %24 : i32 to index
    %c0_62 = arith.constant 0 : index
    %118 = vector.load %arg12[%117, %c0_62] : memref<64x96xf32, #tpu.memory_space<vmem>>, vector<8x96xf32>
    tpu.vector_store %arg12[%117, %c0_62], %116 {strides = array<i32>} : memref<64x96xf32, #tpu.memory_space<vmem>>, vector<8x96xf32>,
    %c1_i32 = arith.constant 1 : i32
    %c8_i32_63 = arith.constant 8 : i32
    %119 = arith.muli %c1_i32, %c8_i32_63 : i32
    %120 = tpu.assume_multiple %119, 8 : i32
    %121 = arith.index_cast %120 : i32 to index
    %c0_64 = arith.constant 0 : index
    %122 = vector.load %arg11[%121, %c0_64] : memref<64x384xf32, #tpu.memory_space<vmem>>, vector<8x384xf32>
    %c0_65 = arith.constant 0 : index
    %c0_66 = arith.constant 0 : index
    %123 = vector.load %arg14[%c0_65, %c0_66] : memref<8x96xf32, #tpu.memory_space<vmem>>, vector<8x32xf32>
    %124 = vector.extract_strided_slice %122 {offsets = [0, 0], sizes = [8, 128], strides = [1, 1]} : vector<8x384xf32> to vector<8x128xf32>
    %c0_67 = arith.constant 0 : index
    %c0_68 = arith.constant 0 : index
    %125 = vector.load %arg13[%c0_67, %c0_68] : memref<8x96xf32, #tpu.memory_space<vmem>>, vector<8x32xf32>
    %c0_69 = arith.constant 0 : index
    %c0_70 = arith.constant 0 : index
    %126 = vector.load %arg5[%c0_69, %c0_70] : memref<32x128xf32, #tpu.memory_space<vmem>>, vector<32x128xf32>
    %cst_71 = arith.constant dense<0.000000e+00> : vector<8x128xf32>
    %127 = tpu.matmul %125, %126, %cst_71 {dimension_numbers = #tpu.dot_dimension_numbers<[1], [0], [0], [1], [0, 0, 1, 1], [], []>} : vector<8x32xf32>, vector<32x128xf32>, vector<8x128xf32> -> vector<8x128xf32>
    %128 = arith.addf %124, %127 : vector<8x128xf32>
    %129 = tpu.concatenate %123, %123, %123 in 1 : vector<8x32xf32>, vector<8x32xf32>, vector<8x32xf32> -> vector<8x96xf32>
    %130 = vector.extract_strided_slice %128 {offsets = [0, 0], sizes = [8, 96], strides = [1, 1]} : vector<8x128xf32> to vector<8x96xf32>
    %131 = arith.mulf %14, %129 : vector<8x96xf32>
    %132 = arith.addf %130, %131 : vector<8x96xf32>
    %cst_72 = arith.constant 5.000000e-01 : f32
    %133 = vector.broadcast %cst_72 : f32 to vector<8x96xf32>
    %134 = arith.mulf %133, %132 : vector<8x96xf32>
    %135 = math.tanh %134 : vector<8x96xf32>
    %cst_73 = arith.constant 5.000000e-01 : f32
    %136 = vector.broadcast %cst_73 : f32 to vector<8x96xf32>
    %137 = arith.mulf %136, %135 : vector<8x96xf32>
    %cst_74 = arith.constant 5.000000e-01 : f32
    %138 = vector.broadcast %cst_74 : f32 to vector<8x96xf32>
    %139 = arith.addf %137, %138 : vector<8x96xf32>
    %140 = vector.extract_strided_slice %139 {offsets = [0, 0], sizes = [8, 32], strides = [1, 1]} : vector<8x96xf32> to vector<8x32xf32>
    %141 = vector.extract_strided_slice %139 {offsets = [0, 32], sizes = [8, 32], strides = [1, 1]} : vector<8x96xf32> to vector<8x32xf32>
    %142 = vector.extract_strided_slice %139 {offsets = [0, 64], sizes = [8, 32], strides = [1, 1]} : vector<8x96xf32> to vector<8x32xf32>
    %143 = vector.extract_strided_slice %128 {offsets = [0, 96], sizes = [8, 32], strides = [1, 1]} : vector<8x128xf32> to vector<8x32xf32>
    %144 = math.tanh %143 : vector<8x32xf32>
    %145 = arith.mulf %140, %144 : vector<8x32xf32>
    %146 = arith.mulf %141, %123 : vector<8x32xf32>
    %147 = arith.addf %145, %146 : vector<8x32xf32>
    %148 = math.tanh %147 : vector<8x32xf32>
    %149 = arith.mulf %142, %148 : vector<8x32xf32>
    %c0_75 = arith.constant 0 : index
    %c0_76 = arith.constant 0 : index
    %150 = vector.load %arg13[%c0_75, %c0_76] : memref<8x96xf32, #tpu.memory_space<vmem>>, vector<8x32xf32>
    tpu.vector_store %arg13[%c0_75, %c0_76], %149 {strides = array<i32>} : memref<8x96xf32, #tpu.memory_space<vmem>>, vector<8x32xf32>,
    %c0_77 = arith.constant 0 : index
    %c0_78 = arith.constant 0 : index
    %151 = vector.load %arg14[%c0_77, %c0_78] : memref<8x96xf32, #tpu.memory_space<vmem>>, vector<8x32xf32>
    tpu.vector_store %arg14[%c0_77, %c0_78], %147 {strides = array<i32>} : memref<8x96xf32, #tpu.memory_space<vmem>>, vector<8x32xf32>,
    %c0_79 = arith.constant 0 : index
    %c32_80 = arith.constant 32 : index
    %152 = vector.load %arg14[%c0_79, %c32_80] : memref<8x96xf32, #tpu.memory_space<vmem>>, vector<8x32xf32>
    %153 = vector.extract_strided_slice %122 {offsets = [0, 128], sizes = [8, 128], strides = [1, 1]} : vector<8x384xf32> to vector<8x128xf32>
    %c0_81 = arith.constant 0 : index
    %c0_82 = arith.constant 0 : index
    %154 = vector.load %arg13[%c0_81, %c0_82] : memref<8x96xf32, #tpu.memory_space<vmem>>, vector<8x64xf32>
    %c0_83 = arith.constant 0 : index
    %c0_84 = arith.constant 0 : index
    %c0_85 = arith.constant 0 : index
    %155 = vector.load %arg6[%c0_83, %c0_84, %c0_85] : memref<2x64x128xf32, #tpu.memory_space<vmem>>, vector<1x64x128xf32>
    %156 = vector.shape_cast %155 : vector<1x64x128xf32> to vector<64x128xf32>
    %cst_86 = arith.constant dense<0.000000e+00> : vector<8x128xf32>
    %157 = tpu.matmul %154, %156, %cst_86 {dimension_numbers = #tpu.dot_dimension_numbers<[1], [0], [0], [1], [0, 0, 1, 1], [], []>} : vector<8x64xf32>, vector<64x128xf32>, vector<8x128xf32> -> vector<8x128xf32>
    %158 = arith.addf %153, %157 : vector<8x128xf32>
    %159 = tpu.concatenate %152, %152, %152 in 1 : vector<8x32xf32>, vector<8x32xf32>, vector<8x32xf32> -> vector<8x96xf32>
    %160 = vector.extract_strided_slice %158 {offsets = [0, 0], sizes = [8, 96], strides = [1, 1]} : vector<8x128xf32> to vector<8x96xf32>
    %161 = arith.mulf %18, %159 : vector<8x96xf32>
    %162 = arith.addf %160, %161 : vector<8x96xf32>
    %cst_87 = arith.constant 5.000000e-01 : f32
    %163 = vector.broadcast %cst_87 : f32 to vector<8x96xf32>
    %164 = arith.mulf %163, %162 : vector<8x96xf32>
    %165 = math.tanh %164 : vector<8x96xf32>
    %cst_88 = arith.constant 5.000000e-01 : f32
    %166 = vector.broadcast %cst_88 : f32 to vector<8x96xf32>
    %167 = arith.mulf %166, %165 : vector<8x96xf32>
    %cst_89 = arith.constant 5.000000e-01 : f32
    %168 = vector.broadcast %cst_89 : f32 to vector<8x96xf32>
    %169 = arith.addf %167, %168 : vector<8x96xf32>
    %170 = vector.extract_strided_slice %169 {offsets = [0, 0], sizes = [8, 32], strides = [1, 1]} : vector<8x96xf32> to vector<8x32xf32>
    %171 = vector.extract_strided_slice %169 {offsets = [0, 32], sizes = [8, 32], strides = [1, 1]} : vector<8x96xf32> to vector<8x32xf32>
    %172 = vector.extract_strided_slice %169 {offsets = [0, 64], sizes = [8, 32], strides = [1, 1]} : vector<8x96xf32> to vector<8x32xf32>
    %173 = vector.extract_strided_slice %158 {offsets = [0, 96], sizes = [8, 32], strides = [1, 1]} : vector<8x128xf32> to vector<8x32xf32>
    %174 = math.tanh %173 : vector<8x32xf32>
    %175 = arith.mulf %170, %174 : vector<8x32xf32>
    %176 = arith.mulf %171, %152 : vector<8x32xf32>
    %177 = arith.addf %175, %176 : vector<8x32xf32>
    %178 = math.tanh %177 : vector<8x32xf32>
    %179 = arith.mulf %172, %178 : vector<8x32xf32>
    %c0_90 = arith.constant 0 : index
    %c32_91 = arith.constant 32 : index
    %180 = vector.load %arg13[%c0_90, %c32_91] : memref<8x96xf32, #tpu.memory_space<vmem>>, vector<8x32xf32>
    tpu.vector_store %arg13[%c0_90, %c32_91], %179 {strides = array<i32>} : memref<8x96xf32, #tpu.memory_space<vmem>>, vector<8x32xf32>,
    %c0_92 = arith.constant 0 : index
    %c32_93 = arith.constant 32 : index
    %181 = vector.load %arg14[%c0_92, %c32_93] : memref<8x96xf32, #tpu.memory_space<vmem>>, vector<8x32xf32>
    tpu.vector_store %arg14[%c0_92, %c32_93], %177 {strides = array<i32>} : memref<8x96xf32, #tpu.memory_space<vmem>>, vector<8x32xf32>,
    %c0_94 = arith.constant 0 : index
    %c64_95 = arith.constant 64 : index
    %182 = vector.load %arg14[%c0_94, %c64_95] : memref<8x96xf32, #tpu.memory_space<vmem>>, vector<8x32xf32>
    %183 = vector.extract_strided_slice %122 {offsets = [0, 256], sizes = [8, 128], strides = [1, 1]} : vector<8x384xf32> to vector<8x128xf32>
    %c0_96 = arith.constant 0 : index
    %c32_97 = arith.constant 32 : index
    %184 = vector.load %arg13[%c0_96, %c32_97] : memref<8x96xf32, #tpu.memory_space<vmem>>, vector<8x64xf32>
    %c1_98 = arith.constant 1 : index
    %c0_99 = arith.constant 0 : index
    %c0_100 = arith.constant 0 : index
    %185 = vector.load %arg6[%c1_98, %c0_99, %c0_100] : memref<2x64x128xf32, #tpu.memory_space<vmem>>, vector<1x64x128xf32>
    %186 = vector.shape_cast %185 : vector<1x64x128xf32> to vector<64x128xf32>
    %cst_101 = arith.constant dense<0.000000e+00> : vector<8x128xf32>
    %187 = tpu.matmul %184, %186, %cst_101 {dimension_numbers = #tpu.dot_dimension_numbers<[1], [0], [0], [1], [0, 0, 1, 1], [], []>} : vector<8x64xf32>, vector<64x128xf32>, vector<8x128xf32> -> vector<8x128xf32>
    %188 = arith.addf %183, %187 : vector<8x128xf32>
    %189 = tpu.concatenate %182, %182, %182 in 1 : vector<8x32xf32>, vector<8x32xf32>, vector<8x32xf32> -> vector<8x96xf32>
    %190 = vector.extract_strided_slice %188 {offsets = [0, 0], sizes = [8, 96], strides = [1, 1]} : vector<8x128xf32> to vector<8x96xf32>
    %191 = arith.mulf %22, %189 : vector<8x96xf32>
    %192 = arith.addf %190, %191 : vector<8x96xf32>
    %cst_102 = arith.constant 5.000000e-01 : f32
    %193 = vector.broadcast %cst_102 : f32 to vector<8x96xf32>
    %194 = arith.mulf %193, %192 : vector<8x96xf32>
    %195 = math.tanh %194 : vector<8x96xf32>
    %cst_103 = arith.constant 5.000000e-01 : f32
    %196 = vector.broadcast %cst_103 : f32 to vector<8x96xf32>
    %197 = arith.mulf %196, %195 : vector<8x96xf32>
    %cst_104 = arith.constant 5.000000e-01 : f32
    %198 = vector.broadcast %cst_104 : f32 to vector<8x96xf32>
    %199 = arith.addf %197, %198 : vector<8x96xf32>
    %200 = vector.extract_strided_slice %199 {offsets = [0, 0], sizes = [8, 32], strides = [1, 1]} : vector<8x96xf32> to vector<8x32xf32>
    %201 = vector.extract_strided_slice %199 {offsets = [0, 32], sizes = [8, 32], strides = [1, 1]} : vector<8x96xf32> to vector<8x32xf32>
    %202 = vector.extract_strided_slice %199 {offsets = [0, 64], sizes = [8, 32], strides = [1, 1]} : vector<8x96xf32> to vector<8x32xf32>
    %203 = vector.extract_strided_slice %188 {offsets = [0, 96], sizes = [8, 32], strides = [1, 1]} : vector<8x128xf32> to vector<8x32xf32>
    %204 = math.tanh %203 : vector<8x32xf32>
    %205 = arith.mulf %200, %204 : vector<8x32xf32>
    %206 = arith.mulf %201, %182 : vector<8x32xf32>
    %207 = arith.addf %205, %206 : vector<8x32xf32>
    %208 = math.tanh %207 : vector<8x32xf32>
    %209 = arith.mulf %202, %208 : vector<8x32xf32>
    %c0_105 = arith.constant 0 : index
    %c64_106 = arith.constant 64 : index
    %210 = vector.load %arg13[%c0_105, %c64_106] : memref<8x96xf32, #tpu.memory_space<vmem>>, vector<8x32xf32>
    tpu.vector_store %arg13[%c0_105, %c64_106], %209 {strides = array<i32>} : memref<8x96xf32, #tpu.memory_space<vmem>>, vector<8x32xf32>,
    %c0_107 = arith.constant 0 : index
    %c64_108 = arith.constant 64 : index
    %211 = vector.load %arg14[%c0_107, %c64_108] : memref<8x96xf32, #tpu.memory_space<vmem>>, vector<8x32xf32>
    tpu.vector_store %arg14[%c0_107, %c64_108], %207 {strides = array<i32>} : memref<8x96xf32, #tpu.memory_space<vmem>>, vector<8x32xf32>,
    %c0_109 = arith.constant 0 : index
    %c0_110 = arith.constant 0 : index
    %212 = vector.load %arg13[%c0_109, %c0_110] : memref<8x96xf32, #tpu.memory_space<vmem>>, vector<8x96xf32>
    %213 = arith.index_cast %120 : i32 to index
    %c0_111 = arith.constant 0 : index
    %214 = vector.load %arg12[%213, %c0_111] : memref<64x96xf32, #tpu.memory_space<vmem>>, vector<8x96xf32>
    tpu.vector_store %arg12[%213, %c0_111], %212 {strides = array<i32>} : memref<64x96xf32, #tpu.memory_space<vmem>>, vector<8x96xf32>,
    %c2_i32 = arith.constant 2 : i32
    %c8_i32_112 = arith.constant 8 : i32
    %215 = arith.muli %c2_i32, %c8_i32_112 : i32
    %216 = tpu.assume_multiple %215, 8 : i32
    %217 = arith.index_cast %216 : i32 to index
    %c0_113 = arith.constant 0 : index
    %218 = vector.load %arg11[%217, %c0_113] : memref<64x384xf32, #tpu.memory_space<vmem>>, vector<8x384xf32>
    %c0_114 = arith.constant 0 : index
    %c0_115 = arith.constant 0 : index
    %219 = vector.load %arg14[%c0_114, %c0_115] : memref<8x96xf32, #tpu.memory_space<vmem>>, vector<8x32xf32>
    %220 = vector.extract_strided_slice %218 {offsets = [0, 0], sizes = [8, 128], strides = [1, 1]} : vector<8x384xf32> to vector<8x128xf32>
    %c0_116 = arith.constant 0 : index
    %c0_117 = arith.constant 0 : index
    %221 = vector.load %arg13[%c0_116, %c0_117] : memref<8x96xf32, #tpu.memory_space<vmem>>, vector<8x32xf32>
    %c0_118 = arith.constant 0 : index
    %c0_119 = arith.constant 0 : index
    %222 = vector.load %arg5[%c0_118, %c0_119] : memref<32x128xf32, #tpu.memory_space<vmem>>, vector<32x128xf32>
    %cst_120 = arith.constant dense<0.000000e+00> : vector<8x128xf32>
    %223 = tpu.matmul %221, %222, %cst_120 {dimension_numbers = #tpu.dot_dimension_numbers<[1], [0], [0], [1], [0, 0, 1, 1], [], []>} : vector<8x32xf32>, vector<32x128xf32>, vector<8x128xf32> -> vector<8x128xf32>
    %224 = arith.addf %220, %223 : vector<8x128xf32>
    %225 = tpu.concatenate %219, %219, %219 in 1 : vector<8x32xf32>, vector<8x32xf32>, vector<8x32xf32> -> vector<8x96xf32>
    %226 = vector.extract_strided_slice %224 {offsets = [0, 0], sizes = [8, 96], strides = [1, 1]} : vector<8x128xf32> to vector<8x96xf32>
    %227 = arith.mulf %14, %225 : vector<8x96xf32>
    %228 = arith.addf %226, %227 : vector<8x96xf32>
    %cst_121 = arith.constant 5.000000e-01 : f32
    %229 = vector.broadcast %cst_121 : f32 to vector<8x96xf32>
    %230 = arith.mulf %229, %228 : vector<8x96xf32>
    %231 = math.tanh %230 : vector<8x96xf32>
    %cst_122 = arith.constant 5.000000e-01 : f32
    %232 = vector.broadcast %cst_122 : f32 to vector<8x96xf32>
    %233 = arith.mulf %232, %231 : vector<8x96xf32>
    %cst_123 = arith.constant 5.000000e-01 : f32
    %234 = vector.broadcast %cst_123 : f32 to vector<8x96xf32>
    %235 = arith.addf %233, %234 : vector<8x96xf32>
    %236 = vector.extract_strided_slice %235 {offsets = [0, 0], sizes = [8, 32], strides = [1, 1]} : vector<8x96xf32> to vector<8x32xf32>
    %237 = vector.extract_strided_slice %235 {offsets = [0, 32], sizes = [8, 32], strides = [1, 1]} : vector<8x96xf32> to vector<8x32xf32>
    %238 = vector.extract_strided_slice %235 {offsets = [0, 64], sizes = [8, 32], strides = [1, 1]} : vector<8x96xf32> to vector<8x32xf32>
    %239 = vector.extract_strided_slice %224 {offsets = [0, 96], sizes = [8, 32], strides = [1, 1]} : vector<8x128xf32> to vector<8x32xf32>
    %240 = math.tanh %239 : vector<8x32xf32>
    %241 = arith.mulf %236, %240 : vector<8x32xf32>
    %242 = arith.mulf %237, %219 : vector<8x32xf32>
    %243 = arith.addf %241, %242 : vector<8x32xf32>
    %244 = math.tanh %243 : vector<8x32xf32>
    %245 = arith.mulf %238, %244 : vector<8x32xf32>
    %c0_124 = arith.constant 0 : index
    %c0_125 = arith.constant 0 : index
    %246 = vector.load %arg13[%c0_124, %c0_125] : memref<8x96xf32, #tpu.memory_space<vmem>>, vector<8x32xf32>
    tpu.vector_store %arg13[%c0_124, %c0_125], %245 {strides = array<i32>} : memref<8x96xf32, #tpu.memory_space<vmem>>, vector<8x32xf32>,
    %c0_126 = arith.constant 0 : index
    %c0_127 = arith.constant 0 : index
    %247 = vector.load %arg14[%c0_126, %c0_127] : memref<8x96xf32, #tpu.memory_space<vmem>>, vector<8x32xf32>
    tpu.vector_store %arg14[%c0_126, %c0_127], %243 {strides = array<i32>} : memref<8x96xf32, #tpu.memory_space<vmem>>, vector<8x32xf32>,
    %c0_128 = arith.constant 0 : index
    %c32_129 = arith.constant 32 : index
    %248 = vector.load %arg14[%c0_128, %c32_129] : memref<8x96xf32, #tpu.memory_space<vmem>>, vector<8x32xf32>
    %249 = vector.extract_strided_slice %218 {offsets = [0, 128], sizes = [8, 128], strides = [1, 1]} : vector<8x384xf32> to vector<8x128xf32>
    %c0_130 = arith.constant 0 : index
    %c0_131 = arith.constant 0 : index
    %250 = vector.load %arg13[%c0_130, %c0_131] : memref<8x96xf32, #tpu.memory_space<vmem>>, vector<8x64xf32>
    %c0_132 = arith.constant 0 : index
    %c0_133 = arith.constant 0 : index
    %c0_134 = arith.constant 0 : index
    %251 = vector.load %arg6[%c0_132, %c0_133, %c0_134] : memref<2x64x128xf32, #tpu.memory_space<vmem>>, vector<1x64x128xf32>
    %252 = vector.shape_cast %251 : vector<1x64x128xf32> to vector<64x128xf32>
    %cst_135 = arith.constant dense<0.000000e+00> : vector<8x128xf32>
    %253 = tpu.matmul %250, %252, %cst_135 {dimension_numbers = #tpu.dot_dimension_numbers<[1], [0], [0], [1], [0, 0, 1, 1], [], []>} : vector<8x64xf32>, vector<64x128xf32>, vector<8x128xf32> -> vector<8x128xf32>
    %254 = arith.addf %249, %253 : vector<8x128xf32>
    %255 = tpu.concatenate %248, %248, %248 in 1 : vector<8x32xf32>, vector<8x32xf32>, vector<8x32xf32> -> vector<8x96xf32>
    %256 = vector.extract_strided_slice %254 {offsets = [0, 0], sizes = [8, 96], strides = [1, 1]} : vector<8x128xf32> to vector<8x96xf32>
    %257 = arith.mulf %18, %255 : vector<8x96xf32>
    %258 = arith.addf %256, %257 : vector<8x96xf32>
    %cst_136 = arith.constant 5.000000e-01 : f32
    %259 = vector.broadcast %cst_136 : f32 to vector<8x96xf32>
    %260 = arith.mulf %259, %258 : vector<8x96xf32>
    %261 = math.tanh %260 : vector<8x96xf32>
    %cst_137 = arith.constant 5.000000e-01 : f32
    %262 = vector.broadcast %cst_137 : f32 to vector<8x96xf32>
    %263 = arith.mulf %262, %261 : vector<8x96xf32>
    %cst_138 = arith.constant 5.000000e-01 : f32
    %264 = vector.broadcast %cst_138 : f32 to vector<8x96xf32>
    %265 = arith.addf %263, %264 : vector<8x96xf32>
    %266 = vector.extract_strided_slice %265 {offsets = [0, 0], sizes = [8, 32], strides = [1, 1]} : vector<8x96xf32> to vector<8x32xf32>
    %267 = vector.extract_strided_slice %265 {offsets = [0, 32], sizes = [8, 32], strides = [1, 1]} : vector<8x96xf32> to vector<8x32xf32>
    %268 = vector.extract_strided_slice %265 {offsets = [0, 64], sizes = [8, 32], strides = [1, 1]} : vector<8x96xf32> to vector<8x32xf32>
    %269 = vector.extract_strided_slice %254 {offsets = [0, 96], sizes = [8, 32], strides = [1, 1]} : vector<8x128xf32> to vector<8x32xf32>
    %270 = math.tanh %269 : vector<8x32xf32>
    %271 = arith.mulf %266, %270 : vector<8x32xf32>
    %272 = arith.mulf %267, %248 : vector<8x32xf32>
    %273 = arith.addf %271, %272 : vector<8x32xf32>
    %274 = math.tanh %273 : vector<8x32xf32>
    %275 = arith.mulf %268, %274 : vector<8x32xf32>
    %c0_139 = arith.constant 0 : index
    %c32_140 = arith.constant 32 : index
    %276 = vector.load %arg13[%c0_139, %c32_140] : memref<8x96xf32, #tpu.memory_space<vmem>>, vector<8x32xf32>
    tpu.vector_store %arg13[%c0_139, %c32_140], %275 {strides = array<i32>} : memref<8x96xf32, #tpu.memory_space<vmem>>, vector<8x32xf32>,
    %c0_141 = arith.constant 0 : index
    %c32_142 = arith.constant 32 : index
    %277 = vector.load %arg14[%c0_141, %c32_142] : memref<8x96xf32, #tpu.memory_space<vmem>>, vector<8x32xf32>
    tpu.vector_store %arg14[%c0_141, %c32_142], %273 {strides = array<i32>} : memref<8x96xf32, #tpu.memory_space<vmem>>, vector<8x32xf32>,
    %c0_143 = arith.constant 0 : index
    %c64_144 = arith.constant 64 : index
    %278 = vector.load %arg14[%c0_143, %c64_144] : memref<8x96xf32, #tpu.memory_space<vmem>>, vector<8x32xf32>
    %279 = vector.extract_strided_slice %218 {offsets = [0, 256], sizes = [8, 128], strides = [1, 1]} : vector<8x384xf32> to vector<8x128xf32>
    %c0_145 = arith.constant 0 : index
    %c32_146 = arith.constant 32 : index
    %280 = vector.load %arg13[%c0_145, %c32_146] : memref<8x96xf32, #tpu.memory_space<vmem>>, vector<8x64xf32>
    %c1_147 = arith.constant 1 : index
    %c0_148 = arith.constant 0 : index
    %c0_149 = arith.constant 0 : index
    %281 = vector.load %arg6[%c1_147, %c0_148, %c0_149] : memref<2x64x128xf32, #tpu.memory_space<vmem>>, vector<1x64x128xf32>
    %282 = vector.shape_cast %281 : vector<1x64x128xf32> to vector<64x128xf32>
    %cst_150 = arith.constant dense<0.000000e+00> : vector<8x128xf32>
    %283 = tpu.matmul %280, %282, %cst_150 {dimension_numbers = #tpu.dot_dimension_numbers<[1], [0], [0], [1], [0, 0, 1, 1], [], []>} : vector<8x64xf32>, vector<64x128xf32>, vector<8x128xf32> -> vector<8x128xf32>
    %284 = arith.addf %279, %283 : vector<8x128xf32>
    %285 = tpu.concatenate %278, %278, %278 in 1 : vector<8x32xf32>, vector<8x32xf32>, vector<8x32xf32> -> vector<8x96xf32>
    %286 = vector.extract_strided_slice %284 {offsets = [0, 0], sizes = [8, 96], strides = [1, 1]} : vector<8x128xf32> to vector<8x96xf32>
    %287 = arith.mulf %22, %285 : vector<8x96xf32>
    %288 = arith.addf %286, %287 : vector<8x96xf32>
    %cst_151 = arith.constant 5.000000e-01 : f32
    %289 = vector.broadcast %cst_151 : f32 to vector<8x96xf32>
    %290 = arith.mulf %289, %288 : vector<8x96xf32>
    %291 = math.tanh %290 : vector<8x96xf32>
    %cst_152 = arith.constant 5.000000e-01 : f32
    %292 = vector.broadcast %cst_152 : f32 to vector<8x96xf32>
    %293 = arith.mulf %292, %291 : vector<8x96xf32>
    %cst_153 = arith.constant 5.000000e-01 : f32
    %294 = vector.broadcast %cst_153 : f32 to vector<8x96xf32>
    %295 = arith.addf %293, %294 : vector<8x96xf32>
    %296 = vector.extract_strided_slice %295 {offsets = [0, 0], sizes = [8, 32], strides = [1, 1]} : vector<8x96xf32> to vector<8x32xf32>
    %297 = vector.extract_strided_slice %295 {offsets = [0, 32], sizes = [8, 32], strides = [1, 1]} : vector<8x96xf32> to vector<8x32xf32>
    %298 = vector.extract_strided_slice %295 {offsets = [0, 64], sizes = [8, 32], strides = [1, 1]} : vector<8x96xf32> to vector<8x32xf32>
    %299 = vector.extract_strided_slice %284 {offsets = [0, 96], sizes = [8, 32], strides = [1, 1]} : vector<8x128xf32> to vector<8x32xf32>
    %300 = math.tanh %299 : vector<8x32xf32>
    %301 = arith.mulf %296, %300 : vector<8x32xf32>
    %302 = arith.mulf %297, %278 : vector<8x32xf32>
    %303 = arith.addf %301, %302 : vector<8x32xf32>
    %304 = math.tanh %303 : vector<8x32xf32>
    %305 = arith.mulf %298, %304 : vector<8x32xf32>
    %c0_154 = arith.constant 0 : index
    %c64_155 = arith.constant 64 : index
    %306 = vector.load %arg13[%c0_154, %c64_155] : memref<8x96xf32, #tpu.memory_space<vmem>>, vector<8x32xf32>
    tpu.vector_store %arg13[%c0_154, %c64_155], %305 {strides = array<i32>} : memref<8x96xf32, #tpu.memory_space<vmem>>, vector<8x32xf32>,
    %c0_156 = arith.constant 0 : index
    %c64_157 = arith.constant 64 : index
    %307 = vector.load %arg14[%c0_156, %c64_157] : memref<8x96xf32, #tpu.memory_space<vmem>>, vector<8x32xf32>
    tpu.vector_store %arg14[%c0_156, %c64_157], %303 {strides = array<i32>} : memref<8x96xf32, #tpu.memory_space<vmem>>, vector<8x32xf32>,
    %c0_158 = arith.constant 0 : index
    %c0_159 = arith.constant 0 : index
    %308 = vector.load %arg13[%c0_158, %c0_159] : memref<8x96xf32, #tpu.memory_space<vmem>>, vector<8x96xf32>
    %309 = arith.index_cast %216 : i32 to index
    %c0_160 = arith.constant 0 : index
    %310 = vector.load %arg12[%309, %c0_160] : memref<64x96xf32, #tpu.memory_space<vmem>>, vector<8x96xf32>
    tpu.vector_store %arg12[%309, %c0_160], %308 {strides = array<i32>} : memref<64x96xf32, #tpu.memory_space<vmem>>, vector<8x96xf32>,
    %c3_i32 = arith.constant 3 : i32
    %c8_i32_161 = arith.constant 8 : i32
    %311 = arith.muli %c3_i32, %c8_i32_161 : i32
    %312 = tpu.assume_multiple %311, 8 : i32
    %313 = arith.index_cast %312 : i32 to index
    %c0_162 = arith.constant 0 : index
    %314 = vector.load %arg11[%313, %c0_162] : memref<64x384xf32, #tpu.memory_space<vmem>>, vector<8x384xf32>
    %c0_163 = arith.constant 0 : index
    %c0_164 = arith.constant 0 : index
    %315 = vector.load %arg14[%c0_163, %c0_164] : memref<8x96xf32, #tpu.memory_space<vmem>>, vector<8x32xf32>
    %316 = vector.extract_strided_slice %314 {offsets = [0, 0], sizes = [8, 128], strides = [1, 1]} : vector<8x384xf32> to vector<8x128xf32>
    %c0_165 = arith.constant 0 : index
    %c0_166 = arith.constant 0 : index
    %317 = vector.load %arg13[%c0_165, %c0_166] : memref<8x96xf32, #tpu.memory_space<vmem>>, vector<8x32xf32>
    %c0_167 = arith.constant 0 : index
    %c0_168 = arith.constant 0 : index
    %318 = vector.load %arg5[%c0_167, %c0_168] : memref<32x128xf32, #tpu.memory_space<vmem>>, vector<32x128xf32>
    %cst_169 = arith.constant dense<0.000000e+00> : vector<8x128xf32>
    %319 = tpu.matmul %317, %318, %cst_169 {dimension_numbers = #tpu.dot_dimension_numbers<[1], [0], [0], [1], [0, 0, 1, 1], [], []>} : vector<8x32xf32>, vector<32x128xf32>, vector<8x128xf32> -> vector<8x128xf32>
    %320 = arith.addf %316, %319 : vector<8x128xf32>
    %321 = tpu.concatenate %315, %315, %315 in 1 : vector<8x32xf32>, vector<8x32xf32>, vector<8x32xf32> -> vector<8x96xf32>
    %322 = vector.extract_strided_slice %320 {offsets = [0, 0], sizes = [8, 96], strides = [1, 1]} : vector<8x128xf32> to vector<8x96xf32>
    %323 = arith.mulf %14, %321 : vector<8x96xf32>
    %324 = arith.addf %322, %323 : vector<8x96xf32>
    %cst_170 = arith.constant 5.000000e-01 : f32
    %325 = vector.broadcast %cst_170 : f32 to vector<8x96xf32>
    %326 = arith.mulf %325, %324 : vector<8x96xf32>
    %327 = math.tanh %326 : vector<8x96xf32>
    %cst_171 = arith.constant 5.000000e-01 : f32
    %328 = vector.broadcast %cst_171 : f32 to vector<8x96xf32>
    %329 = arith.mulf %328, %327 : vector<8x96xf32>
    %cst_172 = arith.constant 5.000000e-01 : f32
    %330 = vector.broadcast %cst_172 : f32 to vector<8x96xf32>
    %331 = arith.addf %329, %330 : vector<8x96xf32>
    %332 = vector.extract_strided_slice %331 {offsets = [0, 0], sizes = [8, 32], strides = [1, 1]} : vector<8x96xf32> to vector<8x32xf32>
    %333 = vector.extract_strided_slice %331 {offsets = [0, 32], sizes = [8, 32], strides = [1, 1]} : vector<8x96xf32> to vector<8x32xf32>
    %334 = vector.extract_strided_slice %331 {offsets = [0, 64], sizes = [8, 32], strides = [1, 1]} : vector<8x96xf32> to vector<8x32xf32>
    %335 = vector.extract_strided_slice %320 {offsets = [0, 96], sizes = [8, 32], strides = [1, 1]} : vector<8x128xf32> to vector<8x32xf32>
    %336 = math.tanh %335 : vector<8x32xf32>
    %337 = arith.mulf %332, %336 : vector<8x32xf32>
    %338 = arith.mulf %333, %315 : vector<8x32xf32>
    %339 = arith.addf %337, %338 : vector<8x32xf32>
    %340 = math.tanh %339 : vector<8x32xf32>
    %341 = arith.mulf %334, %340 : vector<8x32xf32>
    %c0_173 = arith.constant 0 : index
    %c0_174 = arith.constant 0 : index
    %342 = vector.load %arg13[%c0_173, %c0_174] : memref<8x96xf32, #tpu.memory_space<vmem>>, vector<8x32xf32>
    tpu.vector_store %arg13[%c0_173, %c0_174], %341 {strides = array<i32>} : memref<8x96xf32, #tpu.memory_space<vmem>>, vector<8x32xf32>,
    %c0_175 = arith.constant 0 : index
    %c0_176 = arith.constant 0 : index
    %343 = vector.load %arg14[%c0_175, %c0_176] : memref<8x96xf32, #tpu.memory_space<vmem>>, vector<8x32xf32>
    tpu.vector_store %arg14[%c0_175, %c0_176], %339 {strides = array<i32>} : memref<8x96xf32, #tpu.memory_space<vmem>>, vector<8x32xf32>,
    %c0_177 = arith.constant 0 : index
    %c32_178 = arith.constant 32 : index
    %344 = vector.load %arg14[%c0_177, %c32_178] : memref<8x96xf32, #tpu.memory_space<vmem>>, vector<8x32xf32>
    %345 = vector.extract_strided_slice %314 {offsets = [0, 128], sizes = [8, 128], strides = [1, 1]} : vector<8x384xf32> to vector<8x128xf32>
    %c0_179 = arith.constant 0 : index
    %c0_180 = arith.constant 0 : index
    %346 = vector.load %arg13[%c0_179, %c0_180] : memref<8x96xf32, #tpu.memory_space<vmem>>, vector<8x64xf32>
    %c0_181 = arith.constant 0 : index
    %c0_182 = arith.constant 0 : index
    %c0_183 = arith.constant 0 : index
    %347 = vector.load %arg6[%c0_181, %c0_182, %c0_183] : memref<2x64x128xf32, #tpu.memory_space<vmem>>, vector<1x64x128xf32>
    %348 = vector.shape_cast %347 : vector<1x64x128xf32> to vector<64x128xf32>
    %cst_184 = arith.constant dense<0.000000e+00> : vector<8x128xf32>
    %349 = tpu.matmul %346, %348, %cst_184 {dimension_numbers = #tpu.dot_dimension_numbers<[1], [0], [0], [1], [0, 0, 1, 1], [], []>} : vector<8x64xf32>, vector<64x128xf32>, vector<8x128xf32> -> vector<8x128xf32>
    %350 = arith.addf %345, %349 : vector<8x128xf32>
    %351 = tpu.concatenate %344, %344, %344 in 1 : vector<8x32xf32>, vector<8x32xf32>, vector<8x32xf32> -> vector<8x96xf32>
    %352 = vector.extract_strided_slice %350 {offsets = [0, 0], sizes = [8, 96], strides = [1, 1]} : vector<8x128xf32> to vector<8x96xf32>
    %353 = arith.mulf %18, %351 : vector<8x96xf32>
    %354 = arith.addf %352, %353 : vector<8x96xf32>
    %cst_185 = arith.constant 5.000000e-01 : f32
    %355 = vector.broadcast %cst_185 : f32 to vector<8x96xf32>
    %356 = arith.mulf %355, %354 : vector<8x96xf32>
    %357 = math.tanh %356 : vector<8x96xf32>
    %cst_186 = arith.constant 5.000000e-01 : f32
    %358 = vector.broadcast %cst_186 : f32 to vector<8x96xf32>
    %359 = arith.mulf %358, %357 : vector<8x96xf32>
    %cst_187 = arith.constant 5.000000e-01 : f32
    %360 = vector.broadcast %cst_187 : f32 to vector<8x96xf32>
    %361 = arith.addf %359, %360 : vector<8x96xf32>
    %362 = vector.extract_strided_slice %361 {offsets = [0, 0], sizes = [8, 32], strides = [1, 1]} : vector<8x96xf32> to vector<8x32xf32>
    %363 = vector.extract_strided_slice %361 {offsets = [0, 32], sizes = [8, 32], strides = [1, 1]} : vector<8x96xf32> to vector<8x32xf32>
    %364 = vector.extract_strided_slice %361 {offsets = [0, 64], sizes = [8, 32], strides = [1, 1]} : vector<8x96xf32> to vector<8x32xf32>
    %365 = vector.extract_strided_slice %350 {offsets = [0, 96], sizes = [8, 32], strides = [1, 1]} : vector<8x128xf32> to vector<8x32xf32>
    %366 = math.tanh %365 : vector<8x32xf32>
    %367 = arith.mulf %362, %366 : vector<8x32xf32>
    %368 = arith.mulf %363, %344 : vector<8x32xf32>
    %369 = arith.addf %367, %368 : vector<8x32xf32>
    %370 = math.tanh %369 : vector<8x32xf32>
    %371 = arith.mulf %364, %370 : vector<8x32xf32>
    %c0_188 = arith.constant 0 : index
    %c32_189 = arith.constant 32 : index
    %372 = vector.load %arg13[%c0_188, %c32_189] : memref<8x96xf32, #tpu.memory_space<vmem>>, vector<8x32xf32>
    tpu.vector_store %arg13[%c0_188, %c32_189], %371 {strides = array<i32>} : memref<8x96xf32, #tpu.memory_space<vmem>>, vector<8x32xf32>,
    %c0_190 = arith.constant 0 : index
    %c32_191 = arith.constant 32 : index
    %373 = vector.load %arg14[%c0_190, %c32_191] : memref<8x96xf32, #tpu.memory_space<vmem>>, vector<8x32xf32>
    tpu.vector_store %arg14[%c0_190, %c32_191], %369 {strides = array<i32>} : memref<8x96xf32, #tpu.memory_space<vmem>>, vector<8x32xf32>,
    %c0_192 = arith.constant 0 : index
    %c64_193 = arith.constant 64 : index
    %374 = vector.load %arg14[%c0_192, %c64_193] : memref<8x96xf32, #tpu.memory_space<vmem>>, vector<8x32xf32>
    %375 = vector.extract_strided_slice %314 {offsets = [0, 256], sizes = [8, 128], strides = [1, 1]} : vector<8x384xf32> to vector<8x128xf32>
    %c0_194 = arith.constant 0 : index
    %c32_195 = arith.constant 32 : index
    %376 = vector.load %arg13[%c0_194, %c32_195] : memref<8x96xf32, #tpu.memory_space<vmem>>, vector<8x64xf32>
    %c1_196 = arith.constant 1 : index
    %c0_197 = arith.constant 0 : index
    %c0_198 = arith.constant 0 : index
    %377 = vector.load %arg6[%c1_196, %c0_197, %c0_198] : memref<2x64x128xf32, #tpu.memory_space<vmem>>, vector<1x64x128xf32>
    %378 = vector.shape_cast %377 : vector<1x64x128xf32> to vector<64x128xf32>
    %cst_199 = arith.constant dense<0.000000e+00> : vector<8x128xf32>
    %379 = tpu.matmul %376, %378, %cst_199 {dimension_numbers = #tpu.dot_dimension_numbers<[1], [0], [0], [1], [0, 0, 1, 1], [], []>} : vector<8x64xf32>, vector<64x128xf32>, vector<8x128xf32> -> vector<8x128xf32>
    %380 = arith.addf %375, %379 : vector<8x128xf32>
    %381 = tpu.concatenate %374, %374, %374 in 1 : vector<8x32xf32>, vector<8x32xf32>, vector<8x32xf32> -> vector<8x96xf32>
    %382 = vector.extract_strided_slice %380 {offsets = [0, 0], sizes = [8, 96], strides = [1, 1]} : vector<8x128xf32> to vector<8x96xf32>
    %383 = arith.mulf %22, %381 : vector<8x96xf32>
    %384 = arith.addf %382, %383 : vector<8x96xf32>
    %cst_200 = arith.constant 5.000000e-01 : f32
    %385 = vector.broadcast %cst_200 : f32 to vector<8x96xf32>
    %386 = arith.mulf %385, %384 : vector<8x96xf32>
    %387 = math.tanh %386 : vector<8x96xf32>
    %cst_201 = arith.constant 5.000000e-01 : f32
    %388 = vector.broadcast %cst_201 : f32 to vector<8x96xf32>
    %389 = arith.mulf %388, %387 : vector<8x96xf32>
    %cst_202 = arith.constant 5.000000e-01 : f32
    %390 = vector.broadcast %cst_202 : f32 to vector<8x96xf32>
    %391 = arith.addf %389, %390 : vector<8x96xf32>
    %392 = vector.extract_strided_slice %391 {offsets = [0, 0], sizes = [8, 32], strides = [1, 1]} : vector<8x96xf32> to vector<8x32xf32>
    %393 = vector.extract_strided_slice %391 {offsets = [0, 32], sizes = [8, 32], strides = [1, 1]} : vector<8x96xf32> to vector<8x32xf32>
    %394 = vector.extract_strided_slice %391 {offsets = [0, 64], sizes = [8, 32], strides = [1, 1]} : vector<8x96xf32> to vector<8x32xf32>
    %395 = vector.extract_strided_slice %380 {offsets = [0, 96], sizes = [8, 32], strides = [1, 1]} : vector<8x128xf32> to vector<8x32xf32>
    %396 = math.tanh %395 : vector<8x32xf32>
    %397 = arith.mulf %392, %396 : vector<8x32xf32>
    %398 = arith.mulf %393, %374 : vector<8x32xf32>
    %399 = arith.addf %397, %398 : vector<8x32xf32>
    %400 = math.tanh %399 : vector<8x32xf32>
    %401 = arith.mulf %394, %400 : vector<8x32xf32>
    %c0_203 = arith.constant 0 : index
    %c64_204 = arith.constant 64 : index
    %402 = vector.load %arg13[%c0_203, %c64_204] : memref<8x96xf32, #tpu.memory_space<vmem>>, vector<8x32xf32>
    tpu.vector_store %arg13[%c0_203, %c64_204], %401 {strides = array<i32>} : memref<8x96xf32, #tpu.memory_space<vmem>>, vector<8x32xf32>,
    %c0_205 = arith.constant 0 : index
    %c64_206 = arith.constant 64 : index
    %403 = vector.load %arg14[%c0_205, %c64_206] : memref<8x96xf32, #tpu.memory_space<vmem>>, vector<8x32xf32>
    tpu.vector_store %arg14[%c0_205, %c64_206], %399 {strides = array<i32>} : memref<8x96xf32, #tpu.memory_space<vmem>>, vector<8x32xf32>,
    %c0_207 = arith.constant 0 : index
    %c0_208 = arith.constant 0 : index
    %404 = vector.load %arg13[%c0_207, %c0_208] : memref<8x96xf32, #tpu.memory_space<vmem>>, vector<8x96xf32>
    %405 = arith.index_cast %312 : i32 to index
    %c0_209 = arith.constant 0 : index
    %406 = vector.load %arg12[%405, %c0_209] : memref<64x96xf32, #tpu.memory_space<vmem>>, vector<8x96xf32>
    tpu.vector_store %arg12[%405, %c0_209], %404 {strides = array<i32>} : memref<64x96xf32, #tpu.memory_space<vmem>>, vector<8x96xf32>,
    %c4_i32 = arith.constant 4 : i32
    %c8_i32_210 = arith.constant 8 : i32
    %407 = arith.muli %c4_i32, %c8_i32_210 : i32
    %408 = tpu.assume_multiple %407, 8 : i32
    %409 = arith.index_cast %408 : i32 to index
    %c0_211 = arith.constant 0 : index
    %410 = vector.load %arg11[%409, %c0_211] : memref<64x384xf32, #tpu.memory_space<vmem>>, vector<8x384xf32>
    %c0_212 = arith.constant 0 : index
    %c0_213 = arith.constant 0 : index
    %411 = vector.load %arg14[%c0_212, %c0_213] : memref<8x96xf32, #tpu.memory_space<vmem>>, vector<8x32xf32>
    %412 = vector.extract_strided_slice %410 {offsets = [0, 0], sizes = [8, 128], strides = [1, 1]} : vector<8x384xf32> to vector<8x128xf32>
    %c0_214 = arith.constant 0 : index
    %c0_215 = arith.constant 0 : index
    %413 = vector.load %arg13[%c0_214, %c0_215] : memref<8x96xf32, #tpu.memory_space<vmem>>, vector<8x32xf32>
    %c0_216 = arith.constant 0 : index
    %c0_217 = arith.constant 0 : index
    %414 = vector.load %arg5[%c0_216, %c0_217] : memref<32x128xf32, #tpu.memory_space<vmem>>, vector<32x128xf32>
    %cst_218 = arith.constant dense<0.000000e+00> : vector<8x128xf32>
    %415 = tpu.matmul %413, %414, %cst_218 {dimension_numbers = #tpu.dot_dimension_numbers<[1], [0], [0], [1], [0, 0, 1, 1], [], []>} : vector<8x32xf32>, vector<32x128xf32>, vector<8x128xf32> -> vector<8x128xf32>
    %416 = arith.addf %412, %415 : vector<8x128xf32>
    %417 = tpu.concatenate %411, %411, %411 in 1 : vector<8x32xf32>, vector<8x32xf32>, vector<8x32xf32> -> vector<8x96xf32>
    %418 = vector.extract_strided_slice %416 {offsets = [0, 0], sizes = [8, 96], strides = [1, 1]} : vector<8x128xf32> to vector<8x96xf32>
    %419 = arith.mulf %14, %417 : vector<8x96xf32>
    %420 = arith.addf %418, %419 : vector<8x96xf32>
    %cst_219 = arith.constant 5.000000e-01 : f32
    %421 = vector.broadcast %cst_219 : f32 to vector<8x96xf32>
    %422 = arith.mulf %421, %420 : vector<8x96xf32>
    %423 = math.tanh %422 : vector<8x96xf32>
    %cst_220 = arith.constant 5.000000e-01 : f32
    %424 = vector.broadcast %cst_220 : f32 to vector<8x96xf32>
    %425 = arith.mulf %424, %423 : vector<8x96xf32>
    %cst_221 = arith.constant 5.000000e-01 : f32
    %426 = vector.broadcast %cst_221 : f32 to vector<8x96xf32>
    %427 = arith.addf %425, %426 : vector<8x96xf32>
    %428 = vector.extract_strided_slice %427 {offsets = [0, 0], sizes = [8, 32], strides = [1, 1]} : vector<8x96xf32> to vector<8x32xf32>
    %429 = vector.extract_strided_slice %427 {offsets = [0, 32], sizes = [8, 32], strides = [1, 1]} : vector<8x96xf32> to vector<8x32xf32>
    %430 = vector.extract_strided_slice %427 {offsets = [0, 64], sizes = [8, 32], strides = [1, 1]} : vector<8x96xf32> to vector<8x32xf32>
    %431 = vector.extract_strided_slice %416 {offsets = [0, 96], sizes = [8, 32], strides = [1, 1]} : vector<8x128xf32> to vector<8x32xf32>
    %432 = math.tanh %431 : vector<8x32xf32>
    %433 = arith.mulf %428, %432 : vector<8x32xf32>
    %434 = arith.mulf %429, %411 : vector<8x32xf32>
    %435 = arith.addf %433, %434 : vector<8x32xf32>
    %436 = math.tanh %435 : vector<8x32xf32>
    %437 = arith.mulf %430, %436 : vector<8x32xf32>
    %c0_222 = arith.constant 0 : index
    %c0_223 = arith.constant 0 : index
    %438 = vector.load %arg13[%c0_222, %c0_223] : memref<8x96xf32, #tpu.memory_space<vmem>>, vector<8x32xf32>
    tpu.vector_store %arg13[%c0_222, %c0_223], %437 {strides = array<i32>} : memref<8x96xf32, #tpu.memory_space<vmem>>, vector<8x32xf32>,
    %c0_224 = arith.constant 0 : index
    %c0_225 = arith.constant 0 : index
    %439 = vector.load %arg14[%c0_224, %c0_225] : memref<8x96xf32, #tpu.memory_space<vmem>>, vector<8x32xf32>
    tpu.vector_store %arg14[%c0_224, %c0_225], %435 {strides = array<i32>} : memref<8x96xf32, #tpu.memory_space<vmem>>, vector<8x32xf32>,
    %c0_226 = arith.constant 0 : index
    %c32_227 = arith.constant 32 : index
    %440 = vector.load %arg14[%c0_226, %c32_227] : memref<8x96xf32, #tpu.memory_space<vmem>>, vector<8x32xf32>
    %441 = vector.extract_strided_slice %410 {offsets = [0, 128], sizes = [8, 128], strides = [1, 1]} : vector<8x384xf32> to vector<8x128xf32>
    %c0_228 = arith.constant 0 : index
    %c0_229 = arith.constant 0 : index
    %442 = vector.load %arg13[%c0_228, %c0_229] : memref<8x96xf32, #tpu.memory_space<vmem>>, vector<8x64xf32>
    %c0_230 = arith.constant 0 : index
    %c0_231 = arith.constant 0 : index
    %c0_232 = arith.constant 0 : index
    %443 = vector.load %arg6[%c0_230, %c0_231, %c0_232] : memref<2x64x128xf32, #tpu.memory_space<vmem>>, vector<1x64x128xf32>
    %444 = vector.shape_cast %443 : vector<1x64x128xf32> to vector<64x128xf32>
    %cst_233 = arith.constant dense<0.000000e+00> : vector<8x128xf32>
    %445 = tpu.matmul %442, %444, %cst_233 {dimension_numbers = #tpu.dot_dimension_numbers<[1], [0], [0], [1], [0, 0, 1, 1], [], []>} : vector<8x64xf32>, vector<64x128xf32>, vector<8x128xf32> -> vector<8x128xf32>
    %446 = arith.addf %441, %445 : vector<8x128xf32>
    %447 = tpu.concatenate %440, %440, %440 in 1 : vector<8x32xf32>, vector<8x32xf32>, vector<8x32xf32> -> vector<8x96xf32>
    %448 = vector.extract_strided_slice %446 {offsets = [0, 0], sizes = [8, 96], strides = [1, 1]} : vector<8x128xf32> to vector<8x96xf32>
    %449 = arith.mulf %18, %447 : vector<8x96xf32>
    %450 = arith.addf %448, %449 : vector<8x96xf32>
    %cst_234 = arith.constant 5.000000e-01 : f32
    %451 = vector.broadcast %cst_234 : f32 to vector<8x96xf32>
    %452 = arith.mulf %451, %450 : vector<8x96xf32>
    %453 = math.tanh %452 : vector<8x96xf32>
    %cst_235 = arith.constant 5.000000e-01 : f32
    %454 = vector.broadcast %cst_235 : f32 to vector<8x96xf32>
    %455 = arith.mulf %454, %453 : vector<8x96xf32>
    %cst_236 = arith.constant 5.000000e-01 : f32
    %456 = vector.broadcast %cst_236 : f32 to vector<8x96xf32>
    %457 = arith.addf %455, %456 : vector<8x96xf32>
    %458 = vector.extract_strided_slice %457 {offsets = [0, 0], sizes = [8, 32], strides = [1, 1]} : vector<8x96xf32> to vector<8x32xf32>
    %459 = vector.extract_strided_slice %457 {offsets = [0, 32], sizes = [8, 32], strides = [1, 1]} : vector<8x96xf32> to vector<8x32xf32>
    %460 = vector.extract_strided_slice %457 {offsets = [0, 64], sizes = [8, 32], strides = [1, 1]} : vector<8x96xf32> to vector<8x32xf32>
    %461 = vector.extract_strided_slice %446 {offsets = [0, 96], sizes = [8, 32], strides = [1, 1]} : vector<8x128xf32> to vector<8x32xf32>
    %462 = math.tanh %461 : vector<8x32xf32>
    %463 = arith.mulf %458, %462 : vector<8x32xf32>
    %464 = arith.mulf %459, %440 : vector<8x32xf32>
    %465 = arith.addf %463, %464 : vector<8x32xf32>
    %466 = math.tanh %465 : vector<8x32xf32>
    %467 = arith.mulf %460, %466 : vector<8x32xf32>
    %c0_237 = arith.constant 0 : index
    %c32_238 = arith.constant 32 : index
    %468 = vector.load %arg13[%c0_237, %c32_238] : memref<8x96xf32, #tpu.memory_space<vmem>>, vector<8x32xf32>
    tpu.vector_store %arg13[%c0_237, %c32_238], %467 {strides = array<i32>} : memref<8x96xf32, #tpu.memory_space<vmem>>, vector<8x32xf32>,
    %c0_239 = arith.constant 0 : index
    %c32_240 = arith.constant 32 : index
    %469 = vector.load %arg14[%c0_239, %c32_240] : memref<8x96xf32, #tpu.memory_space<vmem>>, vector<8x32xf32>
    tpu.vector_store %arg14[%c0_239, %c32_240], %465 {strides = array<i32>} : memref<8x96xf32, #tpu.memory_space<vmem>>, vector<8x32xf32>,
    %c0_241 = arith.constant 0 : index
    %c64_242 = arith.constant 64 : index
    %470 = vector.load %arg14[%c0_241, %c64_242] : memref<8x96xf32, #tpu.memory_space<vmem>>, vector<8x32xf32>
    %471 = vector.extract_strided_slice %410 {offsets = [0, 256], sizes = [8, 128], strides = [1, 1]} : vector<8x384xf32> to vector<8x128xf32>
    %c0_243 = arith.constant 0 : index
    %c32_244 = arith.constant 32 : index
    %472 = vector.load %arg13[%c0_243, %c32_244] : memref<8x96xf32, #tpu.memory_space<vmem>>, vector<8x64xf32>
    %c1_245 = arith.constant 1 : index
    %c0_246 = arith.constant 0 : index
    %c0_247 = arith.constant 0 : index
    %473 = vector.load %arg6[%c1_245, %c0_246, %c0_247] : memref<2x64x128xf32, #tpu.memory_space<vmem>>, vector<1x64x128xf32>
    %474 = vector.shape_cast %473 : vector<1x64x128xf32> to vector<64x128xf32>
    %cst_248 = arith.constant dense<0.000000e+00> : vector<8x128xf32>
    %475 = tpu.matmul %472, %474, %cst_248 {dimension_numbers = #tpu.dot_dimension_numbers<[1], [0], [0], [1], [0, 0, 1, 1], [], []>} : vector<8x64xf32>, vector<64x128xf32>, vector<8x128xf32> -> vector<8x128xf32>
    %476 = arith.addf %471, %475 : vector<8x128xf32>
    %477 = tpu.concatenate %470, %470, %470 in 1 : vector<8x32xf32>, vector<8x32xf32>, vector<8x32xf32> -> vector<8x96xf32>
    %478 = vector.extract_strided_slice %476 {offsets = [0, 0], sizes = [8, 96], strides = [1, 1]} : vector<8x128xf32> to vector<8x96xf32>
    %479 = arith.mulf %22, %477 : vector<8x96xf32>
    %480 = arith.addf %478, %479 : vector<8x96xf32>
    %cst_249 = arith.constant 5.000000e-01 : f32
    %481 = vector.broadcast %cst_249 : f32 to vector<8x96xf32>
    %482 = arith.mulf %481, %480 : vector<8x96xf32>
    %483 = math.tanh %482 : vector<8x96xf32>
    %cst_250 = arith.constant 5.000000e-01 : f32
    %484 = vector.broadcast %cst_250 : f32 to vector<8x96xf32>
    %485 = arith.mulf %484, %483 : vector<8x96xf32>
    %cst_251 = arith.constant 5.000000e-01 : f32
    %486 = vector.broadcast %cst_251 : f32 to vector<8x96xf32>
    %487 = arith.addf %485, %486 : vector<8x96xf32>
    %488 = vector.extract_strided_slice %487 {offsets = [0, 0], sizes = [8, 32], strides = [1, 1]} : vector<8x96xf32> to vector<8x32xf32>
    %489 = vector.extract_strided_slice %487 {offsets = [0, 32], sizes = [8, 32], strides = [1, 1]} : vector<8x96xf32> to vector<8x32xf32>
    %490 = vector.extract_strided_slice %487 {offsets = [0, 64], sizes = [8, 32], strides = [1, 1]} : vector<8x96xf32> to vector<8x32xf32>
    %491 = vector.extract_strided_slice %476 {offsets = [0, 96], sizes = [8, 32], strides = [1, 1]} : vector<8x128xf32> to vector<8x32xf32>
    %492 = math.tanh %491 : vector<8x32xf32>
    %493 = arith.mulf %488, %492 : vector<8x32xf32>
    %494 = arith.mulf %489, %470 : vector<8x32xf32>
    %495 = arith.addf %493, %494 : vector<8x32xf32>
    %496 = math.tanh %495 : vector<8x32xf32>
    %497 = arith.mulf %490, %496 : vector<8x32xf32>
    %c0_252 = arith.constant 0 : index
    %c64_253 = arith.constant 64 : index
    %498 = vector.load %arg13[%c0_252, %c64_253] : memref<8x96xf32, #tpu.memory_space<vmem>>, vector<8x32xf32>
    tpu.vector_store %arg13[%c0_252, %c64_253], %497 {strides = array<i32>} : memref<8x96xf32, #tpu.memory_space<vmem>>, vector<8x32xf32>,
    %c0_254 = arith.constant 0 : index
    %c64_255 = arith.constant 64 : index
    %499 = vector.load %arg14[%c0_254, %c64_255] : memref<8x96xf32, #tpu.memory_space<vmem>>, vector<8x32xf32>
    tpu.vector_store %arg14[%c0_254, %c64_255], %495 {strides = array<i32>} : memref<8x96xf32, #tpu.memory_space<vmem>>, vector<8x32xf32>,
    %c0_256 = arith.constant 0 : index
    %c0_257 = arith.constant 0 : index
    %500 = vector.load %arg13[%c0_256, %c0_257] : memref<8x96xf32, #tpu.memory_space<vmem>>, vector<8x96xf32>
    %501 = arith.index_cast %408 : i32 to index
    %c0_258 = arith.constant 0 : index
    %502 = vector.load %arg12[%501, %c0_258] : memref<64x96xf32, #tpu.memory_space<vmem>>, vector<8x96xf32>
    tpu.vector_store %arg12[%501, %c0_258], %500 {strides = array<i32>} : memref<64x96xf32, #tpu.memory_space<vmem>>, vector<8x96xf32>,
    %c5_i32 = arith.constant 5 : i32
    %c8_i32_259 = arith.constant 8 : i32
    %503 = arith.muli %c5_i32, %c8_i32_259 : i32
    %504 = tpu.assume_multiple %503, 8 : i32
    %505 = arith.index_cast %504 : i32 to index
    %c0_260 = arith.constant 0 : index
    %506 = vector.load %arg11[%505, %c0_260] : memref<64x384xf32, #tpu.memory_space<vmem>>, vector<8x384xf32>
    %c0_261 = arith.constant 0 : index
    %c0_262 = arith.constant 0 : index
    %507 = vector.load %arg14[%c0_261, %c0_262] : memref<8x96xf32, #tpu.memory_space<vmem>>, vector<8x32xf32>
    %508 = vector.extract_strided_slice %506 {offsets = [0, 0], sizes = [8, 128], strides = [1, 1]} : vector<8x384xf32> to vector<8x128xf32>
    %c0_263 = arith.constant 0 : index
    %c0_264 = arith.constant 0 : index
    %509 = vector.load %arg13[%c0_263, %c0_264] : memref<8x96xf32, #tpu.memory_space<vmem>>, vector<8x32xf32>
    %c0_265 = arith.constant 0 : index
    %c0_266 = arith.constant 0 : index
    %510 = vector.load %arg5[%c0_265, %c0_266] : memref<32x128xf32, #tpu.memory_space<vmem>>, vector<32x128xf32>
    %cst_267 = arith.constant dense<0.000000e+00> : vector<8x128xf32>
    %511 = tpu.matmul %509, %510, %cst_267 {dimension_numbers = #tpu.dot_dimension_numbers<[1], [0], [0], [1], [0, 0, 1, 1], [], []>} : vector<8x32xf32>, vector<32x128xf32>, vector<8x128xf32> -> vector<8x128xf32>
    %512 = arith.addf %508, %511 : vector<8x128xf32>
    %513 = tpu.concatenate %507, %507, %507 in 1 : vector<8x32xf32>, vector<8x32xf32>, vector<8x32xf32> -> vector<8x96xf32>
    %514 = vector.extract_strided_slice %512 {offsets = [0, 0], sizes = [8, 96], strides = [1, 1]} : vector<8x128xf32> to vector<8x96xf32>
    %515 = arith.mulf %14, %513 : vector<8x96xf32>
    %516 = arith.addf %514, %515 : vector<8x96xf32>
    %cst_268 = arith.constant 5.000000e-01 : f32
    %517 = vector.broadcast %cst_268 : f32 to vector<8x96xf32>
    %518 = arith.mulf %517, %516 : vector<8x96xf32>
    %519 = math.tanh %518 : vector<8x96xf32>
    %cst_269 = arith.constant 5.000000e-01 : f32
    %520 = vector.broadcast %cst_269 : f32 to vector<8x96xf32>
    %521 = arith.mulf %520, %519 : vector<8x96xf32>
    %cst_270 = arith.constant 5.000000e-01 : f32
    %522 = vector.broadcast %cst_270 : f32 to vector<8x96xf32>
    %523 = arith.addf %521, %522 : vector<8x96xf32>
    %524 = vector.extract_strided_slice %523 {offsets = [0, 0], sizes = [8, 32], strides = [1, 1]} : vector<8x96xf32> to vector<8x32xf32>
    %525 = vector.extract_strided_slice %523 {offsets = [0, 32], sizes = [8, 32], strides = [1, 1]} : vector<8x96xf32> to vector<8x32xf32>
    %526 = vector.extract_strided_slice %523 {offsets = [0, 64], sizes = [8, 32], strides = [1, 1]} : vector<8x96xf32> to vector<8x32xf32>
    %527 = vector.extract_strided_slice %512 {offsets = [0, 96], sizes = [8, 32], strides = [1, 1]} : vector<8x128xf32> to vector<8x32xf32>
    %528 = math.tanh %527 : vector<8x32xf32>
    %529 = arith.mulf %524, %528 : vector<8x32xf32>
    %530 = arith.mulf %525, %507 : vector<8x32xf32>
    %531 = arith.addf %529, %530 : vector<8x32xf32>
    %532 = math.tanh %531 : vector<8x32xf32>
    %533 = arith.mulf %526, %532 : vector<8x32xf32>
    %c0_271 = arith.constant 0 : index
    %c0_272 = arith.constant 0 : index
    %534 = vector.load %arg13[%c0_271, %c0_272] : memref<8x96xf32, #tpu.memory_space<vmem>>, vector<8x32xf32>
    tpu.vector_store %arg13[%c0_271, %c0_272], %533 {strides = array<i32>} : memref<8x96xf32, #tpu.memory_space<vmem>>, vector<8x32xf32>,
    %c0_273 = arith.constant 0 : index
    %c0_274 = arith.constant 0 : index
    %535 = vector.load %arg14[%c0_273, %c0_274] : memref<8x96xf32, #tpu.memory_space<vmem>>, vector<8x32xf32>
    tpu.vector_store %arg14[%c0_273, %c0_274], %531 {strides = array<i32>} : memref<8x96xf32, #tpu.memory_space<vmem>>, vector<8x32xf32>,
    %c0_275 = arith.constant 0 : index
    %c32_276 = arith.constant 32 : index
    %536 = vector.load %arg14[%c0_275, %c32_276] : memref<8x96xf32, #tpu.memory_space<vmem>>, vector<8x32xf32>
    %537 = vector.extract_strided_slice %506 {offsets = [0, 128], sizes = [8, 128], strides = [1, 1]} : vector<8x384xf32> to vector<8x128xf32>
    %c0_277 = arith.constant 0 : index
    %c0_278 = arith.constant 0 : index
    %538 = vector.load %arg13[%c0_277, %c0_278] : memref<8x96xf32, #tpu.memory_space<vmem>>, vector<8x64xf32>
    %c0_279 = arith.constant 0 : index
    %c0_280 = arith.constant 0 : index
    %c0_281 = arith.constant 0 : index
    %539 = vector.load %arg6[%c0_279, %c0_280, %c0_281] : memref<2x64x128xf32, #tpu.memory_space<vmem>>, vector<1x64x128xf32>
    %540 = vector.shape_cast %539 : vector<1x64x128xf32> to vector<64x128xf32>
    %cst_282 = arith.constant dense<0.000000e+00> : vector<8x128xf32>
    %541 = tpu.matmul %538, %540, %cst_282 {dimension_numbers = #tpu.dot_dimension_numbers<[1], [0], [0], [1], [0, 0, 1, 1], [], []>} : vector<8x64xf32>, vector<64x128xf32>, vector<8x128xf32> -> vector<8x128xf32>
    %542 = arith.addf %537, %541 : vector<8x128xf32>
    %543 = tpu.concatenate %536, %536, %536 in 1 : vector<8x32xf32>, vector<8x32xf32>, vector<8x32xf32> -> vector<8x96xf32>
    %544 = vector.extract_strided_slice %542 {offsets = [0, 0], sizes = [8, 96], strides = [1, 1]} : vector<8x128xf32> to vector<8x96xf32>
    %545 = arith.mulf %18, %543 : vector<8x96xf32>
    %546 = arith.addf %544, %545 : vector<8x96xf32>
    %cst_283 = arith.constant 5.000000e-01 : f32
    %547 = vector.broadcast %cst_283 : f32 to vector<8x96xf32>
    %548 = arith.mulf %547, %546 : vector<8x96xf32>
    %549 = math.tanh %548 : vector<8x96xf32>
    %cst_284 = arith.constant 5.000000e-01 : f32
    %550 = vector.broadcast %cst_284 : f32 to vector<8x96xf32>
    %551 = arith.mulf %550, %549 : vector<8x96xf32>
    %cst_285 = arith.constant 5.000000e-01 : f32
    %552 = vector.broadcast %cst_285 : f32 to vector<8x96xf32>
    %553 = arith.addf %551, %552 : vector<8x96xf32>
    %554 = vector.extract_strided_slice %553 {offsets = [0, 0], sizes = [8, 32], strides = [1, 1]} : vector<8x96xf32> to vector<8x32xf32>
    %555 = vector.extract_strided_slice %553 {offsets = [0, 32], sizes = [8, 32], strides = [1, 1]} : vector<8x96xf32> to vector<8x32xf32>
    %556 = vector.extract_strided_slice %553 {offsets = [0, 64], sizes = [8, 32], strides = [1, 1]} : vector<8x96xf32> to vector<8x32xf32>
    %557 = vector.extract_strided_slice %542 {offsets = [0, 96], sizes = [8, 32], strides = [1, 1]} : vector<8x128xf32> to vector<8x32xf32>
    %558 = math.tanh %557 : vector<8x32xf32>
    %559 = arith.mulf %554, %558 : vector<8x32xf32>
    %560 = arith.mulf %555, %536 : vector<8x32xf32>
    %561 = arith.addf %559, %560 : vector<8x32xf32>
    %562 = math.tanh %561 : vector<8x32xf32>
    %563 = arith.mulf %556, %562 : vector<8x32xf32>
    %c0_286 = arith.constant 0 : index
    %c32_287 = arith.constant 32 : index
    %564 = vector.load %arg13[%c0_286, %c32_287] : memref<8x96xf32, #tpu.memory_space<vmem>>, vector<8x32xf32>
    tpu.vector_store %arg13[%c0_286, %c32_287], %563 {strides = array<i32>} : memref<8x96xf32, #tpu.memory_space<vmem>>, vector<8x32xf32>,
    %c0_288 = arith.constant 0 : index
    %c32_289 = arith.constant 32 : index
    %565 = vector.load %arg14[%c0_288, %c32_289] : memref<8x96xf32, #tpu.memory_space<vmem>>, vector<8x32xf32>
    tpu.vector_store %arg14[%c0_288, %c32_289], %561 {strides = array<i32>} : memref<8x96xf32, #tpu.memory_space<vmem>>, vector<8x32xf32>,
    %c0_290 = arith.constant 0 : index
    %c64_291 = arith.constant 64 : index
    %566 = vector.load %arg14[%c0_290, %c64_291] : memref<8x96xf32, #tpu.memory_space<vmem>>, vector<8x32xf32>
    %567 = vector.extract_strided_slice %506 {offsets = [0, 256], sizes = [8, 128], strides = [1, 1]} : vector<8x384xf32> to vector<8x128xf32>
    %c0_292 = arith.constant 0 : index
    %c32_293 = arith.constant 32 : index
    %568 = vector.load %arg13[%c0_292, %c32_293] : memref<8x96xf32, #tpu.memory_space<vmem>>, vector<8x64xf32>
    %c1_294 = arith.constant 1 : index
    %c0_295 = arith.constant 0 : index
    %c0_296 = arith.constant 0 : index
    %569 = vector.load %arg6[%c1_294, %c0_295, %c0_296] : memref<2x64x128xf32, #tpu.memory_space<vmem>>, vector<1x64x128xf32>
    %570 = vector.shape_cast %569 : vector<1x64x128xf32> to vector<64x128xf32>
    %cst_297 = arith.constant dense<0.000000e+00> : vector<8x128xf32>
    %571 = tpu.matmul %568, %570, %cst_297 {dimension_numbers = #tpu.dot_dimension_numbers<[1], [0], [0], [1], [0, 0, 1, 1], [], []>} : vector<8x64xf32>, vector<64x128xf32>, vector<8x128xf32> -> vector<8x128xf32>
    %572 = arith.addf %567, %571 : vector<8x128xf32>
    %573 = tpu.concatenate %566, %566, %566 in 1 : vector<8x32xf32>, vector<8x32xf32>, vector<8x32xf32> -> vector<8x96xf32>
    %574 = vector.extract_strided_slice %572 {offsets = [0, 0], sizes = [8, 96], strides = [1, 1]} : vector<8x128xf32> to vector<8x96xf32>
    %575 = arith.mulf %22, %573 : vector<8x96xf32>
    %576 = arith.addf %574, %575 : vector<8x96xf32>
    %cst_298 = arith.constant 5.000000e-01 : f32
    %577 = vector.broadcast %cst_298 : f32 to vector<8x96xf32>
    %578 = arith.mulf %577, %576 : vector<8x96xf32>
    %579 = math.tanh %578 : vector<8x96xf32>
    %cst_299 = arith.constant 5.000000e-01 : f32
    %580 = vector.broadcast %cst_299 : f32 to vector<8x96xf32>
    %581 = arith.mulf %580, %579 : vector<8x96xf32>
    %cst_300 = arith.constant 5.000000e-01 : f32
    %582 = vector.broadcast %cst_300 : f32 to vector<8x96xf32>
    %583 = arith.addf %581, %582 : vector<8x96xf32>
    %584 = vector.extract_strided_slice %583 {offsets = [0, 0], sizes = [8, 32], strides = [1, 1]} : vector<8x96xf32> to vector<8x32xf32>
    %585 = vector.extract_strided_slice %583 {offsets = [0, 32], sizes = [8, 32], strides = [1, 1]} : vector<8x96xf32> to vector<8x32xf32>
    %586 = vector.extract_strided_slice %583 {offsets = [0, 64], sizes = [8, 32], strides = [1, 1]} : vector<8x96xf32> to vector<8x32xf32>
    %587 = vector.extract_strided_slice %572 {offsets = [0, 96], sizes = [8, 32], strides = [1, 1]} : vector<8x128xf32> to vector<8x32xf32>
    %588 = math.tanh %587 : vector<8x32xf32>
    %589 = arith.mulf %584, %588 : vector<8x32xf32>
    %590 = arith.mulf %585, %566 : vector<8x32xf32>
    %591 = arith.addf %589, %590 : vector<8x32xf32>
    %592 = math.tanh %591 : vector<8x32xf32>
    %593 = arith.mulf %586, %592 : vector<8x32xf32>
    %c0_301 = arith.constant 0 : index
    %c64_302 = arith.constant 64 : index
    %594 = vector.load %arg13[%c0_301, %c64_302] : memref<8x96xf32, #tpu.memory_space<vmem>>, vector<8x32xf32>
    tpu.vector_store %arg13[%c0_301, %c64_302], %593 {strides = array<i32>} : memref<8x96xf32, #tpu.memory_space<vmem>>, vector<8x32xf32>,
    %c0_303 = arith.constant 0 : index
    %c64_304 = arith.constant 64 : index
    %595 = vector.load %arg14[%c0_303, %c64_304] : memref<8x96xf32, #tpu.memory_space<vmem>>, vector<8x32xf32>
    tpu.vector_store %arg14[%c0_303, %c64_304], %591 {strides = array<i32>} : memref<8x96xf32, #tpu.memory_space<vmem>>, vector<8x32xf32>,
    %c0_305 = arith.constant 0 : index
    %c0_306 = arith.constant 0 : index
    %596 = vector.load %arg13[%c0_305, %c0_306] : memref<8x96xf32, #tpu.memory_space<vmem>>, vector<8x96xf32>
    %597 = arith.index_cast %504 : i32 to index
    %c0_307 = arith.constant 0 : index
    %598 = vector.load %arg12[%597, %c0_307] : memref<64x96xf32, #tpu.memory_space<vmem>>, vector<8x96xf32>
    tpu.vector_store %arg12[%597, %c0_307], %596 {strides = array<i32>} : memref<64x96xf32, #tpu.memory_space<vmem>>, vector<8x96xf32>,
    %c6_i32 = arith.constant 6 : i32
    %c8_i32_308 = arith.constant 8 : i32
    %599 = arith.muli %c6_i32, %c8_i32_308 : i32
    %600 = tpu.assume_multiple %599, 8 : i32
    %601 = arith.index_cast %600 : i32 to index
    %c0_309 = arith.constant 0 : index
    %602 = vector.load %arg11[%601, %c0_309] : memref<64x384xf32, #tpu.memory_space<vmem>>, vector<8x384xf32>
    %c0_310 = arith.constant 0 : index
    %c0_311 = arith.constant 0 : index
    %603 = vector.load %arg14[%c0_310, %c0_311] : memref<8x96xf32, #tpu.memory_space<vmem>>, vector<8x32xf32>
    %604 = vector.extract_strided_slice %602 {offsets = [0, 0], sizes = [8, 128], strides = [1, 1]} : vector<8x384xf32> to vector<8x128xf32>
    %c0_312 = arith.constant 0 : index
    %c0_313 = arith.constant 0 : index
    %605 = vector.load %arg13[%c0_312, %c0_313] : memref<8x96xf32, #tpu.memory_space<vmem>>, vector<8x32xf32>
    %c0_314 = arith.constant 0 : index
    %c0_315 = arith.constant 0 : index
    %606 = vector.load %arg5[%c0_314, %c0_315] : memref<32x128xf32, #tpu.memory_space<vmem>>, vector<32x128xf32>
    %cst_316 = arith.constant dense<0.000000e+00> : vector<8x128xf32>
    %607 = tpu.matmul %605, %606, %cst_316 {dimension_numbers = #tpu.dot_dimension_numbers<[1], [0], [0], [1], [0, 0, 1, 1], [], []>} : vector<8x32xf32>, vector<32x128xf32>, vector<8x128xf32> -> vector<8x128xf32>
    %608 = arith.addf %604, %607 : vector<8x128xf32>
    %609 = tpu.concatenate %603, %603, %603 in 1 : vector<8x32xf32>, vector<8x32xf32>, vector<8x32xf32> -> vector<8x96xf32>
    %610 = vector.extract_strided_slice %608 {offsets = [0, 0], sizes = [8, 96], strides = [1, 1]} : vector<8x128xf32> to vector<8x96xf32>
    %611 = arith.mulf %14, %609 : vector<8x96xf32>
    %612 = arith.addf %610, %611 : vector<8x96xf32>
    %cst_317 = arith.constant 5.000000e-01 : f32
    %613 = vector.broadcast %cst_317 : f32 to vector<8x96xf32>
    %614 = arith.mulf %613, %612 : vector<8x96xf32>
    %615 = math.tanh %614 : vector<8x96xf32>
    %cst_318 = arith.constant 5.000000e-01 : f32
    %616 = vector.broadcast %cst_318 : f32 to vector<8x96xf32>
    %617 = arith.mulf %616, %615 : vector<8x96xf32>
    %cst_319 = arith.constant 5.000000e-01 : f32
    %618 = vector.broadcast %cst_319 : f32 to vector<8x96xf32>
    %619 = arith.addf %617, %618 : vector<8x96xf32>
    %620 = vector.extract_strided_slice %619 {offsets = [0, 0], sizes = [8, 32], strides = [1, 1]} : vector<8x96xf32> to vector<8x32xf32>
    %621 = vector.extract_strided_slice %619 {offsets = [0, 32], sizes = [8, 32], strides = [1, 1]} : vector<8x96xf32> to vector<8x32xf32>
    %622 = vector.extract_strided_slice %619 {offsets = [0, 64], sizes = [8, 32], strides = [1, 1]} : vector<8x96xf32> to vector<8x32xf32>
    %623 = vector.extract_strided_slice %608 {offsets = [0, 96], sizes = [8, 32], strides = [1, 1]} : vector<8x128xf32> to vector<8x32xf32>
    %624 = math.tanh %623 : vector<8x32xf32>
    %625 = arith.mulf %620, %624 : vector<8x32xf32>
    %626 = arith.mulf %621, %603 : vector<8x32xf32>
    %627 = arith.addf %625, %626 : vector<8x32xf32>
    %628 = math.tanh %627 : vector<8x32xf32>
    %629 = arith.mulf %622, %628 : vector<8x32xf32>
    %c0_320 = arith.constant 0 : index
    %c0_321 = arith.constant 0 : index
    %630 = vector.load %arg13[%c0_320, %c0_321] : memref<8x96xf32, #tpu.memory_space<vmem>>, vector<8x32xf32>
    tpu.vector_store %arg13[%c0_320, %c0_321], %629 {strides = array<i32>} : memref<8x96xf32, #tpu.memory_space<vmem>>, vector<8x32xf32>,
    %c0_322 = arith.constant 0 : index
    %c0_323 = arith.constant 0 : index
    %631 = vector.load %arg14[%c0_322, %c0_323] : memref<8x96xf32, #tpu.memory_space<vmem>>, vector<8x32xf32>
    tpu.vector_store %arg14[%c0_322, %c0_323], %627 {strides = array<i32>} : memref<8x96xf32, #tpu.memory_space<vmem>>, vector<8x32xf32>,
    %c0_324 = arith.constant 0 : index
    %c32_325 = arith.constant 32 : index
    %632 = vector.load %arg14[%c0_324, %c32_325] : memref<8x96xf32, #tpu.memory_space<vmem>>, vector<8x32xf32>
    %633 = vector.extract_strided_slice %602 {offsets = [0, 128], sizes = [8, 128], strides = [1, 1]} : vector<8x384xf32> to vector<8x128xf32>
    %c0_326 = arith.constant 0 : index
    %c0_327 = arith.constant 0 : index
    %634 = vector.load %arg13[%c0_326, %c0_327] : memref<8x96xf32, #tpu.memory_space<vmem>>, vector<8x64xf32>
    %c0_328 = arith.constant 0 : index
    %c0_329 = arith.constant 0 : index
    %c0_330 = arith.constant 0 : index
    %635 = vector.load %arg6[%c0_328, %c0_329, %c0_330] : memref<2x64x128xf32, #tpu.memory_space<vmem>>, vector<1x64x128xf32>
    %636 = vector.shape_cast %635 : vector<1x64x128xf32> to vector<64x128xf32>
    %cst_331 = arith.constant dense<0.000000e+00> : vector<8x128xf32>
    %637 = tpu.matmul %634, %636, %cst_331 {dimension_numbers = #tpu.dot_dimension_numbers<[1], [0], [0], [1], [0, 0, 1, 1], [], []>} : vector<8x64xf32>, vector<64x128xf32>, vector<8x128xf32> -> vector<8x128xf32>
    %638 = arith.addf %633, %637 : vector<8x128xf32>
    %639 = tpu.concatenate %632, %632, %632 in 1 : vector<8x32xf32>, vector<8x32xf32>, vector<8x32xf32> -> vector<8x96xf32>
    %640 = vector.extract_strided_slice %638 {offsets = [0, 0], sizes = [8, 96], strides = [1, 1]} : vector<8x128xf32> to vector<8x96xf32>
    %641 = arith.mulf %18, %639 : vector<8x96xf32>
    %642 = arith.addf %640, %641 : vector<8x96xf32>
    %cst_332 = arith.constant 5.000000e-01 : f32
    %643 = vector.broadcast %cst_332 : f32 to vector<8x96xf32>
    %644 = arith.mulf %643, %642 : vector<8x96xf32>
    %645 = math.tanh %644 : vector<8x96xf32>
    %cst_333 = arith.constant 5.000000e-01 : f32
    %646 = vector.broadcast %cst_333 : f32 to vector<8x96xf32>
    %647 = arith.mulf %646, %645 : vector<8x96xf32>
    %cst_334 = arith.constant 5.000000e-01 : f32
    %648 = vector.broadcast %cst_334 : f32 to vector<8x96xf32>
    %649 = arith.addf %647, %648 : vector<8x96xf32>
    %650 = vector.extract_strided_slice %649 {offsets = [0, 0], sizes = [8, 32], strides = [1, 1]} : vector<8x96xf32> to vector<8x32xf32>
    %651 = vector.extract_strided_slice %649 {offsets = [0, 32], sizes = [8, 32], strides = [1, 1]} : vector<8x96xf32> to vector<8x32xf32>
    %652 = vector.extract_strided_slice %649 {offsets = [0, 64], sizes = [8, 32], strides = [1, 1]} : vector<8x96xf32> to vector<8x32xf32>
    %653 = vector.extract_strided_slice %638 {offsets = [0, 96], sizes = [8, 32], strides = [1, 1]} : vector<8x128xf32> to vector<8x32xf32>
    %654 = math.tanh %653 : vector<8x32xf32>
    %655 = arith.mulf %650, %654 : vector<8x32xf32>
    %656 = arith.mulf %651, %632 : vector<8x32xf32>
    %657 = arith.addf %655, %656 : vector<8x32xf32>
    %658 = math.tanh %657 : vector<8x32xf32>
    %659 = arith.mulf %652, %658 : vector<8x32xf32>
    %c0_335 = arith.constant 0 : index
    %c32_336 = arith.constant 32 : index
    %660 = vector.load %arg13[%c0_335, %c32_336] : memref<8x96xf32, #tpu.memory_space<vmem>>, vector<8x32xf32>
    tpu.vector_store %arg13[%c0_335, %c32_336], %659 {strides = array<i32>} : memref<8x96xf32, #tpu.memory_space<vmem>>, vector<8x32xf32>,
    %c0_337 = arith.constant 0 : index
    %c32_338 = arith.constant 32 : index
    %661 = vector.load %arg14[%c0_337, %c32_338] : memref<8x96xf32, #tpu.memory_space<vmem>>, vector<8x32xf32>
    tpu.vector_store %arg14[%c0_337, %c32_338], %657 {strides = array<i32>} : memref<8x96xf32, #tpu.memory_space<vmem>>, vector<8x32xf32>,
    %c0_339 = arith.constant 0 : index
    %c64_340 = arith.constant 64 : index
    %662 = vector.load %arg14[%c0_339, %c64_340] : memref<8x96xf32, #tpu.memory_space<vmem>>, vector<8x32xf32>
    %663 = vector.extract_strided_slice %602 {offsets = [0, 256], sizes = [8, 128], strides = [1, 1]} : vector<8x384xf32> to vector<8x128xf32>
    %c0_341 = arith.constant 0 : index
    %c32_342 = arith.constant 32 : index
    %664 = vector.load %arg13[%c0_341, %c32_342] : memref<8x96xf32, #tpu.memory_space<vmem>>, vector<8x64xf32>
    %c1_343 = arith.constant 1 : index
    %c0_344 = arith.constant 0 : index
    %c0_345 = arith.constant 0 : index
    %665 = vector.load %arg6[%c1_343, %c0_344, %c0_345] : memref<2x64x128xf32, #tpu.memory_space<vmem>>, vector<1x64x128xf32>
    %666 = vector.shape_cast %665 : vector<1x64x128xf32> to vector<64x128xf32>
    %cst_346 = arith.constant dense<0.000000e+00> : vector<8x128xf32>
    %667 = tpu.matmul %664, %666, %cst_346 {dimension_numbers = #tpu.dot_dimension_numbers<[1], [0], [0], [1], [0, 0, 1, 1], [], []>} : vector<8x64xf32>, vector<64x128xf32>, vector<8x128xf32> -> vector<8x128xf32>
    %668 = arith.addf %663, %667 : vector<8x128xf32>
    %669 = tpu.concatenate %662, %662, %662 in 1 : vector<8x32xf32>, vector<8x32xf32>, vector<8x32xf32> -> vector<8x96xf32>
    %670 = vector.extract_strided_slice %668 {offsets = [0, 0], sizes = [8, 96], strides = [1, 1]} : vector<8x128xf32> to vector<8x96xf32>
    %671 = arith.mulf %22, %669 : vector<8x96xf32>
    %672 = arith.addf %670, %671 : vector<8x96xf32>
    %cst_347 = arith.constant 5.000000e-01 : f32
    %673 = vector.broadcast %cst_347 : f32 to vector<8x96xf32>
    %674 = arith.mulf %673, %672 : vector<8x96xf32>
    %675 = math.tanh %674 : vector<8x96xf32>
    %cst_348 = arith.constant 5.000000e-01 : f32
    %676 = vector.broadcast %cst_348 : f32 to vector<8x96xf32>
    %677 = arith.mulf %676, %675 : vector<8x96xf32>
    %cst_349 = arith.constant 5.000000e-01 : f32
    %678 = vector.broadcast %cst_349 : f32 to vector<8x96xf32>
    %679 = arith.addf %677, %678 : vector<8x96xf32>
    %680 = vector.extract_strided_slice %679 {offsets = [0, 0], sizes = [8, 32], strides = [1, 1]} : vector<8x96xf32> to vector<8x32xf32>
    %681 = vector.extract_strided_slice %679 {offsets = [0, 32], sizes = [8, 32], strides = [1, 1]} : vector<8x96xf32> to vector<8x32xf32>
    %682 = vector.extract_strided_slice %679 {offsets = [0, 64], sizes = [8, 32], strides = [1, 1]} : vector<8x96xf32> to vector<8x32xf32>
    %683 = vector.extract_strided_slice %668 {offsets = [0, 96], sizes = [8, 32], strides = [1, 1]} : vector<8x128xf32> to vector<8x32xf32>
    %684 = math.tanh %683 : vector<8x32xf32>
    %685 = arith.mulf %680, %684 : vector<8x32xf32>
    %686 = arith.mulf %681, %662 : vector<8x32xf32>
    %687 = arith.addf %685, %686 : vector<8x32xf32>
    %688 = math.tanh %687 : vector<8x32xf32>
    %689 = arith.mulf %682, %688 : vector<8x32xf32>
    %c0_350 = arith.constant 0 : index
    %c64_351 = arith.constant 64 : index
    %690 = vector.load %arg13[%c0_350, %c64_351] : memref<8x96xf32, #tpu.memory_space<vmem>>, vector<8x32xf32>
    tpu.vector_store %arg13[%c0_350, %c64_351], %689 {strides = array<i32>} : memref<8x96xf32, #tpu.memory_space<vmem>>, vector<8x32xf32>,
    %c0_352 = arith.constant 0 : index
    %c64_353 = arith.constant 64 : index
    %691 = vector.load %arg14[%c0_352, %c64_353] : memref<8x96xf32, #tpu.memory_space<vmem>>, vector<8x32xf32>
    tpu.vector_store %arg14[%c0_352, %c64_353], %687 {strides = array<i32>} : memref<8x96xf32, #tpu.memory_space<vmem>>, vector<8x32xf32>,
    %c0_354 = arith.constant 0 : index
    %c0_355 = arith.constant 0 : index
    %692 = vector.load %arg13[%c0_354, %c0_355] : memref<8x96xf32, #tpu.memory_space<vmem>>, vector<8x96xf32>
    %693 = arith.index_cast %600 : i32 to index
    %c0_356 = arith.constant 0 : index
    %694 = vector.load %arg12[%693, %c0_356] : memref<64x96xf32, #tpu.memory_space<vmem>>, vector<8x96xf32>
    tpu.vector_store %arg12[%693, %c0_356], %692 {strides = array<i32>} : memref<64x96xf32, #tpu.memory_space<vmem>>, vector<8x96xf32>,
    %c7_i32 = arith.constant 7 : i32
    %c8_i32_357 = arith.constant 8 : i32
    %695 = arith.muli %c7_i32, %c8_i32_357 : i32
    %696 = tpu.assume_multiple %695, 8 : i32
    %697 = arith.index_cast %696 : i32 to index
    %c0_358 = arith.constant 0 : index
    %698 = vector.load %arg11[%697, %c0_358] : memref<64x384xf32, #tpu.memory_space<vmem>>, vector<8x384xf32>
    %c0_359 = arith.constant 0 : index
    %c0_360 = arith.constant 0 : index
    %699 = vector.load %arg14[%c0_359, %c0_360] : memref<8x96xf32, #tpu.memory_space<vmem>>, vector<8x32xf32>
    %700 = vector.extract_strided_slice %698 {offsets = [0, 0], sizes = [8, 128], strides = [1, 1]} : vector<8x384xf32> to vector<8x128xf32>
    %c0_361 = arith.constant 0 : index
    %c0_362 = arith.constant 0 : index
    %701 = vector.load %arg13[%c0_361, %c0_362] : memref<8x96xf32, #tpu.memory_space<vmem>>, vector<8x32xf32>
    %c0_363 = arith.constant 0 : index
    %c0_364 = arith.constant 0 : index
    %702 = vector.load %arg5[%c0_363, %c0_364] : memref<32x128xf32, #tpu.memory_space<vmem>>, vector<32x128xf32>
    %cst_365 = arith.constant dense<0.000000e+00> : vector<8x128xf32>
    %703 = tpu.matmul %701, %702, %cst_365 {dimension_numbers = #tpu.dot_dimension_numbers<[1], [0], [0], [1], [0, 0, 1, 1], [], []>} : vector<8x32xf32>, vector<32x128xf32>, vector<8x128xf32> -> vector<8x128xf32>
    %704 = arith.addf %700, %703 : vector<8x128xf32>
    %705 = tpu.concatenate %699, %699, %699 in 1 : vector<8x32xf32>, vector<8x32xf32>, vector<8x32xf32> -> vector<8x96xf32>
    %706 = vector.extract_strided_slice %704 {offsets = [0, 0], sizes = [8, 96], strides = [1, 1]} : vector<8x128xf32> to vector<8x96xf32>
    %707 = arith.mulf %14, %705 : vector<8x96xf32>
    %708 = arith.addf %706, %707 : vector<8x96xf32>
    %cst_366 = arith.constant 5.000000e-01 : f32
    %709 = vector.broadcast %cst_366 : f32 to vector<8x96xf32>
    %710 = arith.mulf %709, %708 : vector<8x96xf32>
    %711 = math.tanh %710 : vector<8x96xf32>
    %cst_367 = arith.constant 5.000000e-01 : f32
    %712 = vector.broadcast %cst_367 : f32 to vector<8x96xf32>
    %713 = arith.mulf %712, %711 : vector<8x96xf32>
    %cst_368 = arith.constant 5.000000e-01 : f32
    %714 = vector.broadcast %cst_368 : f32 to vector<8x96xf32>
    %715 = arith.addf %713, %714 : vector<8x96xf32>
    %716 = vector.extract_strided_slice %715 {offsets = [0, 0], sizes = [8, 32], strides = [1, 1]} : vector<8x96xf32> to vector<8x32xf32>
    %717 = vector.extract_strided_slice %715 {offsets = [0, 32], sizes = [8, 32], strides = [1, 1]} : vector<8x96xf32> to vector<8x32xf32>
    %718 = vector.extract_strided_slice %715 {offsets = [0, 64], sizes = [8, 32], strides = [1, 1]} : vector<8x96xf32> to vector<8x32xf32>
    %719 = vector.extract_strided_slice %704 {offsets = [0, 96], sizes = [8, 32], strides = [1, 1]} : vector<8x128xf32> to vector<8x32xf32>
    %720 = math.tanh %719 : vector<8x32xf32>
    %721 = arith.mulf %716, %720 : vector<8x32xf32>
    %722 = arith.mulf %717, %699 : vector<8x32xf32>
    %723 = arith.addf %721, %722 : vector<8x32xf32>
    %724 = math.tanh %723 : vector<8x32xf32>
    %725 = arith.mulf %718, %724 : vector<8x32xf32>
    %c0_369 = arith.constant 0 : index
    %c0_370 = arith.constant 0 : index
    %726 = vector.load %arg13[%c0_369, %c0_370] : memref<8x96xf32, #tpu.memory_space<vmem>>, vector<8x32xf32>
    tpu.vector_store %arg13[%c0_369, %c0_370], %725 {strides = array<i32>} : memref<8x96xf32, #tpu.memory_space<vmem>>, vector<8x32xf32>,
    %c0_371 = arith.constant 0 : index
    %c0_372 = arith.constant 0 : index
    %727 = vector.load %arg14[%c0_371, %c0_372] : memref<8x96xf32, #tpu.memory_space<vmem>>, vector<8x32xf32>
    tpu.vector_store %arg14[%c0_371, %c0_372], %723 {strides = array<i32>} : memref<8x96xf32, #tpu.memory_space<vmem>>, vector<8x32xf32>,
    %c0_373 = arith.constant 0 : index
    %c32_374 = arith.constant 32 : index
    %728 = vector.load %arg14[%c0_373, %c32_374] : memref<8x96xf32, #tpu.memory_space<vmem>>, vector<8x32xf32>
    %729 = vector.extract_strided_slice %698 {offsets = [0, 128], sizes = [8, 128], strides = [1, 1]} : vector<8x384xf32> to vector<8x128xf32>
    %c0_375 = arith.constant 0 : index
    %c0_376 = arith.constant 0 : index
    %730 = vector.load %arg13[%c0_375, %c0_376] : memref<8x96xf32, #tpu.memory_space<vmem>>, vector<8x64xf32>
    %c0_377 = arith.constant 0 : index
    %c0_378 = arith.constant 0 : index
    %c0_379 = arith.constant 0 : index
    %731 = vector.load %arg6[%c0_377, %c0_378, %c0_379] : memref<2x64x128xf32, #tpu.memory_space<vmem>>, vector<1x64x128xf32>
    %732 = vector.shape_cast %731 : vector<1x64x128xf32> to vector<64x128xf32>
    %cst_380 = arith.constant dense<0.000000e+00> : vector<8x128xf32>
    %733 = tpu.matmul %730, %732, %cst_380 {dimension_numbers = #tpu.dot_dimension_numbers<[1], [0], [0], [1], [0, 0, 1, 1], [], []>} : vector<8x64xf32>, vector<64x128xf32>, vector<8x128xf32> -> vector<8x128xf32>
    %734 = arith.addf %729, %733 : vector<8x128xf32>
    %735 = tpu.concatenate %728, %728, %728 in 1 : vector<8x32xf32>, vector<8x32xf32>, vector<8x32xf32> -> vector<8x96xf32>
    %736 = vector.extract_strided_slice %734 {offsets = [0, 0], sizes = [8, 96], strides = [1, 1]} : vector<8x128xf32> to vector<8x96xf32>
    %737 = arith.mulf %18, %735 : vector<8x96xf32>
    %738 = arith.addf %736, %737 : vector<8x96xf32>
    %cst_381 = arith.constant 5.000000e-01 : f32
    %739 = vector.broadcast %cst_381 : f32 to vector<8x96xf32>
    %740 = arith.mulf %739, %738 : vector<8x96xf32>
    %741 = math.tanh %740 : vector<8x96xf32>
    %cst_382 = arith.constant 5.000000e-01 : f32
    %742 = vector.broadcast %cst_382 : f32 to vector<8x96xf32>
    %743 = arith.mulf %742, %741 : vector<8x96xf32>
    %cst_383 = arith.constant 5.000000e-01 : f32
    %744 = vector.broadcast %cst_383 : f32 to vector<8x96xf32>
    %745 = arith.addf %743, %744 : vector<8x96xf32>
    %746 = vector.extract_strided_slice %745 {offsets = [0, 0], sizes = [8, 32], strides = [1, 1]} : vector<8x96xf32> to vector<8x32xf32>
    %747 = vector.extract_strided_slice %745 {offsets = [0, 32], sizes = [8, 32], strides = [1, 1]} : vector<8x96xf32> to vector<8x32xf32>
    %748 = vector.extract_strided_slice %745 {offsets = [0, 64], sizes = [8, 32], strides = [1, 1]} : vector<8x96xf32> to vector<8x32xf32>
    %749 = vector.extract_strided_slice %734 {offsets = [0, 96], sizes = [8, 32], strides = [1, 1]} : vector<8x128xf32> to vector<8x32xf32>
    %750 = math.tanh %749 : vector<8x32xf32>
    %751 = arith.mulf %746, %750 : vector<8x32xf32>
    %752 = arith.mulf %747, %728 : vector<8x32xf32>
    %753 = arith.addf %751, %752 : vector<8x32xf32>
    %754 = math.tanh %753 : vector<8x32xf32>
    %755 = arith.mulf %748, %754 : vector<8x32xf32>
    %c0_384 = arith.constant 0 : index
    %c32_385 = arith.constant 32 : index
    %756 = vector.load %arg13[%c0_384, %c32_385] : memref<8x96xf32, #tpu.memory_space<vmem>>, vector<8x32xf32>
    tpu.vector_store %arg13[%c0_384, %c32_385], %755 {strides = array<i32>} : memref<8x96xf32, #tpu.memory_space<vmem>>, vector<8x32xf32>,
    %c0_386 = arith.constant 0 : index
    %c32_387 = arith.constant 32 : index
    %757 = vector.load %arg14[%c0_386, %c32_387] : memref<8x96xf32, #tpu.memory_space<vmem>>, vector<8x32xf32>
    tpu.vector_store %arg14[%c0_386, %c32_387], %753 {strides = array<i32>} : memref<8x96xf32, #tpu.memory_space<vmem>>, vector<8x32xf32>,
    %c0_388 = arith.constant 0 : index
    %c64_389 = arith.constant 64 : index
    %758 = vector.load %arg14[%c0_388, %c64_389] : memref<8x96xf32, #tpu.memory_space<vmem>>, vector<8x32xf32>
    %759 = vector.extract_strided_slice %698 {offsets = [0, 256], sizes = [8, 128], strides = [1, 1]} : vector<8x384xf32> to vector<8x128xf32>
    %c0_390 = arith.constant 0 : index
    %c32_391 = arith.constant 32 : index
    %760 = vector.load %arg13[%c0_390, %c32_391] : memref<8x96xf32, #tpu.memory_space<vmem>>, vector<8x64xf32>
    %c1_392 = arith.constant 1 : index
    %c0_393 = arith.constant 0 : index
    %c0_394 = arith.constant 0 : index
    %761 = vector.load %arg6[%c1_392, %c0_393, %c0_394] : memref<2x64x128xf32, #tpu.memory_space<vmem>>, vector<1x64x128xf32>
    %762 = vector.shape_cast %761 : vector<1x64x128xf32> to vector<64x128xf32>
    %cst_395 = arith.constant dense<0.000000e+00> : vector<8x128xf32>
    %763 = tpu.matmul %760, %762, %cst_395 {dimension_numbers = #tpu.dot_dimension_numbers<[1], [0], [0], [1], [0, 0, 1, 1], [], []>} : vector<8x64xf32>, vector<64x128xf32>, vector<8x128xf32> -> vector<8x128xf32>
    %764 = arith.addf %759, %763 : vector<8x128xf32>
    %765 = tpu.concatenate %758, %758, %758 in 1 : vector<8x32xf32>, vector<8x32xf32>, vector<8x32xf32> -> vector<8x96xf32>
    %766 = vector.extract_strided_slice %764 {offsets = [0, 0], sizes = [8, 96], strides = [1, 1]} : vector<8x128xf32> to vector<8x96xf32>
    %767 = arith.mulf %22, %765 : vector<8x96xf32>
    %768 = arith.addf %766, %767 : vector<8x96xf32>
    %cst_396 = arith.constant 5.000000e-01 : f32
    %769 = vector.broadcast %cst_396 : f32 to vector<8x96xf32>
    %770 = arith.mulf %769, %768 : vector<8x96xf32>
    %771 = math.tanh %770 : vector<8x96xf32>
    %cst_397 = arith.constant 5.000000e-01 : f32
    %772 = vector.broadcast %cst_397 : f32 to vector<8x96xf32>
    %773 = arith.mulf %772, %771 : vector<8x96xf32>
    %cst_398 = arith.constant 5.000000e-01 : f32
    %774 = vector.broadcast %cst_398 : f32 to vector<8x96xf32>
    %775 = arith.addf %773, %774 : vector<8x96xf32>
    %776 = vector.extract_strided_slice %775 {offsets = [0, 0], sizes = [8, 32], strides = [1, 1]} : vector<8x96xf32> to vector<8x32xf32>
    %777 = vector.extract_strided_slice %775 {offsets = [0, 32], sizes = [8, 32], strides = [1, 1]} : vector<8x96xf32> to vector<8x32xf32>
    %778 = vector.extract_strided_slice %775 {offsets = [0, 64], sizes = [8, 32], strides = [1, 1]} : vector<8x96xf32> to vector<8x32xf32>
    %779 = vector.extract_strided_slice %764 {offsets = [0, 96], sizes = [8, 32], strides = [1, 1]} : vector<8x128xf32> to vector<8x32xf32>
    %780 = math.tanh %779 : vector<8x32xf32>
    %781 = arith.mulf %776, %780 : vector<8x32xf32>
    %782 = arith.mulf %777, %758 : vector<8x32xf32>
    %783 = arith.addf %781, %782 : vector<8x32xf32>
    %784 = math.tanh %783 : vector<8x32xf32>
    %785 = arith.mulf %778, %784 : vector<8x32xf32>
    %c0_399 = arith.constant 0 : index
    %c64_400 = arith.constant 64 : index
    %786 = vector.load %arg13[%c0_399, %c64_400] : memref<8x96xf32, #tpu.memory_space<vmem>>, vector<8x32xf32>
    tpu.vector_store %arg13[%c0_399, %c64_400], %785 {strides = array<i32>} : memref<8x96xf32, #tpu.memory_space<vmem>>, vector<8x32xf32>,
    %c0_401 = arith.constant 0 : index
    %c64_402 = arith.constant 64 : index
    %787 = vector.load %arg14[%c0_401, %c64_402] : memref<8x96xf32, #tpu.memory_space<vmem>>, vector<8x32xf32>
    tpu.vector_store %arg14[%c0_401, %c64_402], %783 {strides = array<i32>} : memref<8x96xf32, #tpu.memory_space<vmem>>, vector<8x32xf32>,
    %c0_403 = arith.constant 0 : index
    %c0_404 = arith.constant 0 : index
    %788 = vector.load %arg13[%c0_403, %c0_404] : memref<8x96xf32, #tpu.memory_space<vmem>>, vector<8x96xf32>
    %789 = arith.index_cast %696 : i32 to index
    %c0_405 = arith.constant 0 : index
    %790 = vector.load %arg12[%789, %c0_405] : memref<64x96xf32, #tpu.memory_space<vmem>>, vector<8x96xf32>
    tpu.vector_store %arg12[%789, %c0_405], %788 {strides = array<i32>} : memref<64x96xf32, #tpu.memory_space<vmem>>, vector<8x96xf32>,
    %c8_i32_406 = arith.constant 8 : i32
    %c0_407 = arith.constant 0 : index
    %c0_408 = arith.constant 0 : index
    %791 = vector.load %arg12[%c0_407, %c0_408] : memref<64x96xf32, #tpu.memory_space<vmem>>, vector<64x96xf32>
    %c0_409 = arith.constant 0 : index
    %c0_410 = arith.constant 0 : index
    %792 = vector.load %arg8[%c0_409, %c0_410] : memref<96x32xf32, #tpu.memory_space<vmem>>, vector<96x32xf32>
    %cst_411 = arith.constant dense<0.000000e+00> : vector<64x32xf32>
    %793 = tpu.matmul %791, %792, %cst_411 {dimension_numbers = #tpu.dot_dimension_numbers<[1], [0], [0], [1], [0, 0, 1, 1], [], []>} : vector<64x96xf32>, vector<96x32xf32>, vector<64x32xf32> -> vector<64x32xf32>
    %c0_412 = arith.constant 0 : index
    %c0_413 = arith.constant 0 : index
    %794 = vector.load %arg9[%c0_412, %c0_413] : memref<1x32xf32, #tpu.memory_space<vmem>>, vector<1x32xf32>
    %795 = vector.broadcast %794 : vector<1x32xf32> to vector<64x32xf32>
    %796 = arith.addf %793, %795 : vector<64x32xf32>
    %797 = vector.shape_cast %796 : vector<64x32xf32> to vector<8x8x32xf32>
    %c0_414 = arith.constant 0 : index
    %c0_415 = arith.constant 0 : index
    %c0_416 = arith.constant 0 : index
    %798 = vector.load %arg10[%c0_414, %c0_415, %c0_416] : memref<8x8x32xf32, #tpu.memory_space<vmem>>, vector<8x8x32xf32>
    tpu.vector_store %arg10[%c0_414, %c0_415, %c0_416], %797 {strides = array<i32>} : memref<8x8x32xf32, #tpu.memory_space<vmem>>, vector<8x8x32xf32>,
    return
  }
  func.func @transform_0(%arg0: i32, %arg1: i32) -> (i32, i32, i32) {
    %c0_i32 = arith.constant 0 : i32
    %c0_i32_0 = arith.constant 0 : i32
    return %arg1, %arg0, %c0_i32 : i32, i32, i32
  }
  func.func @transform_1(%arg0: i32, %arg1: i32) -> (i32, i32) {
    %c0_i32 = arith.constant 0 : i32
    %c0_i32_0 = arith.constant 0 : i32
    %c0_i32_1 = arith.constant 0 : i32
    return %c0_i32, %c0_i32_0 : i32, i32
  }
  func.func @transform_2(%arg0: i32, %arg1: i32) -> (i32, i32) {
    %c0_i32 = arith.constant 0 : i32
    %c0_i32_0 = arith.constant 0 : i32
    %c0_i32_1 = arith.constant 0 : i32
    return %c0_i32, %c0_i32_0 : i32, i32
  }
  func.func @transform_3(%arg0: i32, %arg1: i32) -> (i32, i32) {
    %c0_i32 = arith.constant 0 : i32
    %c0_i32_0 = arith.constant 0 : i32
    %c0_i32_1 = arith.constant 0 : i32
    return %c0_i32, %c0_i32_0 : i32, i32
  }
  func.func @transform_4(%arg0: i32, %arg1: i32) -> (i32, i32, i32) {
    %c0_i32 = arith.constant 0 : i32
    %c0_i32_0 = arith.constant 0 : i32
    %c0_i32_1 = arith.constant 0 : i32
    %c0_i32_2 = arith.constant 0 : i32
    return %c0_i32, %c0_i32_0, %c0_i32_1 : i32, i32, i32
  }
  func.func @transform_5(%arg0: i32, %arg1: i32) -> (i32, i32, i32) {
    %c0_i32 = arith.constant 0 : i32
    %c0_i32_0 = arith.constant 0 : i32
    %c0_i32_1 = arith.constant 0 : i32
    %c0_i32_2 = arith.constant 0 : i32
    return %c0_i32, %c0_i32_0, %c0_i32_1 : i32, i32, i32
  }
  func.func @transform_6(%arg0: i32, %arg1: i32) -> (i32, i32) {
    %c0_i32 = arith.constant 0 : i32
    %c0_i32_0 = arith.constant 0 : i32
    %c0_i32_1 = arith.constant 0 : i32
    return %c0_i32, %c0_i32_0 : i32, i32
  }
  func.func @transform_7(%arg0: i32, %arg1: i32) -> (i32, i32) {
    %c0_i32 = arith.constant 0 : i32
    %c0_i32_0 = arith.constant 0 : i32
    %c0_i32_1 = arith.constant 0 : i32
    return %c0_i32, %c0_i32_0 : i32, i32
  }
  func.func @transform_8(%arg0: i32, %arg1: i32) -> (i32, i32, i32) {
    %c0_i32 = arith.constant 0 : i32
    %c0_i32_0 = arith.constant 0 : i32
    return %arg1, %arg0, %c0_i32 : i32, i32, i32
  }
}

</mosaic_0001>

<bundles_post_ra>
// kernel: lstm_forward.1
= control target key start
LH: loop header
LB: loop body
LE: loop exit
PB: predicated region body
PF: predicated region fallthrough
CT: control target
= control target key end

     0   :  { %v4779_v0 = vmov 0.0|0.0   ;;  %v4780_v4 = vmov 0.0   ;;  %vm33_vm0 = vcmask 785408   ;;  %vm4781_vm1 = vmmov 0   ;;  %s4782_s23 = smov 32   ;;  %s4783_s24 = smov 64   ;;  %s5884_s1 = inlined_call_operand.vmem [shape: f32[16,384], index: 1, kind: input, shape index: {}]   ;;  %s5885_s3 = inlined_call_operand.vmem [shape: f32[32,128], index: 3, kind: input, shape index: {}]   ;;  %s5886_s0 = inlined_call_operand.vmem [shape: f32[8,8,16], index: 0, kind: input, shape index: {}]   ;;  %s5887_s2 = inlined_call_operand.vmem [shape: f32[1,384], index: 2, kind: input, shape index: {}]   ;;  %s5888_s5 = inlined_call_operand.vmem [shape: f32[3,1,96], index: 5, kind: input, shape index: {}]   ;;  %s5889_s4 = inlined_call_operand.vmem [shape: f32[2,64,128], index: 4, kind: input, shape index: {}]   ;;  %s5890_s6 = inlined_call_operand.vmem [shape: f32[96,32], index: 6, kind: input, shape index: {}]   ;;  %s5891_s7 = inlined_call_operand.vmem [shape: f32[1,32], index: 7, kind: input, shape index: {}]   ;;  %s5892_s8 = inlined_call_operand.vmem [shape: f32[8,8,32], index: 8, kind: output, shape index: {}]  }
   0x1   :  { %4361 = vmatprep.subr.bf16.mxu1 %v4779_v0  ;;  %v45_v1 = vld [vmem:[%s5884_s1 + $0x8] sm:$0xff]  ;;  %v48_v2 = vld [vmem:[%s5884_s1 + $0x20] sm:$0xff]  ;;  %156 = vmatprep.mubr.f32.mxu0 %v4780_v4  ;;  %v47_v8 = vld [vmem:[%s5884_s1 + $0x18] sm:$0xff]  ;;  %34 = vst.msk [vmem:[#allocation4] sm:$0xff] %vm33_vm0, %v4780_v4  ;;  %vm67_vm2 = vcmask 130048   ;;  %vm369_vm3 = vcmask 261120   ;;  %v52_v17 = vlaneseq }
   0x2   :  { %v365_v3 = vld [vmem:[%s5885_s3] sm:$0xff]  ;;  %v4353_v5 = vpack.c.bf16 %v48_v2, %v45_v1  ;;  %v366_v6 = vld [vmem:[%s5885_s3 + $0x8] sm:$0xff]  ;;  %3933 = vmatprep.mubr.msk.f32.mxu1 %vm4781_vm1, %v4780_v4  ;;  %35 = vst.msk [vmem:[#allocation5] sm:$0xff] %vm33_vm0, %v4780_v4  ;;  %v367_v11 = vld [vmem:[%s5885_s3 + $0x10] sm:$0xff]  ;;  %vm452_vm4 = vcmask 523264   ;;  %vm605_vm5 = vcmask 523520  }
   0x3   :  { %v44_v7 = vld [vmem:[%s5884_s1] sm:$0xff]  ;;  %v4856_v9 = vpack.c.bf16 %v366_v6, %v365_v3  ;;  %v368_v12 = vld [vmem:[%s5885_s3 + $0x18] sm:$0xff]  ;;  %v4883_v18 = vshrl.u32 %v52_v17, 7  ;;  %v46_v45 = vld [vmem:[%s5884_s1 + $0x10] sm:$0xff]  ;;  %vm732_vm6 = vcmask 785920  }
   0x4   :  { %v4355_v10 = vpack.c.bf16 %v47_v8, %v44_v7  ;;  %4354 = vmatprep.subr.bf16.mxu0 %v4353_v5  ;;  %v4868_v13 = vld [vmem:[%s5886_s0] sm:$0xff]  ;;  %v4870_v14 = vpack.c.bf16 %v368_v12, %v367_v11  ;;  %v49_v46 = vld [vmem:[%s5884_s1 + $0x28] sm:$0xff]  ;;  %v38_v49 = vld [vmem:[%s5886_s0 + $0x10] sm:$0xff] }
   0x5   :  { %4363 = vmatpush3.bf16.msra.mxu1 %v4856_v9  ;;  %v54_v20 = vsub.s32 0, %v4883_v18  ;;  %v4889_v21 = vld [vmem:[%s5887_s2] sm:$0x7]  ;;  %s4784_s2 = smov 96   ;;  %v37_v47 = vld [vmem:[%s5886_s0 + $0x8] sm:$0xff]  ;;  %v4357_v48 = vpack.c.bf16 %v49_v46, %v46_v45  ;;  %v39_v51 = vld [vmem:[%s5886_s0 + $0x18] sm:$0xff] }
   0x6   :  { %4356 = vmatpush1.bf16.msra.mxu0 %v4355_v10  ;;  %4364 = vmatprep.subr.bf16.mxu1 %v4779_v0  ;;  %v4901_v28 = vld [vmem:[%s5888_s5] ss:$0 sm:$0xff]  ;;  %v41_v54 = vld [vmem:[%s5886_s0 + $0x28] sm:$0xff]  ;;  %v42_v55 = vld [vmem:[%s5886_s0 + $0x30] sm:$0xff] }
   0x7   :  { %v4892_v22 = vrot.slane %v4889_v21, %v54_v20  ;;  %4358 = vmatprep.subr.bf16.mxu0 %v4357_v48  ;;  %v40_v53 = vld [vmem:[%s5886_s0 + $0x20] sm:$0xff]  ;;  %v43_v56 = vld [vmem:[%s5886_s0 + $0x38] sm:$0xff]  ;;  %v487_v58 = vld [vmem:[%s5889_s4 + $0x8] sm:$0xff] }
   0x8   :  { %v364_v15 = vld [vmem:[#allocation4] sm:$0xff]  ;;  %v488_v60 = vld [vmem:[%s5889_s4 + $0x10] sm:$0xff]  ;;  %v489_v61 = vld [vmem:[%s5889_s4 + $0x18] sm:$0xff] }
   0x9   :  { %3577 = vmatmul.mubr.msk.f32.vlgmr.msra.gmra.mrb[0].mxu0 %vm67_vm2, %v4868_v13  ;;  %4366 = vmatpush3.bf16.msra.mxu1 %v4870_v14  ;;  %v363_v16 = vld [vmem:[#allocation5] sm:$0xff]  ;;  %v486_v57 = vld [vmem:[%s5889_s4] sm:$0xff]  ;;  %v4977_v62 = vpack.c.bf16 %v489_v61, %v488_v60  ;;  %v492_v3 = vld [vmem:[%s5889_s4 + $0x30] sm:$0xff] }
   0xa   :  { %162 = vmatprep.mubr.f32.mxu0 %v4780_v4  ;;  %445 = vrot.lane.b32.xlu0 %v363_v16, %s4782_s23  ;;  %v4966_v59 = vpack.c.bf16 %v487_v58, %v486_v57  ;;  %v490_v63 = vld [vmem:[%s5889_s4 + $0x20] sm:$0xff]  ;;  %v491_v1 = vld [vmem:[%s5889_s4 + $0x28] sm:$0xff]  ;;  %v493_v5 = vld [vmem:[%s5889_s4 + $0x38] sm:$0xff] }
   0xb   :  { %4379 = vmatprep.subr.bf16.mxu1 %v4779_v0  ;;  %4360 = vmatpush3.bf16.msra.mxu0 %v4357_v48  ;;  %v4995_v2 = vpack.c.bf16 %v491_v1, %v490_v63  ;;  %v5005_v6 = vpack.c.bf16 %v493_v5, %v492_v3 }
   0xc   :  { %3934 = vmatmul.mubr.msk.f32.vlgmr.msra.gmra.mrb[0].mxu1 %vm369_vm3, %v364_v15  ;;  %4367 = vmatprep.subr.bf16.mxu0 %v4779_v0 }
   0xd   :  { %3971 = vmatprep.mubr.msk.f32.mxu1 %vm4781_vm1, %v4780_v4  ;;  %3578 = vmatmul.mubr.msk.f32.gmra.mrb[2].mxu0 %vm67_vm2, %v37_v47 }
   0xe   :  { %448 = vrot.lane.b32.xlu0 %v363_v16, %s4783_s24  ;;  %168 = vmatprep.mubr.f32.mxu0 %v4780_v4 }
  0x11   :  { %3579 = vmatmul.mubr.msk.f32.gmra.mrb[4].mxu0 %vm67_vm2, %v38_v49 }
  0x12   :  { %174 = vmatprep.mubr.f32.mxu0 %v4780_v4 }
  0x15   :  { %3580 = vmatmul.mubr.msk.f32.gmra.mrb[6].mxu0 %vm67_vm2, %v39_v51 }
  0x16   :  { %180 = vmatprep.mubr.f32.mxu0 %v4780_v4 }
  0x19   :  { %3581 = vmatmul.mubr.msk.f32.gmra.mrb[8].mxu0 %vm67_vm2, %v40_v53 }
  0x1a   :  { %186 = vmatprep.mubr.f32.mxu0 %v4780_v4 }
  0x1d   :  { %3582 = vmatmul.mubr.msk.f32.gmra.mrb[10].mxu0 %vm67_vm2, %v41_v54 }
  0x1e   :  { %192 = vmatprep.mubr.f32.mxu0 %v4780_v4 }
  0x21   :  { %3583 = vmatmul.mubr.msk.f32.gmra.mrb[12].mxu0 %vm67_vm2, %v42_v55 }
  0x22   :  { %198 = vmatprep.mubr.f32.mxu0 %v4780_v4 }
  0x25   :  { %3584 = vmatmul.mubr.msk.f32.gmra.mrb[14].mxu0 %vm67_vm2, %v43_v56 }
  0x26   :  { %3913 = vmatprep.mubr.msk.f32.mxu0 %vm67_vm2, %v4868_v13 }
  0x29   :  { %3914 = vmatmul.mubr.msk.f32.vlgmr.msra.gmra.mrb[16].mxu0 %vm67_vm2, %v37_v47 }
  0x2a   :  { %4369 = vmatpush3.bf16.msra.mxu0 %v4966_v59  ;;  %3916 = vmatprep.mubr.msk.f32.mxu0 %vm67_vm2, %v38_v49  ;;  %v58_v49 = vsub.s32 1, %v4883_v18 }
  0x2b   :  { %4370 = vmatprep.subr.bf16.mxu0 %v4779_v0 }
  0x2d   :  { %3917 = vmatmul.mubr.msk.f32.gmra.mrb[18].mxu0 %vm67_vm2, %v39_v51  ;;  %v5078_v51 = vrot.slane %v4889_v21, %v58_v49 }
  0x2e   :  { %4372 = vmatpush3.bf16.msra.mxu0 %v4977_v62  ;;  %3919 = vmatprep.mubr.msk.f32.mxu0 %vm67_vm2, %v40_v53 }
  0x2f   :  { %4373 = vmatprep.subr.bf16.mxu0 %v4779_v0 }
  0x31   :  { %3920 = vmatmul.mubr.msk.f32.gmra.mrb[20].mxu0 %vm67_vm2, %v41_v54 }
  0x32   :  { %3922 = vmatprep.mubr.msk.f32.mxu0 %vm67_vm2, %v42_v55  ;;  %4375 = vmatpush3.bf16.msra.mxu0 %v4995_v2  ;;  %v5085_v55 = vld [vmem:[%s5888_s5 + $0x1] ss:$0 sm:$0xff] }
  0x33   :  { %4376 = vmatprep.subr.bf16.mxu0 %v4779_v0 }
  0x35   :  { %3923 = vmatmul.mubr.msk.f32.gmra.mrb[22].mxu0 %vm67_vm2, %v43_v56 }
  0x36   :  { %3952 = vmatprep.mubr.msk.f32.mxu0 %vm4781_vm1, %v4780_v4  ;;  %4378 = vmatpush3.bf16.msra.mxu0 %v5005_v6 }
  0x37   :  { %4391 = vmatprep.subr.bf16.mxu0 %v4779_v0 }
  0x7c   :  { %v446_v19 = vpop.permute.xlu0 %445 }
  0x7d   :  { %v451_v23 = vsel %vm369_vm3, %v363_v16, %v446_v19 }
  0x80   :  { %v449_v24 = vpop.permute.xlu0 %448 }
  0x81   :  { %v453_v29 = vsel %vm452_vm4, %v451_v23, %v449_v24 }
  0x82   :  { %v454_v31 = vmul.f32 %v4901_v28, %v453_v29 }
  0xdc   :  { %v158_v25 = vpop.f32.mrb[0].mxu0 }
  0xdd   :  { %v159_v26 = vadd.f32 %v158_v25, %v4892_v22  ;;  %v4896_v27 = vpop.f32.mrb[1].mxu0 }
  0xde   :  { %v161_v57 = vadd.f32 %v4896_v27, %v5078_v51 }
  0xdf   :  { %v439_v30 = vpop.f32.mrb[0].mxu1 }
  0xe0   :  { %v443_v32 = vadd.f32 %v439_v30, %v159_v26  ;;  %v3935_v33 = vpop.f32.mrb[1].mxu1  ;;  %v5013_v10 = vpop.f32.mrb[2].mxu0  ;;  %v62_v26 = vsub.s32 2, %v4883_v18 }
  0xe1   :  { %v5015_v11 = vpop.f32.mrb[3].mxu0 }
  0xe2   :  { %v455_v34 = vadd.f32 %v454_v31, %v443_v32  ;;  %4631 = vtanh.f32 %v443_v32  ;;  %v5043_v31 = vrot.slane %v4889_v21, %v62_v26 }
  0xe4   :  { %v456_v35 = vmul.f32 0.5, %v455_v34  ;;  %v5017_v12 = vpop.f32.mrb[4].mxu0 }
  0xe5   :  { %v5019_v13 = vpop.f32.mrb[5].mxu0 }
  0xe6   :  { %4633 = vtanh.f32 %v456_v35 }
  0xe8   :  { %v5021_v15 = vpop.f32.mrb[6].mxu0 }
  0xe9   :  { %v5023_v16 = vpop.f32.mrb[7].mxu0 }
  0xec   :  { %v4632_v36 = vpop.eup %4631  ;;  %v5025_v17 = vpop.f32.mrb[8].mxu0 }
  0xed   :  { %462 = vrot.lane.b32.xlu1 %v4632_v36, %s4782_s23 }
  0xf0   :  { %v4634_v37 = vpop.eup %4633 }
  0xf1   :  { %v458_v38 = vmul.f32 0.5, %v4634_v37 }
  0xf3   :  { %v4906_v39 = vadd.f32 0.5, %v458_v38 }
  0xf5   :  { %v466_v40 = vmul.f32 %v4906_v39, %v446_v19  ;;  %v5027_v19 = vpop.f32.mrb[9].mxu0 }
  0xf6   :  { %v5029_v20 = vpop.f32.mrb[10].mxu0 }
  0xf7   :  { %468 = vrot.lane.b32.xlu1 %v466_v40, %s4784_s2  ;;  %v5031_v23 = vpop.f32.mrb[11].mxu0 }
  0xf8   :  { %v5033_v24 = vpop.f32.mrb[12].mxu0 }
  0xf9   :  { %v5035_v25 = vpop.f32.mrb[13].mxu0 }
  0xfa   :  { %v5038_v29 = vpop.f32.mrb[14].mxu0 }
  0xfb   :  { %v5040_v30 = vpop.f32.mrb[15].mxu0 }
  0xfc   :  { %v3915_v33 = vpop.f32.mrb[16].mxu0 }
  0xfd   :  { %v5047_v34 = vadd.f32 %v3915_v33, %v5043_v31  ;;  %v5049_v35 = vpop.f32.mrb[17].mxu0 }
 0x100   :  { %v3918_v36 = vpop.f32.mrb[18].mxu0 }
 0x101   :  { %v5052_v37 = vadd.f32 %v3918_v36, %v5043_v31  ;;  %v281_v38 = vpop.f32.mrb[19].mxu0 }
 0x102   :  { %v5055_v40 = vadd.f32 %v281_v38, %v5043_v31 }
 0x15f   :  { %v463_v41 = vpop.permute.xlu1 %462 }
 0x160   :  { %v465_v42 = vmul.f32 %v463_v41, %v4906_v39  ;;  %v3921_v41 = vpop.f32.mrb[20].mxu0 }
 0x169   :  { %v469_v43 = vpop.permute.xlu1 %468 }
 0x16a   :  { %v471_v44 = vadd.f32 %v469_v43, %v465_v42  ;;  %v5062_v42 = vadd.f32 %v3921_v41, %v5043_v31  ;;  %v291_v43 = vpop.f32.mrb[21].mxu0  ;;  %v3600_v41 = vld [vmem:[%s5889_s4 + $0x40] sm:$0xff] }
 0x16b   :  { %v3924_v45 = vpop.f32.mrb[22].mxu0 }
 0x16c   :  { %4635 = vtanh.f32 %v471_v44  ;;  %483 = vst.msk [vmem:[#allocation5] sm:$0xff] %vm369_vm3, %v471_v44  ;;  %v5066_v44 = vadd.f32 %v291_v43, %v5043_v31  ;;  %v5070_v46 = vadd.f32 %v3924_v45, %v5043_v31  ;;  %v301_v47 = vpop.f32.mrb[23].mxu0  ;;  %v3602_v43 = vld [vmem:[%s5889_s4 + $0x50] sm:$0xff] }
 0x16d   :  { %v5074_v48 = vadd.f32 %v301_v47, %v5043_v31  ;;  %v3603_v47 = vld [vmem:[%s5889_s4 + $0x58] sm:$0xff] }
 0x16e   :  { %v5111_v49 = vpack.c.bf16 %v3603_v47, %v3602_v43 }
 0x173   :  { %v4934_v52 = vld [vmem:[#allocation5] sm:$0xff] }
 0x176   :  { %v4636_v50 = vpop.eup %4635 }
 0x177   :  { %474 = vrot.lane.b32.xlu0 %v4636_v50, %s4783_s24 }
 0x17b   :  { %569 = vrot.lane.b32.xlu0 %v4934_v52, %s4784_s2 }
 0x1e9   :  { %v475_v7 = vpop.permute.xlu0 %474 }
 0x1ea   :  { %v477_v8 = vmul.f32 %v475_v7, %v4906_v39 }
 0x1ec   :  { %479 = vrot.lane.b32.xlu1 %v477_v8, %s4783_s24 }
 0x1ed   :  { %v570_v50 = vpop.permute.xlu0 %569 }
 0x1ee   :  { %v575_v54 = vsel %vm369_vm3, %v570_v50, %v4934_v52  ;;  %v3604_v50 = vld [vmem:[%s5889_s4 + $0x60] sm:$0xff] }
 0x1f0   :  { %572 = vrot.lane.b32.xlu1 %v4934_v52, %s4782_s23 }
 0x25e   :  { %v480_v32 = vpop.permute.xlu1 %479 }
 0x25f   :  { %482 = vst.msk [vmem:[#allocation4] sm:$0xff] %vm369_vm3, %v480_v32 }
 0x262   :  { %v573_v53 = vpop.permute.xlu1 %572 }
 0x263   :  { %v576_v56 = vsel %vm452_vm4, %v575_v54, %v573_v53  ;;  %v3605_v53 = vld [vmem:[%s5889_s4 + $0x68] sm:$0xff] }
 0x264   :  { %v577_v18 = vmul.f32 %v5085_v55, %v576_v56  ;;  %v5122_v54 = vpack.c.bf16 %v3605_v53, %v3604_v50  ;;  %v3606_v56 = vld [vmem:[%s5889_s4 + $0x70] sm:$0xff] }
 0x266   :  { %v485_v39 = vld [vmem:[#allocation4] sm:$0xff] }
 0x267   :  { %3953 = vmatmul.mubr.msk.f32.vlgmr.msra.gmra.mrb[24].mxu0 %vm452_vm4, %v485_v39 }
 0x268   :  { %4393 = vmatpush3.bf16.msra.mxu0 %v4856_v9  ;;  %3982 = vmatprep.mubr.msk.f32.mxu0 %vm4781_vm1, %v4780_v4 }
 0x269   :  { %4394 = vmatprep.subr.bf16.mxu0 %v4779_v0 }
 0x26c   :  { %4396 = vmatpush3.bf16.msra.mxu0 %v4870_v14 }
 0x26d   :  { %4409 = vmatprep.subr.bf16.mxu0 %v4779_v0 }
 0x33a   :  { %v563_v58 = vpop.f32.mrb[24].mxu0 }
 0x33b   :  { %v567_v60 = vadd.f32 %v563_v58, %v161_v57  ;;  %v3954_v21 = vpop.f32.mrb[25].mxu0  ;;  %v3607_v57 = vld [vmem:[%s5889_s4 + $0x78] sm:$0xff] }
 0x33c   :  { %v5132_v58 = vpack.c.bf16 %v3607_v57, %v3606_v56 }
 0x33d   :  { %v578_v61 = vadd.f32 %v577_v18, %v567_v60  ;;  %4637 = vtanh.f32 %v567_v60 }
 0x33f   :  { %v579_v63 = vmul.f32 0.5, %v578_v61 }
 0x341   :  { %4639 = vtanh.f32 %v579_v63 }
 0x347   :  { %v4638_v1 = vpop.eup %4637 }
 0x348   :  { %585 = vrot.lane.b32.xlu0 %v4638_v1, %s4782_s23 }
 0x34b   :  { %v4640_v3 = vpop.eup %4639 }
 0x34c   :  { %v581_v5 = vmul.f32 0.5, %v4640_v3 }
 0x34e   :  { %v582_v7 = vadd.f32 0.5, %v581_v5 }
 0x350   :  { %v589_v8 = vmul.f32 %v582_v7, %v4934_v52  ;;  %v3601_v52 = vld [vmem:[%s5889_s4 + $0x48] sm:$0xff] }
 0x351   :  { %v5105_v45 = vpack.c.bf16 %v3601_v52, %v3600_v41 }
 0x352   :  { %591 = vrot.lane.b32.xlu1 %v589_v8, %s4784_s2  ;;  %v5158_v8 = vld [vmem:[%s5888_s5 + $0x2] ss:$0 sm:$0xff] }
 0x353   :  { %4381 = vmatpush3.bf16.msra.mxu1 %v5105_v45 }
 0x354   :  { %4382 = vmatprep.subr.bf16.mxu1 %v4779_v0 }
 0x357   :  { %4384 = vmatpush3.bf16.msra.mxu1 %v5111_v49 }
 0x358   :  { %4385 = vmatprep.subr.bf16.mxu1 %v4779_v0 }
 0x35b   :  { %4387 = vmatpush3.bf16.msra.mxu1 %v5122_v54 }
 0x35c   :  { %4388 = vmatprep.subr.bf16.mxu1 %v4779_v0 }
 0x35f   :  { %4390 = vmatpush3.bf16.msra.mxu1 %v5132_v58 }
 0x360   :  { %4397 = vmatprep.subr.bf16.mxu1 %v4779_v0 }
 0x3ba   :  { %v586_v27 = vpop.permute.xlu0 %585 }
 0x3bb   :  { %v588_v26 = vmul.f32 %v586_v27, %v582_v7  ;;  %v272_v27 = vadd.f32 %v5049_v35, %v5043_v31 }
 0x3c4   :  { %v592_v32 = vpop.permute.xlu1 %591 }
 0x3c5   :  { %v594_v33 = vadd.f32 %v592_v32, %v588_v26 }
 0x3c7   :  { %4641 = vtanh.f32 %v594_v33 }
 0x3d1   :  { %v4642_v36 = vpop.eup %4641 }
 0x3d2   :  { %597 = vrot.lane.b32.xlu0 %v4642_v36, %s4783_s24 }
 0x444   :  { %v598_v38 = vpop.permute.xlu0 %597 }
 0x445   :  { %v600_v39 = vmul.f32 %v598_v38, %v582_v7 }
 0x447   :  { %602 = vrot.lane.b32.xlu1 %v600_v39, %s4784_s2 }
 0x44b   :  { %608 = vrot.lane.b32.xlu1 %v594_v33, %s4782_s23 }
 0x4b9   :  { %v603_v18 = vpop.permute.xlu1 %602 }
 0x4ba   :  { %606 = vst.msk [vmem:[#allocation4] sm:$0xff] %vm605_vm5, %v603_v18 }
 0x4bd   :  { %v609_v60 = vpop.permute.xlu1 %608 }
 0x4be   :  { %611 = vst.msk [vmem:[#allocation5] sm:$0xff] %vm605_vm5, %v609_v60 }
 0x4c1   :  { %v613_v21 = vld [vmem:[#allocation4] sm:$0xff] }
 0x4c2   :  { %624 = vrot.lane.b32.xlu0 %v613_v21, %s4784_s2 }
 0x4c5   :  { %v612_v61 = vld [vmem:[#allocation5] sm:$0xff] }
 0x4c6   :  { %703 = vrot.lane.b32.xlu1 %v612_v61, %s4784_s2  ;;  %700 = vrot.lane.b32.xlu0 %v612_v61, %s4783_s24 }
 0x534   :  { %v625_v63 = vpop.permute.xlu0 %624 }
 0x535   :  { %3972 = vmatmul.mubr.msk.f32.vlgmr.msra.gmra.mrb[2].mxu1 %vm452_vm4, %v625_v63 }
 0x536   :  { %4399 = vmatpush3.bf16.msra.mxu1 %v4966_v59  ;;  %4001 = vmatprep.mubr.msk.f32.mxu1 %vm4781_vm1, %v4780_v4 }
 0x537   :  { %4400 = vmatprep.subr.bf16.mxu1 %v4779_v0 }
 0x538   :  { %v704_v1 = vpop.permute.xlu1 %703  ;;  %v701_v3 = vpop.permute.xlu0 %700 }
 0x539   :  { %v706_v5 = vsel %vm369_vm3, %v701_v3, %v704_v1 }
 0x53a   :  { %4402 = vmatpush3.bf16.msra.mxu1 %v4977_v62  ;;  %v707_v7 = vsel %vm452_vm4, %v706_v5, %v612_v61 }
 0x53b   :  { %4403 = vmatprep.subr.bf16.mxu1 %v4779_v0  ;;  %v708_v33 = vmul.f32 %v5158_v8, %v707_v7 }
 0x53e   :  { %4405 = vmatpush3.bf16.msra.mxu1 %v4995_v2 }
 0x53f   :  { %4406 = vmatprep.subr.bf16.mxu1 %v4779_v0 }
 0x542   :  { %4408 = vmatpush3.bf16.msra.mxu1 %v5005_v6 }
 0x543   :  { %4421 = vmatprep.subr.bf16.mxu1 %v4779_v0 }
 0x608   :  { %v694_v26 = vpop.f32.mrb[2].mxu1 }
 0x609   :  { %v698_v32 = vadd.f32 %v694_v26, %v272_v27  ;;  %v3973_v36 = vpop.f32.mrb[3].mxu1  ;;  %v165_v27 = vadd.f32 %v5013_v10, %v4892_v22 }
 0x60b   :  { %v709_v38 = vadd.f32 %v708_v33, %v698_v32  ;;  %4643 = vtanh.f32 %v698_v32 }
 0x60d   :  { %v710_v39 = vmul.f32 0.5, %v709_v38 }
 0x60f   :  { %4645 = vtanh.f32 %v710_v39 }
 0x615   :  { %v4644_v41 = vpop.eup %4643 }
 0x616   :  { %716 = vrot.lane.b32.xlu0 %v4644_v41, %s4782_s23 }
 0x619   :  { %v4646_v52 = vpop.eup %4645 }
 0x61a   :  { %v712_v43 = vmul.f32 0.5, %v4646_v52 }
 0x61c   :  { %v713_v47 = vadd.f32 0.5, %v712_v43 }
 0x61e   :  { %v720_v50 = vmul.f32 %v713_v47, %v704_v1 }
 0x620   :  { %722 = vrot.lane.b32.xlu1 %v720_v50, %s4784_s2 }
 0x688   :  { %v717_v53 = vpop.permute.xlu0 %716 }
 0x689   :  { %v719_v31 = vmul.f32 %v717_v53, %v713_v47 }
 0x692   :  { %v723_v35 = vpop.permute.xlu1 %722 }
 0x693   :  { %v725_v56 = vadd.f32 %v723_v35, %v719_v31 }
 0x695   :  { %4647 = vtanh.f32 %v725_v56  ;;  %735 = vrot.lane.b32.xlu1 %v725_v56, %s4783_s24 }
 0x69f   :  { %v4648_v57 = vpop.eup %4647 }
 0x6a0   :  { %728 = vrot.lane.b32.xlu0 %v4648_v57, %s4783_s24 }
 0x707   :  { %v736_v18 = vpop.permute.xlu1 %735 }
 0x708   :  { %738 = vst.msk [vmem:[#allocation5] sm:$0xff] %vm732_vm6, %v736_v18 }
 0x70f   :  { %v748_v60 = vld [vmem:[#allocation5] sm:$0xff] }
 0x710   :  { %832 = vrot.lane.b32.xlu1 %v748_v60, %s4783_s24  ;;  %829 = vrot.lane.b32.xlu0 %v748_v60, %s4782_s23 }
 0x712   :  { %v729_v21 = vpop.permute.xlu0 %728 }
 0x713   :  { %v731_v61 = vmul.f32 %v729_v21, %v713_v47 }
 0x715   :  { %733 = vst.msk [vmem:[#allocation4] sm:$0xff] %vm732_vm6, %v731_v61 }
 0x71c   :  { %v749_v63 = vld [vmem:[#allocation4] sm:$0xff] }
 0x71d   :  { %3983 = vmatmul.mubr.msk.f32.vlgmr.msra.gmra.mrb[26].mxu0 %vm369_vm3, %v749_v63  ;;  %741 = vst.msk [vmem:[#allocation3] sm:$0xff] %vm33_vm0, %v749_v63 }
 0x71e   :  { %4411 = vmatpush3.bf16.msra.mxu0 %v5105_v45  ;;  %4020 = vmatprep.mubr.msk.f32.mxu0 %vm4781_vm1, %v4780_v4 }
 0x71f   :  { %4412 = vmatprep.subr.bf16.mxu0 %v4779_v0 }
 0x722   :  { %4414 = vmatpush3.bf16.msra.mxu0 %v5111_v49 }
 0x723   :  { %4415 = vmatprep.subr.bf16.mxu0 %v4779_v0 }
 0x726   :  { %4417 = vmatpush3.bf16.msra.mxu0 %v5122_v54 }
 0x727   :  { %4418 = vmatprep.subr.bf16.mxu0 %v4779_v0 }
 0x72a   :  { %4420 = vmatpush3.bf16.msra.mxu0 %v5132_v58 }
 0x72b   :  { %4427 = vmatprep.subr.bf16.mxu0 %v4779_v0 }
 0x782   :  { %v830_v1 = vpop.permute.xlu0 %829  ;;  %v833_v3 = vpop.permute.xlu1 %832 }
 0x783   :  { %v835_v5 = vsel %vm369_vm3, %v748_v60, %v830_v1 }
 0x784   :  { %v836_v7 = vsel %vm452_vm4, %v835_v5, %v833_v3 }
 0x785   :  { %v837_v33 = vmul.f32 %v4901_v28, %v836_v7  ;;  %v167_v7 = vadd.f32 %v5015_v11, %v5078_v51 }
 0x7f0   :  { %v823_v26 = vpop.f32.mrb[26].mxu0 }
 0x7f1   :  { %v827_v32 = vadd.f32 %v823_v26, %v165_v27  ;;  %v3984_v36 = vpop.f32.mrb[27].mxu0 }
 0x7f3   :  { %v838_v38 = vadd.f32 %v837_v33, %v827_v32  ;;  %4649 = vtanh.f32 %v827_v32 }
 0x7f5   :  { %v839_v39 = vmul.f32 0.5, %v838_v38 }
 0x7f7   :  { %4651 = vtanh.f32 %v839_v39 }
 0x7fd   :  { %v4650_v41 = vpop.eup %4649 }
 0x7fe   :  { %845 = vrot.lane.b32.xlu0 %v4650_v41, %s4782_s23 }
 0x801   :  { %v4652_v52 = vpop.eup %4651 }
 0x802   :  { %v841_v43 = vmul.f32 0.5, %v4652_v52 }
 0x804   :  { %v842_v47 = vadd.f32 0.5, %v841_v43 }
 0x806   :  { %v849_v50 = vmul.f32 %v842_v47, %v830_v1 }
 0x808   :  { %851 = vrot.lane.b32.xlu1 %v849_v50, %s4784_s2 }
 0x870   :  { %v846_v53 = vpop.permute.xlu0 %845 }
 0x871   :  { %v848_v10 = vmul.f32 %v846_v53, %v842_v47 }
 0x87a   :  { %v852_v31 = vpop.permute.xlu1 %851 }
 0x87b   :  { %v854_v35 = vadd.f32 %v852_v31, %v848_v10 }
 0x87d   :  { %4653 = vtanh.f32 %v854_v35  ;;  %866 = vst.msk [vmem:[#allocation5] sm:$0xff] %vm369_vm3, %v854_v35 }
 0x884   :  { %v867_v57 = vld [vmem:[#allocation5] sm:$0xff] }
 0x887   :  { %v4654_v56 = vpop.eup %4653 }
 0x888   :  { %857 = vrot.lane.b32.xlu0 %v4654_v56, %s4783_s24 }
 0x88c   :  { %952 = vrot.lane.b32.xlu0 %v867_v57, %s4784_s2 }
 0x8fa   :  { %v858_v18 = vpop.permute.xlu0 %857 }
 0x8fb   :  { %v860_v60 = vmul.f32 %v858_v18, %v842_v47 }
 0x8fd   :  { %862 = vrot.lane.b32.xlu1 %v860_v60, %s4783_s24 }
 0x8fe   :  { %v953_v63 = vpop.permute.xlu0 %952 }
 0x8ff   :  { %v958_v3 = vsel %vm369_vm3, %v953_v63, %v867_v57 }
 0x901   :  { %955 = vrot.lane.b32.xlu1 %v867_v57, %s4782_s23 }
 0x96f   :  { %v863_v21 = vpop.permute.xlu1 %862 }
 0x970   :  { %865 = vst.msk [vmem:[#allocation4] sm:$0xff] %vm369_vm3, %v863_v21 }
 0x973   :  { %v956_v1 = vpop.permute.xlu1 %955 }
 0x974   :  { %v959_v5 = vsel %vm452_vm4, %v958_v3, %v956_v1 }
 0x977   :  { %v868_v61 = vld [vmem:[#allocation4] sm:$0xff] }
 0x978   :  { %4002 = vmatmul.mubr.msk.f32.vlgmr.msra.gmra.mrb[4].mxu1 %vm452_vm4, %v868_v61 }
 0x979   :  { %4423 = vmatpush3.bf16.msra.mxu1 %v4856_v9  ;;  %4031 = vmatprep.mubr.msk.f32.mxu1 %vm4781_vm1, %v4780_v4  ;;  %v960_v9 = vmul.f32 %v5085_v55, %v959_v5 }
 0x97a   :  { %4424 = vmatprep.subr.bf16.mxu1 %v4779_v0 }
 0x97d   :  { %4426 = vmatpush3.bf16.msra.mxu1 %v4870_v14 }
 0x97e   :  { %4439 = vmatprep.subr.bf16.mxu1 %v4779_v0 }
 0xa4b   :  { %v946_v27 = vpop.f32.mrb[4].mxu1 }
 0xa4c   :  { %v950_v26 = vadd.f32 %v946_v27, %v167_v7  ;;  %v4003_v32 = vpop.f32.mrb[5].mxu1 }
 0xa4e   :  { %v961_v33 = vadd.f32 %v960_v9, %v950_v26  ;;  %4655 = vtanh.f32 %v950_v26 }
 0xa50   :  { %v962_v36 = vmul.f32 0.5, %v961_v33 }
 0xa52   :  { %4657 = vtanh.f32 %v962_v36 }
 0xa58   :  { %v4656_v14 = vpop.eup %4655 }
 0xa59   :  { %968 = vrot.lane.b32.xlu0 %v4656_v14, %s4782_s23 }
 0xa5c   :  { %v4658_v38 = vpop.eup %4657 }
 0xa5d   :  { %v964_v39 = vmul.f32 0.5, %v4658_v38 }
 0xa5f   :  { %v965_v41 = vadd.f32 0.5, %v964_v39 }
 0xa61   :  { %v972_v52 = vmul.f32 %v965_v41, %v867_v57 }
 0xa63   :  { %974 = vrot.lane.b32.xlu1 %v972_v52, %s4784_s2 }
 0xacb   :  { %v969_v43 = vpop.permute.xlu0 %968 }
 0xacc   :  { %v971_v11 = vmul.f32 %v969_v43, %v965_v41 }
 0xad5   :  { %v975_v47 = vpop.permute.xlu1 %974 }
 0xad6   :  { %v977_v50 = vadd.f32 %v975_v47, %v971_v11 }
 0xad8   :  { %4659 = vtanh.f32 %v977_v50 }
 0xae2   :  { %v4660_v53 = vpop.eup %4659 }
 0xae3   :  { %980 = vrot.lane.b32.xlu0 %v4660_v53, %s4783_s24 }
 0xb55   :  { %v981_v10 = vpop.permute.xlu0 %980 }
 0xb56   :  { %v983_v31 = vmul.f32 %v981_v10, %v965_v41 }
 0xb58   :  { %985 = vrot.lane.b32.xlu1 %v983_v31, %s4784_s2  ;;  %v171_v31 = vadd.f32 %v5017_v12, %v4892_v22 }
 0xb5c   :  { %990 = vrot.lane.b32.xlu1 %v977_v50, %s4782_s23 }
 0xbca   :  { %v986_v35 = vpop.permute.xlu1 %985 }
 0xbcb   :  { %988 = vst.msk [vmem:[#allocation4] sm:$0xff] %vm605_vm5, %v986_v35 }
 0xbce   :  { %v991_v56 = vpop.permute.xlu1 %990 }
 0xbcf   :  { %993 = vst.msk [vmem:[#allocation5] sm:$0xff] %vm605_vm5, %v991_v56 }
 0xbd2   :  { %v995_v57 = vld [vmem:[#allocation4] sm:$0xff] }
 0xbd3   :  { %1005 = vrot.lane.b32.xlu0 %v995_v57, %s4784_s2 }
 0xbd6   :  { %v994_v18 = vld [vmem:[#allocation5] sm:$0xff] }
 0xbd7   :  { %1084 = vrot.lane.b32.xlu1 %v994_v18, %s4784_s2  ;;  %1081 = vrot.lane.b32.xlu0 %v994_v18, %s4783_s24 }
 0xc45   :  { %v1006_v60 = vpop.permute.xlu0 %1005 }
 0xc46   :  { %4021 = vmatmul.mubr.msk.f32.vlgmr.msra.gmra.mrb[28].mxu0 %vm452_vm4, %v1006_v60 }
 0xc47   :  { %4429 = vmatpush3.bf16.msra.mxu0 %v4966_v59  ;;  %4050 = vmatprep.mubr.msk.f32.mxu0 %vm4781_vm1, %v4780_v4 }
 0xc48   :  { %4430 = vmatprep.subr.bf16.mxu0 %v4779_v0 }
 0xc49   :  { %v1085_v21 = vpop.permute.xlu1 %1084  ;;  %v1082_v61 = vpop.permute.xlu0 %1081 }
 0xc4a   :  { %v1087_v59 = vsel %vm369_vm3, %v1082_v61, %v1085_v21 }
 0xc4b   :  { %4432 = vmatpush3.bf16.msra.mxu0 %v4977_v62  ;;  %v1088_v63 = vsel %vm452_vm4, %v1087_v59, %v994_v18 }
 0xc4c   :  { %4433 = vmatprep.subr.bf16.mxu0 %v4779_v0  ;;  %v1089_v62 = vmul.f32 %v5158_v8, %v1088_v63 }
 0xc4f   :  { %4435 = vmatpush3.bf16.msra.mxu0 %v4995_v2 }
 0xc50   :  { %4436 = vmatprep.subr.bf16.mxu0 %v4779_v0 }
 0xc53   :  { %4438 = vmatpush3.bf16.msra.mxu0 %v5005_v6 }
 0xc54   :  { %4451 = vmatprep.subr.bf16.mxu0 %v4779_v0 }
 0xd19   :  { %v1075_v1 = vpop.f32.mrb[28].mxu0 }
 0xd1a   :  { %v1079_v3 = vadd.f32 %v1075_v1, %v5047_v34  ;;  %v4022_v5 = vpop.f32.mrb[29].mxu0 }
 0xd1c   :  { %v1090_v7 = vadd.f32 %v1089_v62, %v1079_v3  ;;  %4661 = vtanh.f32 %v1079_v3 }
 0xd1e   :  { %v1091_v2 = vmul.f32 0.5, %v1090_v7 }
 0xd20   :  { %4663 = vtanh.f32 %v1091_v2 }
 0xd26   :  { %v4662_v27 = vpop.eup %4661 }
 0xd27   :  { %1097 = vrot.lane.b32.xlu0 %v4662_v27, %s4782_s23 }
 0xd2a   :  { %v4664_v6 = vpop.eup %4663 }
 0xd2b   :  { %v1093_v9 = vmul.f32 0.5, %v4664_v6 }
 0xd2d   :  { %v1094_v26 = vadd.f32 0.5, %v1093_v9 }
 0xd2f   :  { %v1101_v32 = vmul.f32 %v1094_v26, %v1085_v21 }
 0xd31   :  { %1103 = vrot.lane.b32.xlu1 %v1101_v32, %s4784_s2 }
 0xd99   :  { %v1098_v33 = vpop.permute.xlu0 %1097 }
 0xd9a   :  { %v1100_v36 = vmul.f32 %v1098_v33, %v1094_v26 }
 0xda3   :  { %v1104_v14 = vpop.permute.xlu1 %1103 }
 0xda4   :  { %v1106_v34 = vadd.f32 %v1104_v14, %v1100_v36 }
 0xda6   :  { %4665 = vtanh.f32 %v1106_v34  ;;  %1115 = vrot.lane.b32.xlu1 %v1106_v34, %s4783_s24  ;;  %v173_v34 = vadd.f32 %v5019_v13, %v5078_v51 }
 0xdb0   :  { %v4666_v38 = vpop.eup %4665 }
 0xdb1   :  { %1109 = vrot.lane.b32.xlu0 %v4666_v38, %s4783_s24 }
 0xe18   :  { %v1116_v39 = vpop.permute.xlu1 %1115 }
 0xe19   :  { %1118 = vst.msk [vmem:[#allocation5] sm:$0xff] %vm732_vm6, %v1116_v39 }
 0xe20   :  { %v1128_v41 = vld [vmem:[#allocation5] sm:$0xff] }
 0xe21   :  { %1212 = vrot.lane.b32.xlu1 %v1128_v41, %s4783_s24  ;;  %1209 = vrot.lane.b32.xlu0 %v1128_v41, %s4782_s23 }
 0xe23   :  { %v1110_v52 = vpop.permute.xlu0 %1109 }
 0xe24   :  { %v1112_v43 = vmul.f32 %v1110_v52, %v1094_v26 }
 0xe26   :  { %1113 = vst.msk [vmem:[#allocation4] sm:$0xff] %vm732_vm6, %v1112_v43 }
 0xe2d   :  { %v1129_v11 = vld [vmem:[#allocation4] sm:$0xff] }
 0xe2e   :  { %4032 = vmatmul.mubr.msk.f32.vlgmr.msra.gmra.mrb[6].mxu1 %vm369_vm3, %v1129_v11  ;;  %1121 = vst.msk [vmem:[#allocation3 + $0x8] sm:$0xff] %vm33_vm0, %v1129_v11 }
 0xe2f   :  { %4441 = vmatpush3.bf16.msra.mxu1 %v5105_v45  ;;  %4069 = vmatprep.mubr.msk.f32.mxu1 %vm4781_vm1, %v4780_v4 }
 0xe30   :  { %4442 = vmatprep.subr.bf16.mxu1 %v4779_v0 }
 0xe33   :  { %4444 = vmatpush3.bf16.msra.mxu1 %v5111_v49 }
 0xe34   :  { %4445 = vmatprep.subr.bf16.mxu1 %v4779_v0 }
 0xe37   :  { %4447 = vmatpush3.bf16.msra.mxu1 %v5122_v54 }
 0xe38   :  { %4448 = vmatprep.subr.bf16.mxu1 %v4779_v0 }
 0xe3b   :  { %4450 = vmatpush3.bf16.msra.mxu1 %v5132_v58 }
 0xe3c   :  { %4457 = vmatprep.subr.bf16.mxu1 %v4779_v0 }
 0xe93   :  { %v1210_v47 = vpop.permute.xlu0 %1209  ;;  %v1213_v50 = vpop.permute.xlu1 %1212 }
 0xe94   :  { %v1215_v53 = vsel %vm369_vm3, %v1128_v41, %v1210_v47 }
 0xe95   :  { %v1216_v10 = vsel %vm452_vm4, %v1215_v53, %v1213_v50 }
 0xe96   :  { %v1217_v57 = vmul.f32 %v4901_v28, %v1216_v10 }
 0xf01   :  { %v1203_v35 = vpop.f32.mrb[6].mxu1 }
 0xf02   :  { %v1207_v56 = vadd.f32 %v1203_v35, %v171_v31  ;;  %v4033_v18 = vpop.f32.mrb[7].mxu1 }
 0xf04   :  { %v1218_v60 = vadd.f32 %v1217_v57, %v1207_v56  ;;  %4667 = vtanh.f32 %v1207_v56 }
 0xf06   :  { %v1219_v21 = vmul.f32 0.5, %v1218_v60 }
 0xf08   :  { %4669 = vtanh.f32 %v1219_v21 }
 0xf0e   :  { %v4668_v61 = vpop.eup %4667 }
 0xf0f   :  { %1225 = vrot.lane.b32.xlu0 %v4668_v61, %s4782_s23 }
 0xf12   :  { %v4670_v59 = vpop.eup %4669 }
 0xf13   :  { %v1221_v63 = vmul.f32 0.5, %v4670_v59 }
 0xf15   :  { %v1222_v1 = vadd.f32 0.5, %v1221_v63 }
 0xf17   :  { %v1229_v3 = vmul.f32 %v1222_v1, %v1210_v47 }
 0xf19   :  { %1231 = vrot.lane.b32.xlu1 %v1229_v3, %s4784_s2 }
 0xf81   :  { %v1226_v62 = vpop.permute.xlu0 %1225 }
 0xf82   :  { %v1228_v12 = vmul.f32 %v1226_v62, %v1222_v1 }
 0xf8b   :  { %v1232_v5 = vpop.permute.xlu1 %1231 }
 0xf8c   :  { %v1234_v7 = vadd.f32 %v1232_v5, %v1228_v12 }
 0xf8e   :  { %4671 = vtanh.f32 %v1234_v7  ;;  %1246 = vst.msk [vmem:[#allocation5] sm:$0xff] %vm369_vm3, %v1234_v7 }
 0xf95   :  { %v1247_v2 = vld [vmem:[#allocation5] sm:$0xff] }
 0xf98   :  { %v4672_v28 = vpop.eup %4671 }
 0xf99   :  { %1237 = vrot.lane.b32.xlu0 %v4672_v28, %s4783_s24 }
 0xf9d   :  { %1332 = vrot.lane.b32.xlu0 %v1247_v2, %s4784_s2 }
0x100b   :  { %v1238_v27 = vpop.permute.xlu0 %1237 }
0x100c   :  { %v1240_v6 = vmul.f32 %v1238_v27, %v1222_v1 }
0x100e   :  { %1242 = vrot.lane.b32.xlu1 %v1240_v6, %s4783_s24 }
0x100f   :  { %v1333_v32 = vpop.permute.xlu0 %1332 }
0x1010   :  { %v1338_v36 = vsel %vm369_vm3, %v1333_v32, %v1247_v2 }
0x1012   :  { %1335 = vrot.lane.b32.xlu1 %v1247_v2, %s4782_s23 }
0x1080   :  { %v1243_v9 = vpop.permute.xlu1 %1242 }
0x1081   :  { %1245 = vst.msk [vmem:[#allocation4] sm:$0xff] %vm369_vm3, %v1243_v9 }
0x1084   :  { %v1336_v33 = vpop.permute.xlu1 %1335 }
0x1085   :  { %v1339_v14 = vsel %vm452_vm4, %v1338_v36, %v1336_v33 }
0x1086   :  { %v1340_v39 = vmul.f32 %v5085_v55, %v1339_v14 }
0x1088   :  { %v1248_v26 = vld [vmem:[#allocation4] sm:$0xff] }
0x1089   :  { %4051 = vmatmul.mubr.msk.f32.vlgmr.msra.gmra.mrb[30].mxu0 %vm452_vm4, %v1248_v26 }
0x108a   :  { %4080 = vmatprep.mubr.msk.f32.mxu0 %vm4781_vm1, %v4780_v4 }
0x115c   :  { %v1326_v38 = vpop.f32.mrb[30].mxu0 }
0x115d   :  { %v1330_v41 = vadd.f32 %v1326_v38, %v173_v34  ;;  %v4052_v52 = vpop.f32.mrb[31].mxu0 }
0x115e   :  { %v1510_v52 = vld [vmem:[%s5885_s3] sm:$0xff] }
0x115f   :  { %v1341_v43 = vadd.f32 %v1340_v39, %v1330_v41  ;;  %4673 = vtanh.f32 %v1330_v41 }
0x1161   :  { %v1342_v11 = vmul.f32 0.5, %v1341_v43  ;;  %v1511_v43 = vld [vmem:[%s5885_s3 + $0x8] sm:$0xff] }
0x1163   :  { %4675 = vtanh.f32 %v1342_v11  ;;  %v5299_v11 = vpack.c.bf16 %v1511_v43, %v1510_v52  ;;  %v1635_v52 = vld [vmem:[%s5889_s4 + $0x30] sm:$0xff]  ;;  %v1636_v43 = vld [vmem:[%s5889_s4 + $0x38] sm:$0xff] }
0x1165   :  { %4453 = vmatpush3.bf16.msra.mxu0 %v5299_v11 }
0x1166   :  { %4454 = vmatprep.subr.bf16.mxu0 %v4779_v0 }
0x1169   :  { %v4674_v47 = vpop.eup %4673 }
0x116a   :  { %1348 = vrot.lane.b32.xlu0 %v4674_v47, %s4782_s23  ;;  %v1512_v47 = vld [vmem:[%s5885_s3 + $0x10] sm:$0xff] }
0x116d   :  { %v4676_v50 = vpop.eup %4675 }
0x116e   :  { %v1344_v53 = vmul.f32 0.5, %v4676_v50  ;;  %v1513_v50 = vld [vmem:[%s5885_s3 + $0x18] sm:$0xff] }
0x1170   :  { %v1345_v10 = vadd.f32 0.5, %v1344_v53  ;;  %v5309_v53 = vpack.c.bf16 %v1513_v50, %v1512_v47  ;;  %v5382_v47 = vpack.c.bf16 %v1636_v43, %v1635_v52 }
0x1172   :  { %v1352_v31 = vmul.f32 %v1345_v10, %v1247_v2  ;;  %4456 = vmatpush3.bf16.msra.mxu0 %v5309_v53 }
0x1173   :  { %4469 = vmatprep.subr.bf16.mxu0 %v4779_v0 }
0x1174   :  { %1354 = vrot.lane.b32.xlu1 %v1352_v31, %s4784_s2 }
0x11dc   :  { %v1349_v35 = vpop.permute.xlu0 %1348 }
0x11dd   :  { %v1351_v13 = vmul.f32 %v1349_v35, %v1345_v10 }
0x11e6   :  { %v1355_v56 = vpop.permute.xlu1 %1354 }
0x11e7   :  { %v1357_v57 = vadd.f32 %v1355_v56, %v1351_v13 }
0x11e9   :  { %4677 = vtanh.f32 %v1357_v57 }
0x11f3   :  { %v4678_v18 = vpop.eup %4677 }
0x11f4   :  { %1360 = vrot.lane.b32.xlu0 %v4678_v18, %s4783_s24 }
0x1266   :  { %v1361_v60 = vpop.permute.xlu0 %1360 }
0x1267   :  { %v1363_v21 = vmul.f32 %v1361_v60, %v1345_v10 }
0x1269   :  { %1365 = vrot.lane.b32.xlu1 %v1363_v21, %s4784_s2 }
0x126d   :  { %1370 = vrot.lane.b32.xlu1 %v1357_v57, %s4782_s23 }
0x12db   :  { %v1366_v61 = vpop.permute.xlu1 %1365 }
0x12dc   :  { %1368 = vst.msk [vmem:[#allocation4] sm:$0xff] %vm605_vm5, %v1366_v61  ;;  %v177_v61 = vadd.f32 %v5021_v15, %v4892_v22 }
0x12df   :  { %v1371_v59 = vpop.permute.xlu1 %1370 }
0x12e0   :  { %1373 = vst.msk [vmem:[#allocation5] sm:$0xff] %vm605_vm5, %v1371_v59 }
0x12e3   :  { %v1375_v63 = vld [vmem:[#allocation4] sm:$0xff] }
0x12e4   :  { %1385 = vrot.lane.b32.xlu0 %v1375_v63, %s4784_s2 }
0x12e7   :  { %v1374_v1 = vld [vmem:[#allocation5] sm:$0xff] }
0x12e8   :  { %1464 = vrot.lane.b32.xlu1 %v1374_v1, %s4784_s2  ;;  %1461 = vrot.lane.b32.xlu0 %v1374_v1, %s4783_s24 }
0x1356   :  { %v1386_v3 = vpop.permute.xlu0 %1385 }
0x1357   :  { %4070 = vmatmul.mubr.msk.f32.vlgmr.msra.gmra.mrb[8].mxu1 %vm452_vm4, %v1386_v3 }
0x1358   :  { %4099 = vmatprep.mubr.msk.f32.mxu1 %vm4781_vm1, %v4780_v4 }
0x135a   :  { %v1465_v62 = vpop.permute.xlu1 %1464  ;;  %v1462_v12 = vpop.permute.xlu0 %1461 }
0x135b   :  { %v1467_v5 = vsel %vm369_vm3, %v1462_v12, %v1465_v62 }
0x135c   :  { %v1468_v7 = vsel %vm452_vm4, %v1467_v5, %v1374_v1 }
0x135d   :  { %v1469_v27 = vmul.f32 %v5158_v8, %v1468_v7 }
0x142a   :  { %v1455_v28 = vpop.f32.mrb[8].mxu1 }
0x142b   :  { %v1459_v2 = vadd.f32 %v1455_v28, %v5055_v40  ;;  %v4071_v6 = vpop.f32.mrb[9].mxu1 }
0x142d   :  { %v1470_v9 = vadd.f32 %v1469_v27, %v1459_v2  ;;  %4679 = vtanh.f32 %v1459_v2 }
0x142f   :  { %v1471_v26 = vmul.f32 0.5, %v1470_v9  ;;  %v1629_v9 = vld [vmem:[%s5889_s4] sm:$0xff] }
0x1431   :  { %4681 = vtanh.f32 %v1471_v26  ;;  %v1630_v26 = vld [vmem:[%s5889_s4 + $0x8] sm:$0xff] }
0x1437   :  { %v4680_v32 = vpop.eup %4679 }
0x1438   :  { %1477 = vrot.lane.b32.xlu0 %v4680_v32, %s4782_s23  ;;  %v1631_v32 = vld [vmem:[%s5889_s4 + $0x10] sm:$0xff] }
0x143b   :  { %v4682_v33 = vpop.eup %4681 }
0x143c   :  { %v1473_v36 = vmul.f32 0.5, %v4682_v33  ;;  %v5353_v33 = vpack.c.bf16 %v1630_v26, %v1629_v9 }
0x143e   :  { %v1474_v14 = vadd.f32 0.5, %v1473_v36  ;;  %v1632_v36 = vld [vmem:[%s5889_s4 + $0x18] sm:$0xff]  ;;  %4459 = vmatpush3.bf16.msra.mxu1 %v5353_v33 }
0x143f   :  { %4460 = vmatprep.subr.bf16.mxu1 %v4779_v0 }
0x1440   :  { %v1481_v34 = vmul.f32 %v1474_v14, %v1465_v62 }
0x1442   :  { %1483 = vrot.lane.b32.xlu1 %v1481_v34, %s4784_s2 }
0x14aa   :  { %v1478_v38 = vpop.permute.xlu0 %1477 }
0x14ab   :  { %v1480_v39 = vmul.f32 %v1478_v38, %v1474_v14 }
0x14b4   :  { %v1484_v41 = vpop.permute.xlu1 %1483 }
0x14b5   :  { %v1486_v40 = vadd.f32 %v1484_v41, %v1480_v39  ;;  %v1633_v39 = vld [vmem:[%s5889_s4 + $0x20] sm:$0xff]  ;;  %v1634_v41 = vld [vmem:[%s5889_s4 + $0x28] sm:$0xff] }
0x14b7   :  { %4683 = vtanh.f32 %v1486_v40  ;;  %1495 = vrot.lane.b32.xlu1 %v1486_v40, %s4783_s24  ;;  %v5372_v40 = vpack.c.bf16 %v1634_v41, %v1633_v39 }
0x14c1   :  { %v4684_v10 = vpop.eup %4683 }
0x14c2   :  { %1489 = vrot.lane.b32.xlu0 %v4684_v10, %s4783_s24 }
0x1529   :  { %v1496_v31 = vpop.permute.xlu1 %1495 }
0x152a   :  { %1498 = vst.msk [vmem:[#allocation5] sm:$0xff] %vm732_vm6, %v1496_v31 }
0x1531   :  { %v1508_v35 = vld [vmem:[#allocation5] sm:$0xff] }
0x1532   :  { %1592 = vrot.lane.b32.xlu1 %v1508_v35, %s4783_s24  ;;  %1589 = vrot.lane.b32.xlu0 %v1508_v35, %s4782_s23 }
0x1534   :  { %v1490_v13 = vpop.permute.xlu0 %1489 }
0x1535   :  { %v1492_v56 = vmul.f32 %v1490_v13, %v1474_v14  ;;  %v5359_v14 = vpack.c.bf16 %v1632_v36, %v1631_v32 }
0x1537   :  { %1493 = vst.msk [vmem:[#allocation4] sm:$0xff] %vm732_vm6, %v1492_v56  ;;  %4462 = vmatpush3.bf16.msra.mxu1 %v5359_v14 }
0x1538   :  { %4463 = vmatprep.subr.bf16.mxu1 %v4779_v0 }
0x153b   :  { %4465 = vmatpush3.bf16.msra.mxu1 %v5372_v40 }
0x153c   :  { %4466 = vmatprep.subr.bf16.mxu1 %v4779_v0 }
0x153e   :  { %v1509_v57 = vld [vmem:[#allocation4] sm:$0xff] }
0x153f   :  { %4081 = vmatmul.mubr.msk.f32.vlgmr.msra.gmra.mrb[32].mxu0 %vm369_vm3, %v1509_v57  ;;  %1501 = vst.msk [vmem:[#allocation3 + $0x10] sm:$0xff] %vm33_vm0, %v1509_v57  ;;  %4468 = vmatpush3.bf16.msra.mxu1 %v5382_v47 }
0x1540   :  { %4471 = vmatpush3.bf16.msra.mxu0 %v5105_v45  ;;  %4118 = vmatprep.mubr.msk.f32.mxu0 %vm4781_vm1, %v4780_v4 }
0x1541   :  { %4472 = vmatprep.subr.bf16.mxu0 %v4779_v0  ;;  %4481 = vmatprep.subr.bf16.mxu1 %v4779_v0 }
0x1544   :  { %4474 = vmatpush3.bf16.msra.mxu0 %v5111_v49 }
0x1545   :  { %4475 = vmatprep.subr.bf16.mxu0 %v4779_v0 }
0x1548   :  { %4477 = vmatpush3.bf16.msra.mxu0 %v5122_v54  ;;  %v5338_v54 = vld [vmem:[%s5888_s5] ss:$0 sm:$0xff] }
0x1549   :  { %4478 = vmatprep.subr.bf16.mxu0 %v4779_v0 }
0x154c   :  { %4480 = vmatpush3.bf16.msra.mxu0 %v5132_v58 }
0x154d   :  { %4487 = vmatprep.subr.bf16.mxu0 %v4779_v0 }
0x15a4   :  { %v1590_v18 = vpop.permute.xlu0 %1589  ;;  %v1593_v60 = vpop.permute.xlu1 %1592 }
0x15a5   :  { %v1595_v45 = vsel %vm369_vm3, %v1508_v35, %v1590_v18 }
0x15a6   :  { %v1596_v21 = vsel %vm452_vm4, %v1595_v45, %v1593_v60  ;;  %v179_v60 = vadd.f32 %v5023_v16, %v5078_v51 }
0x15a7   :  { %v1597_v58 = vmul.f32 %v5338_v54, %v1596_v21 }
0x1612   :  { %v1583_v49 = vpop.f32.mrb[32].mxu0 }
0x1613   :  { %v1587_v59 = vadd.f32 %v1583_v49, %v177_v61  ;;  %v4082_v63 = vpop.f32.mrb[33].mxu0 }
0x1615   :  { %v1598_v1 = vadd.f32 %v1597_v58, %v1587_v59  ;;  %4685 = vtanh.f32 %v1587_v59 }
0x1617   :  { %v1599_v3 = vmul.f32 0.5, %v1598_v1 }
0x1619   :  { %4687 = vtanh.f32 %v1599_v3 }
0x161f   :  { %v4686_v62 = vpop.eup %4685 }
0x1620   :  { %1605 = vrot.lane.b32.xlu0 %v4686_v62, %s4782_s23 }
0x1623   :  { %v4688_v12 = vpop.eup %4687 }
0x1624   :  { %v1601_v5 = vmul.f32 0.5, %v4688_v12 }
0x1626   :  { %v1602_v15 = vadd.f32 0.5, %v1601_v5 }
0x1628   :  { %v1609_v7 = vmul.f32 %v1602_v15, %v1590_v18 }
0x162a   :  { %1611 = vrot.lane.b32.xlu1 %v1609_v7, %s4784_s2 }
0x1692   :  { %v1606_v28 = vpop.permute.xlu0 %1605 }
0x1693   :  { %v1608_v2 = vmul.f32 %v1606_v28, %v1602_v15 }
0x169c   :  { %v1612_v27 = vpop.permute.xlu1 %1611 }
0x169d   :  { %v1614_v6 = vadd.f32 %v1612_v27, %v1608_v2 }
0x169f   :  { %4689 = vtanh.f32 %v1614_v6  ;;  %1626 = vst.msk [vmem:[#allocation5] sm:$0xff] %vm369_vm3, %v1614_v6 }
0x16a6   :  { %v1627_v38 = vld [vmem:[#allocation5] sm:$0xff] }
0x16a9   :  { %v4690_v34 = vpop.eup %4689 }
0x16aa   :  { %1617 = vrot.lane.b32.xlu0 %v4690_v34, %s4783_s24 }
0x16ae   :  { %1712 = vrot.lane.b32.xlu0 %v1627_v38, %s4784_s2 }
0x171c   :  { %v1618_v50 = vpop.permute.xlu0 %1617 }
0x171d   :  { %v1620_v10 = vmul.f32 %v1618_v50, %v1602_v15 }
0x171f   :  { %1622 = vrot.lane.b32.xlu1 %v1620_v10, %s4783_s24 }
0x1720   :  { %v1713_v13 = vpop.permute.xlu0 %1712 }
0x1721   :  { %v1718_v57 = vsel %vm369_vm3, %v1713_v13, %v1627_v38 }
0x1723   :  { %1715 = vrot.lane.b32.xlu1 %v1627_v38, %s4782_s23 }
0x1791   :  { %v1623_v31 = vpop.permute.xlu1 %1622 }
0x1792   :  { %1625 = vst.msk [vmem:[#allocation4] sm:$0xff] %vm369_vm3, %v1623_v31 }
0x1795   :  { %v1716_v56 = vpop.permute.xlu1 %1715 }
0x1796   :  { %v1719_v18 = vsel %vm452_vm4, %v1718_v57, %v1716_v56 }
0x1797   :  { %v1720_v21 = vmul.f32 %v5085_v55, %v1719_v18 }
0x1799   :  { %v1628_v35 = vld [vmem:[#allocation4] sm:$0xff] }
0x179a   :  { %4100 = vmatmul.mubr.msk.f32.vlgmr.msra.gmra.mrb[10].mxu1 %vm452_vm4, %v1628_v35 }
0x179b   :  { %4483 = vmatpush3.bf16.msra.mxu1 %v5299_v11  ;;  %4129 = vmatprep.mubr.msk.f32.mxu1 %vm4781_vm1, %v4780_v4 }
0x179c   :  { %4484 = vmatprep.subr.bf16.mxu1 %v4779_v0 }
0x179f   :  { %4486 = vmatpush3.bf16.msra.mxu1 %v5309_v53 }
0x17a0   :  { %4499 = vmatprep.subr.bf16.mxu1 %v4779_v0 }
0x186d   :  { %v1706_v45 = vpop.f32.mrb[10].mxu1 }
0x186e   :  { %v1710_v61 = vadd.f32 %v1706_v45, %v179_v60  ;;  %v4101_v49 = vpop.f32.mrb[11].mxu1 }
0x1870   :  { %v1721_v59 = vadd.f32 %v1720_v21, %v1710_v61  ;;  %4691 = vtanh.f32 %v1710_v61 }
0x1872   :  { %v1722_v58 = vmul.f32 0.5, %v1721_v59 }
0x1874   :  { %4693 = vtanh.f32 %v1722_v58 }
0x187a   :  { %v4692_v63 = vpop.eup %4691 }
0x187b   :  { %1728 = vrot.lane.b32.xlu0 %v4692_v63, %s4782_s23 }
0x187e   :  { %v4694_v1 = vpop.eup %4693 }
0x187f   :  { %v1724_v3 = vmul.f32 0.5, %v4694_v1 }
0x1881   :  { %v1725_v62 = vadd.f32 0.5, %v1724_v3 }
0x1883   :  { %v1732_v12 = vmul.f32 %v1725_v62, %v1627_v38 }
0x1885   :  { %1734 = vrot.lane.b32.xlu1 %v1732_v12, %s4784_s2 }
0x18ed   :  { %v1729_v5 = vpop.permute.xlu0 %1728 }
0x18ee   :  { %v1731_v16 = vmul.f32 %v1729_v5, %v1725_v62  ;;  %v183_v5 = vadd.f32 %v5025_v17, %v4892_v22 }
0x18f7   :  { %v1735_v15 = vpop.permute.xlu1 %1734 }
0x18f8   :  { %v1737_v7 = vadd.f32 %v1735_v15, %v1731_v16 }
0x18fa   :  { %4695 = vtanh.f32 %v1737_v7 }
0x1904   :  { %v4696_v55 = vpop.eup %4695 }
0x1905   :  { %1740 = vrot.lane.b32.xlu0 %v4696_v55, %s4783_s24 }
0x1977   :  { %v1741_v28 = vpop.permute.xlu0 %1740 }
0x1978   :  { %v1743_v2 = vmul.f32 %v1741_v28, %v1725_v62 }
0x197a   :  { %1745 = vrot.lane.b32.xlu1 %v1743_v2, %s4784_s2 }
0x197e   :  { %1750 = vrot.lane.b32.xlu1 %v1737_v7, %s4782_s23 }
0x19ec   :  { %v1746_v27 = vpop.permute.xlu1 %1745 }
0x19ed   :  { %1748 = vst.msk [vmem:[#allocation4] sm:$0xff] %vm605_vm5, %v1746_v27 }
0x19f0   :  { %v1751_v6 = vpop.permute.xlu1 %1750 }
0x19f1   :  { %1753 = vst.msk [vmem:[#allocation5] sm:$0xff] %vm605_vm5, %v1751_v6 }
0x19f4   :  { %v1755_v9 = vld [vmem:[#allocation4] sm:$0xff] }
0x19f5   :  { %1765 = vrot.lane.b32.xlu0 %v1755_v9, %s4784_s2 }
0x19f8   :  { %v1754_v26 = vld [vmem:[#allocation5] sm:$0xff] }
0x19f9   :  { %1844 = vrot.lane.b32.xlu1 %v1754_v26, %s4784_s2  ;;  %1841 = vrot.lane.b32.xlu0 %v1754_v26, %s4783_s24 }
0x1a67   :  { %v1766_v32 = vpop.permute.xlu0 %1765 }
0x1a68   :  { %4119 = vmatmul.mubr.msk.f32.vlgmr.msra.gmra.mrb[34].mxu0 %vm452_vm4, %v1766_v32 }
0x1a69   :  { %4489 = vmatpush3.bf16.msra.mxu0 %v5353_v33  ;;  %4148 = vmatprep.mubr.msk.f32.mxu0 %vm4781_vm1, %v4780_v4 }
0x1a6a   :  { %4490 = vmatprep.subr.bf16.mxu0 %v4779_v0 }
0x1a6b   :  { %v1845_v36 = vpop.permute.xlu1 %1844  ;;  %v1842_v34 = vpop.permute.xlu0 %1841 }
0x1a6c   :  { %v1847_v38 = vsel %vm369_vm3, %v1842_v34, %v1845_v36 }
0x1a6d   :  { %4492 = vmatpush3.bf16.msra.mxu0 %v5359_v14  ;;  %v1848_v39 = vsel %vm452_vm4, %v1847_v38, %v1754_v26 }
0x1a6e   :  { %4493 = vmatprep.subr.bf16.mxu0 %v4779_v0  ;;  %v1849_v43 = vmul.f32 %v5158_v8, %v1848_v39 }
0x1a71   :  { %4495 = vmatpush3.bf16.msra.mxu0 %v5372_v40 }
0x1a72   :  { %4496 = vmatprep.subr.bf16.mxu0 %v4779_v0 }
0x1a75   :  { %4498 = vmatpush3.bf16.msra.mxu0 %v5382_v47 }
0x1a76   :  { %4511 = vmatprep.subr.bf16.mxu0 %v4779_v0 }
0x1b3b   :  { %v1835_v41 = vpop.f32.mrb[34].mxu0 }
0x1b3c   :  { %v1839_v52 = vadd.f32 %v1835_v41, %v5052_v37  ;;  %v4120_v50 = vpop.f32.mrb[35].mxu0 }
0x1b3e   :  { %v1850_v10 = vadd.f32 %v1849_v43, %v1839_v52  ;;  %4697 = vtanh.f32 %v1839_v52 }
0x1b40   :  { %v1851_v31 = vmul.f32 0.5, %v1850_v10 }
0x1b42   :  { %4699 = vtanh.f32 %v1851_v31 }
0x1b48   :  { %v4698_v35 = vpop.eup %4697 }
0x1b49   :  { %1857 = vrot.lane.b32.xlu0 %v4698_v35, %s4782_s23 }
0x1b4c   :  { %v4700_v13 = vpop.eup %4699 }
0x1b4d   :  { %v1853_v56 = vmul.f32 0.5, %v4700_v13 }
0x1b4f   :  { %v1854_v57 = vadd.f32 0.5, %v1853_v56 }
0x1b51   :  { %v1861_v18 = vmul.f32 %v1854_v57, %v1845_v36 }
0x1b53   :  { %1863 = vrot.lane.b32.xlu1 %v1861_v18, %s4784_s2 }
0x1bbb   :  { %v1858_v60 = vpop.permute.xlu0 %1857 }
0x1bbc   :  { %v1860_v45 = vmul.f32 %v1858_v60, %v1854_v57  ;;  %v5465_v60 = vld [vmem:[%s5888_s5 + $0x1] ss:$0 sm:$0xff] }
0x1bc5   :  { %v1864_v21 = vpop.permute.xlu1 %1863 }
0x1bc6   :  { %v1866_v37 = vadd.f32 %v1864_v21, %v1860_v45 }
0x1bc8   :  { %4701 = vtanh.f32 %v1866_v37  ;;  %1875 = vrot.lane.b32.xlu1 %v1866_v37, %s4783_s24 }
0x1bd2   :  { %v4702_v8 = vpop.eup %4701 }
0x1bd3   :  { %1869 = vrot.lane.b32.xlu0 %v4702_v8, %s4783_s24 }
0x1c3a   :  { %v1876_v61 = vpop.permute.xlu1 %1875 }
0x1c3b   :  { %1878 = vst.msk [vmem:[#allocation5] sm:$0xff] %vm732_vm6, %v1876_v61 }
0x1c42   :  { %v1888_v49 = vld [vmem:[#allocation5] sm:$0xff] }
0x1c43   :  { %1972 = vrot.lane.b32.xlu1 %v1888_v49, %s4783_s24  ;;  %1969 = vrot.lane.b32.xlu0 %v1888_v49, %s4782_s23 }
0x1c45   :  { %v1870_v59 = vpop.permute.xlu0 %1869 }
0x1c46   :  { %v1872_v58 = vmul.f32 %v1870_v59, %v1854_v57  ;;  %v185_v57 = vadd.f32 %v5027_v19, %v5078_v51 }
0x1c48   :  { %1873 = vst.msk [vmem:[#allocation4] sm:$0xff] %vm732_vm6, %v1872_v58 }
0x1c4f   :  { %v1889_v63 = vld [vmem:[#allocation4] sm:$0xff] }
0x1c50   :  { %4130 = vmatmul.mubr.msk.f32.vlgmr.msra.gmra.mrb[12].mxu1 %vm369_vm3, %v1889_v63  ;;  %1881 = vst.msk [vmem:[#allocation3 + $0x18] sm:$0xff] %vm33_vm0, %v1889_v63 }
0x1c51   :  { %4167 = vmatprep.mubr.msk.f32.mxu1 %vm4781_vm1, %v4780_v4 }
0x1cb5   :  { %v1970_v1 = vpop.permute.xlu0 %1969  ;;  %v1973_v3 = vpop.permute.xlu1 %1972 }
0x1cb6   :  { %v1975_v62 = vsel %vm369_vm3, %v1888_v49, %v1970_v1 }
0x1cb7   :  { %v1976_v12 = vsel %vm452_vm4, %v1975_v62, %v1973_v3 }
0x1cb8   :  { %v1977_v7 = vmul.f32 %v5338_v54, %v1976_v12 }
0x1d23   :  { %v1963_v16 = vpop.f32.mrb[12].mxu1 }
0x1d24   :  { %v1967_v15 = vadd.f32 %v1963_v16, %v183_v5  ;;  %v4131_v55 = vpop.f32.mrb[13].mxu1 }
0x1d25   :  { %v3645_v55 = vld [vmem:[%s5889_s4 + $0x48] sm:$0xff] }
0x1d26   :  { %v1978_v28 = vadd.f32 %v1977_v7, %v1967_v15  ;;  %4703 = vtanh.f32 %v1967_v15  ;;  %v3644_v7 = vld [vmem:[%s5889_s4 + $0x40] sm:$0xff] }
0x1d28   :  { %v1979_v2 = vmul.f32 0.5, %v1978_v28  ;;  %v3646_v28 = vld [vmem:[%s5889_s4 + $0x50] sm:$0xff] }
0x1d2a   :  { %4705 = vtanh.f32 %v1979_v2  ;;  %v5481_v2 = vpack.c.bf16 %v3645_v55, %v3644_v7 }
0x1d2c   :  { %4501 = vmatpush3.bf16.msra.mxu1 %v5481_v2 }
0x1d2d   :  { %4502 = vmatprep.subr.bf16.mxu1 %v4779_v0 }
0x1d30   :  { %v4704_v27 = vpop.eup %4703 }
0x1d31   :  { %1985 = vrot.lane.b32.xlu0 %v4704_v27, %s4782_s23  ;;  %v3647_v27 = vld [vmem:[%s5889_s4 + $0x58] sm:$0xff] }
0x1d34   :  { %v4706_v6 = vpop.eup %4705 }
0x1d35   :  { %v1981_v9 = vmul.f32 0.5, %v4706_v6  ;;  %v5487_v6 = vpack.c.bf16 %v3647_v27, %v3646_v28 }
0x1d37   :  { %v1982_v26 = vadd.f32 0.5, %v1981_v9  ;;  %v3648_v9 = vld [vmem:[%s5889_s4 + $0x60] sm:$0xff]  ;;  %4504 = vmatpush3.bf16.msra.mxu1 %v5487_v6 }
0x1d38   :  { %4505 = vmatprep.subr.bf16.mxu1 %v4779_v0 }
0x1d39   :  { %v1989_v32 = vmul.f32 %v1982_v26, %v1970_v1 }
0x1d3b   :  { %1991 = vrot.lane.b32.xlu1 %v1989_v32, %s4784_s2 }
0x1da3   :  { %v1986_v36 = vpop.permute.xlu0 %1985 }
0x1da4   :  { %v1988_v17 = vmul.f32 %v1986_v36, %v1982_v26  ;;  %v3650_v36 = vld [vmem:[%s5889_s4 + $0x70] sm:$0xff] }
0x1dad   :  { %v1992_v34 = vpop.permute.xlu1 %1991 }
0x1dae   :  { %v1994_v38 = vadd.f32 %v1992_v34, %v1988_v17  ;;  %v3651_v17 = vld [vmem:[%s5889_s4 + $0x78] sm:$0xff] }
0x1daf   :  { %v5508_v34 = vpack.c.bf16 %v3651_v17, %v3650_v36 }
0x1db0   :  { %4707 = vtanh.f32 %v1994_v38  ;;  %2006 = vst.msk [vmem:[#allocation5] sm:$0xff] %vm369_vm3, %v1994_v38 }
0x1db7   :  { %v2007_v41 = vld [vmem:[#allocation5] sm:$0xff] }
0x1dba   :  { %v4708_v39 = vpop.eup %4707 }
0x1dbb   :  { %1997 = vrot.lane.b32.xlu0 %v4708_v39, %s4783_s24 }
0x1dbf   :  { %2092 = vrot.lane.b32.xlu0 %v2007_v41, %s4784_s2 }
0x1e2d   :  { %v1998_v52 = vpop.permute.xlu0 %1997 }
0x1e2e   :  { %v2000_v43 = vmul.f32 %v1998_v52, %v1982_v26  ;;  %v3649_v26 = vld [vmem:[%s5889_s4 + $0x68] sm:$0xff] }
0x1e2f   :  { %v5498_v32 = vpack.c.bf16 %v3649_v26, %v3648_v9  ;;  %v189_v9 = vadd.f32 %v5029_v20, %v4892_v22 }
0x1e30   :  { %2002 = vrot.lane.b32.xlu1 %v2000_v43, %s4783_s24 }
0x1e31   :  { %v2093_v31 = vpop.permute.xlu0 %2092  ;;  %4507 = vmatpush3.bf16.msra.mxu1 %v5498_v32 }
0x1e32   :  { %v2098_v13 = vsel %vm369_vm3, %v2093_v31, %v2007_v41  ;;  %4508 = vmatprep.subr.bf16.mxu1 %v4779_v0 }
0x1e34   :  { %2095 = vrot.lane.b32.xlu1 %v2007_v41, %s4782_s23 }
0x1e35   :  { %4510 = vmatpush3.bf16.msra.mxu1 %v5508_v34 }
0x1e36   :  { %4517 = vmatprep.subr.bf16.mxu1 %v4779_v0 }
0x1ea2   :  { %v2003_v50 = vpop.permute.xlu1 %2002 }
0x1ea3   :  { %2005 = vst.msk [vmem:[#allocation4] sm:$0xff] %vm369_vm3, %v2003_v50 }
0x1ea6   :  { %v2096_v35 = vpop.permute.xlu1 %2095 }
0x1ea7   :  { %v2099_v56 = vsel %vm452_vm4, %v2098_v13, %v2096_v35 }
0x1ea8   :  { %v2100_v45 = vmul.f32 %v5465_v60, %v2099_v56 }
0x1eaa   :  { %v2008_v10 = vld [vmem:[#allocation4] sm:$0xff] }
0x1eab   :  { %4149 = vmatmul.mubr.msk.f32.vlgmr.msra.gmra.mrb[36].mxu0 %vm452_vm4, %v2008_v10 }
0x1eac   :  { %4513 = vmatpush3.bf16.msra.mxu0 %v5299_v11  ;;  %4178 = vmatprep.mubr.msk.f32.mxu0 %vm4781_vm1, %v4780_v4 }
0x1ead   :  { %4514 = vmatprep.subr.bf16.mxu0 %v4779_v0 }
0x1eb0   :  { %4516 = vmatpush3.bf16.msra.mxu0 %v5309_v53 }
0x1eb1   :  { %4529 = vmatprep.subr.bf16.mxu0 %v4779_v0 }
0x1f7e   :  { %v2086_v18 = vpop.f32.mrb[36].mxu0 }
0x1f7f   :  { %v2090_v21 = vadd.f32 %v2086_v18, %v185_v57  ;;  %v4150_v37 = vpop.f32.mrb[37].mxu0  ;;  %v5535_v57 = vld [vmem:[%s5888_s5 + $0x2] ss:$0 sm:$0xff] }
0x1f81   :  { %v2101_v8 = vadd.f32 %v2100_v45, %v2090_v21  ;;  %4709 = vtanh.f32 %v2090_v21 }
0x1f83   :  { %v2102_v61 = vmul.f32 0.5, %v2101_v8 }
0x1f85   :  { %4711 = vtanh.f32 %v2102_v61 }
0x1f8b   :  { %v4710_v49 = vpop.eup %4709 }
0x1f8c   :  { %2108 = vrot.lane.b32.xlu0 %v4710_v49, %s4782_s23 }
0x1f8f   :  { %v4712_v59 = vpop.eup %4711 }
0x1f90   :  { %v2104_v58 = vmul.f32 0.5, %v4712_v59 }
0x1f92   :  { %v2105_v19 = vadd.f32 0.5, %v2104_v58 }
0x1f94   :  { %v2112_v63 = vmul.f32 %v2105_v19, %v2007_v41 }
0x1f96   :  { %2114 = vrot.lane.b32.xlu1 %v2112_v63, %s4784_s2 }
0x1ffe   :  { %v2109_v1 = vpop.permute.xlu0 %2108 }
0x1fff   :  { %v2111_v3 = vmul.f32 %v2109_v1, %v2105_v19 }
0x2008   :  { %v2115_v62 = vpop.permute.xlu1 %2114 }
0x2009   :  { %v2117_v12 = vadd.f32 %v2115_v62, %v2111_v3 }
0x200b   :  { %4713 = vtanh.f32 %v2117_v12 }
0x2015   :  { %v4714_v5 = vpop.eup %4713 }
0x2016   :  { %2120 = vrot.lane.b32.xlu0 %v4714_v5, %s4783_s24 }
0x2088   :  { %v2121_v16 = vpop.permute.xlu0 %2120 }
0x2089   :  { %v2123_v15 = vmul.f32 %v2121_v16, %v2105_v19 }
0x208b   :  { %2125 = vrot.lane.b32.xlu1 %v2123_v15, %s4784_s2 }
0x208f   :  { %2130 = vrot.lane.b32.xlu1 %v2117_v12, %s4782_s23 }
0x20fd   :  { %v2126_v38 = vpop.permute.xlu1 %2125 }
0x20fe   :  { %2128 = vst.msk [vmem:[#allocation4] sm:$0xff] %vm605_vm5, %v2126_v38 }
0x2101   :  { %v2131_v39 = vpop.permute.xlu1 %2130 }
0x2102   :  { %2133 = vst.msk [vmem:[#allocation5] sm:$0xff] %vm605_vm5, %v2131_v39 }
0x2105   :  { %v2135_v41 = vld [vmem:[#allocation4] sm:$0xff] }
0x2106   :  { %2145 = vrot.lane.b32.xlu0 %v2135_v41, %s4784_s2 }
0x2109   :  { %v2134_v52 = vld [vmem:[#allocation5] sm:$0xff] }
0x210a   :  { %2224 = vrot.lane.b32.xlu1 %v2134_v52, %s4784_s2  ;;  %2221 = vrot.lane.b32.xlu0 %v2134_v52, %s4783_s24 }
0x2178   :  { %v2146_v43 = vpop.permute.xlu0 %2145 }
0x2179   :  { %4168 = vmatmul.mubr.msk.f32.vlgmr.msra.gmra.mrb[14].mxu1 %vm452_vm4, %v2146_v43 }
0x217a   :  { %4519 = vmatpush3.bf16.msra.mxu1 %v5353_v33  ;;  %4197 = vmatprep.mubr.msk.f32.mxu1 %vm4781_vm1, %v4780_v4 }
0x217b   :  { %4520 = vmatprep.subr.bf16.mxu1 %v4779_v0 }
0x217c   :  { %v2225_v50 = vpop.permute.xlu1 %2224  ;;  %v2222_v10 = vpop.permute.xlu0 %2221 }
0x217d   :  { %v2227_v31 = vsel %vm369_vm3, %v2222_v10, %v2225_v50 }
0x217e   :  { %4522 = vmatpush3.bf16.msra.mxu1 %v5359_v14  ;;  %v2228_v35 = vsel %vm452_vm4, %v2227_v31, %v2134_v52 }
0x217f   :  { %4523 = vmatprep.subr.bf16.mxu1 %v4779_v0  ;;  %v2229_v18 = vmul.f32 %v5535_v57, %v2228_v35 }
0x2182   :  { %4525 = vmatpush3.bf16.msra.mxu1 %v5372_v40 }
0x2183   :  { %4526 = vmatprep.subr.bf16.mxu1 %v4779_v0 }
0x2186   :  { %4528 = vmatpush3.bf16.msra.mxu1 %v5382_v47 }
0x2187   :  { %4541 = vmatprep.subr.bf16.mxu1 %v4779_v0 }
0x224c   :  { %v2215_v13 = vpop.f32.mrb[14].mxu1 }
0x224d   :  { %v2219_v56 = vadd.f32 %v2215_v13, %v5066_v44  ;;  %v4169_v45 = vpop.f32.mrb[15].mxu1 }
0x224f   :  { %v2230_v21 = vadd.f32 %v2229_v18, %v2219_v56  ;;  %4715 = vtanh.f32 %v2219_v56 }
0x2251   :  { %v2231_v37 = vmul.f32 0.5, %v2230_v21 }
0x2253   :  { %4717 = vtanh.f32 %v2231_v37 }
0x2259   :  { %v4716_v8 = vpop.eup %4715 }
0x225a   :  { %2237 = vrot.lane.b32.xlu0 %v4716_v8, %s4782_s23 }
0x225d   :  { %v4718_v61 = vpop.eup %4717 }
0x225e   :  { %v2233_v49 = vmul.f32 0.5, %v4718_v61 }
0x2260   :  { %v2234_v59 = vadd.f32 0.5, %v2233_v49 }
0x2262   :  { %v2241_v58 = vmul.f32 %v2234_v59, %v2225_v50 }
0x2264   :  { %2243 = vrot.lane.b32.xlu1 %v2241_v58, %s4784_s2 }
0x22cc   :  { %v2238_v44 = vpop.permute.xlu0 %2237 }
0x22cd   :  { %v2240_v19 = vmul.f32 %v2238_v44, %v2234_v59 }
0x22d6   :  { %v2244_v63 = vpop.permute.xlu1 %2243 }
0x22d7   :  { %v2246_v1 = vadd.f32 %v2244_v63, %v2240_v19  ;;  %v191_v19 = vadd.f32 %v5031_v23, %v5078_v51 }
0x22d9   :  { %4719 = vtanh.f32 %v2246_v1  ;;  %2255 = vrot.lane.b32.xlu1 %v2246_v1, %s4783_s24 }
0x22e3   :  { %v4720_v3 = vpop.eup %4719 }
0x22e4   :  { %2249 = vrot.lane.b32.xlu0 %v4720_v3, %s4783_s24 }
0x234b   :  { %v2256_v62 = vpop.permute.xlu1 %2255 }
0x234c   :  { %2258 = vst.msk [vmem:[#allocation5] sm:$0xff] %vm732_vm6, %v2256_v62 }
0x2353   :  { %v2268_v12 = vld [vmem:[#allocation5] sm:$0xff] }
0x2354   :  { %2352 = vrot.lane.b32.xlu1 %v2268_v12, %s4783_s24  ;;  %2349 = vrot.lane.b32.xlu0 %v2268_v12, %s4782_s23 }
0x2356   :  { %v2250_v5 = vpop.permute.xlu0 %2249 }
0x2357   :  { %v2252_v16 = vmul.f32 %v2250_v5, %v2234_v59 }
0x2359   :  { %2253 = vst.msk [vmem:[#allocation4] sm:$0xff] %vm732_vm6, %v2252_v16 }
0x2360   :  { %v2269_v15 = vld [vmem:[#allocation4] sm:$0xff] }
0x2361   :  { %4179 = vmatmul.mubr.msk.f32.vlgmr.msra.gmra.mrb[38].mxu0 %vm369_vm3, %v2269_v15  ;;  %2261 = vst.msk [vmem:[#allocation3 + $0x20] sm:$0xff] %vm33_vm0, %v2269_v15 }
0x2362   :  { %4531 = vmatpush3.bf16.msra.mxu0 %v5481_v2  ;;  %4216 = vmatprep.mubr.msk.f32.mxu0 %vm4781_vm1, %v4780_v4 }
0x2363   :  { %4532 = vmatprep.subr.bf16.mxu0 %v4779_v0 }
0x2366   :  { %4534 = vmatpush3.bf16.msra.mxu0 %v5487_v6 }
0x2367   :  { %4535 = vmatprep.subr.bf16.mxu0 %v4779_v0 }
0x236a   :  { %4537 = vmatpush3.bf16.msra.mxu0 %v5498_v32 }
0x236b   :  { %4538 = vmatprep.subr.bf16.mxu0 %v4779_v0 }
0x236e   :  { %4540 = vmatpush3.bf16.msra.mxu0 %v5508_v34 }
0x236f   :  { %4547 = vmatprep.subr.bf16.mxu0 %v4779_v0 }
0x23c6   :  { %v2350_v7 = vpop.permute.xlu0 %2349  ;;  %v2353_v55 = vpop.permute.xlu1 %2352 }
0x23c7   :  { %v2355_v28 = vsel %vm369_vm3, %v2268_v12, %v2350_v7 }
0x23c8   :  { %v2356_v27 = vsel %vm452_vm4, %v2355_v28, %v2353_v55 }
0x23c9   :  { %v2357_v17 = vmul.f32 %v5338_v54, %v2356_v27 }
0x2434   :  { %v2343_v26 = vpop.f32.mrb[38].mxu0 }
0x2435   :  { %v2347_v36 = vadd.f32 %v2343_v26, %v189_v9  ;;  %v4180_v38 = vpop.f32.mrb[39].mxu0 }
0x2437   :  { %v2358_v39 = vadd.f32 %v2357_v17, %v2347_v36  ;;  %4721 = vtanh.f32 %v2347_v36 }
0x2439   :  { %v2359_v41 = vmul.f32 0.5, %v2358_v39 }
0x243b   :  { %4723 = vtanh.f32 %v2359_v41 }
0x2441   :  { %v4722_v52 = vpop.eup %4721 }
0x2442   :  { %2365 = vrot.lane.b32.xlu0 %v4722_v52, %s4782_s23 }
0x2445   :  { %v4724_v43 = vpop.eup %4723 }
0x2446   :  { %v2361_v50 = vmul.f32 0.5, %v4724_v43 }
0x2448   :  { %v2362_v10 = vadd.f32 0.5, %v2361_v50 }
0x244a   :  { %v2369_v31 = vmul.f32 %v2362_v10, %v2350_v7 }
0x244c   :  { %2371 = vrot.lane.b32.xlu1 %v2369_v31, %s4784_s2 }
0x24b4   :  { %v2366_v35 = vpop.permute.xlu0 %2365 }
0x24b5   :  { %v2368_v20 = vmul.f32 %v2366_v35, %v2362_v10 }
0x24be   :  { %v2372_v13 = vpop.permute.xlu1 %2371 }
0x24bf   :  { %v2374_v56 = vadd.f32 %v2372_v13, %v2368_v20 }
0x24c1   :  { %4725 = vtanh.f32 %v2374_v56  ;;  %2386 = vst.msk [vmem:[#allocation5] sm:$0xff] %vm369_vm3, %v2374_v56 }
0x24c8   :  { %v2387_v45 = vld [vmem:[#allocation5] sm:$0xff] }
0x24cb   :  { %v4726_v18 = vpop.eup %4725 }
0x24cc   :  { %2377 = vrot.lane.b32.xlu0 %v4726_v18, %s4783_s24 }
0x24d0   :  { %2472 = vrot.lane.b32.xlu0 %v2387_v45, %s4784_s2 }
0x253e   :  { %v2378_v21 = vpop.permute.xlu0 %2377 }
0x253f   :  { %v2380_v37 = vmul.f32 %v2378_v21, %v2362_v10 }
0x2541   :  { %2382 = vrot.lane.b32.xlu1 %v2380_v37, %s4783_s24 }
0x2542   :  { %v2473_v49 = vpop.permute.xlu0 %2472 }
0x2543   :  { %v2478_v58 = vsel %vm369_vm3, %v2473_v49, %v2387_v45 }
0x2545   :  { %2475 = vrot.lane.b32.xlu1 %v2387_v45, %s4782_s23 }
0x25b3   :  { %v2383_v8 = vpop.permute.xlu1 %2382 }
0x25b4   :  { %2385 = vst.msk [vmem:[#allocation4] sm:$0xff] %vm369_vm3, %v2383_v8 }
0x25b7   :  { %v2476_v59 = vpop.permute.xlu1 %2475 }
0x25b8   :  { %v2479_v44 = vsel %vm452_vm4, %v2478_v58, %v2476_v59 }
0x25bb   :  { %v2388_v61 = vld [vmem:[#allocation4] sm:$0xff] }
0x25bc   :  { %4198 = vmatmul.mubr.msk.f32.vlgmr.msra.gmra.mrb[16].mxu1 %vm452_vm4, %v2388_v61 }
0x25bd   :  { %4543 = vmatpush3.bf16.msra.mxu1 %v5299_v11  ;;  %4227 = vmatprep.mubr.msk.f32.mxu1 %vm4781_vm1, %v4780_v4  ;;  %v2480_v11 = vmul.f32 %v5465_v60, %v2479_v44 }
0x25be   :  { %4544 = vmatprep.subr.bf16.mxu1 %v4779_v0 }
0x25c1   :  { %4546 = vmatpush3.bf16.msra.mxu1 %v5309_v53 }
0x25c2   :  { %4559 = vmatprep.subr.bf16.mxu1 %v4779_v0 }
0x268f   :  { %v2466_v63 = vpop.f32.mrb[16].mxu1 }
0x2690   :  { %v2470_v1 = vadd.f32 %v2466_v63, %v191_v19  ;;  %v4199_v3 = vpop.f32.mrb[17].mxu1 }
0x2692   :  { %v2481_v62 = vadd.f32 %v2480_v11, %v2470_v1  ;;  %4727 = vtanh.f32 %v2470_v1 }
0x2694   :  { %v2482_v12 = vmul.f32 0.5, %v2481_v62  ;;  %v195_v62 = vadd.f32 %v5033_v24, %v4892_v22 }
0x2696   :  { %4729 = vtanh.f32 %v2482_v12 }
0x269c   :  { %v4728_v53 = vpop.eup %4727 }
0x269d   :  { %2488 = vrot.lane.b32.xlu0 %v4728_v53, %s4782_s23 }
0x26a0   :  { %v4730_v5 = vpop.eup %4729 }
0x26a1   :  { %v2484_v16 = vmul.f32 0.5, %v4730_v5 }
0x26a3   :  { %v2485_v15 = vadd.f32 0.5, %v2484_v16 }
0x26a5   :  { %v2492_v7 = vmul.f32 %v2485_v15, %v2387_v45 }
0x26a7   :  { %2494 = vrot.lane.b32.xlu1 %v2492_v7, %s4784_s2 }
0x270f   :  { %v2489_v55 = vpop.permute.xlu0 %2488 }
0x2710   :  { %v2491_v23 = vmul.f32 %v2489_v55, %v2485_v15 }
0x2719   :  { %v2495_v28 = vpop.permute.xlu1 %2494 }
0x271a   :  { %v2497_v27 = vadd.f32 %v2495_v28, %v2491_v23 }
0x271c   :  { %4731 = vtanh.f32 %v2497_v27 }
0x2726   :  { %v4732_v9 = vpop.eup %4731 }
0x2727   :  { %2500 = vrot.lane.b32.xlu0 %v4732_v9, %s4783_s24 }
0x2799   :  { %v2501_v26 = vpop.permute.xlu0 %2500 }
0x279a   :  { %v2503_v36 = vmul.f32 %v2501_v26, %v2485_v15 }
0x279c   :  { %2505 = vrot.lane.b32.xlu1 %v2503_v36, %s4784_s2 }
0x27a0   :  { %2510 = vrot.lane.b32.xlu1 %v2497_v27, %s4782_s23 }
0x280e   :  { %v2506_v17 = vpop.permute.xlu1 %2505 }
0x280f   :  { %2508 = vst.msk [vmem:[#allocation4] sm:$0xff] %vm605_vm5, %v2506_v17 }
0x2812   :  { %v2511_v38 = vpop.permute.xlu1 %2510 }
0x2813   :  { %2513 = vst.msk [vmem:[#allocation5] sm:$0xff] %vm605_vm5, %v2511_v38 }
0x2816   :  { %v2515_v39 = vld [vmem:[#allocation4] sm:$0xff] }
0x2817   :  { %2525 = vrot.lane.b32.xlu0 %v2515_v39, %s4784_s2 }
0x281a   :  { %v2514_v41 = vld [vmem:[#allocation5] sm:$0xff] }
0x281b   :  { %2604 = vrot.lane.b32.xlu1 %v2514_v41, %s4784_s2  ;;  %2601 = vrot.lane.b32.xlu0 %v2514_v41, %s4783_s24 }
0x2889   :  { %v2526_v52 = vpop.permute.xlu0 %2525 }
0x288a   :  { %4217 = vmatmul.mubr.msk.f32.vlgmr.msra.gmra.mrb[40].mxu0 %vm452_vm4, %v2526_v52 }
0x288b   :  { %4549 = vmatpush3.bf16.msra.mxu0 %v5353_v33  ;;  %4246 = vmatprep.mubr.msk.f32.mxu0 %vm4781_vm1, %v4780_v4 }
0x288c   :  { %4550 = vmatprep.subr.bf16.mxu0 %v4779_v0 }
0x288d   :  { %v2605_v43 = vpop.permute.xlu1 %2604  ;;  %v2602_v50 = vpop.permute.xlu0 %2601 }
0x288e   :  { %v2607_v33 = vsel %vm369_vm3, %v2602_v50, %v2605_v43 }
0x288f   :  { %4552 = vmatpush3.bf16.msra.mxu0 %v5359_v14  ;;  %v2608_v10 = vsel %vm452_vm4, %v2607_v33, %v2514_v41  ;;  %v197_v33 = vadd.f32 %v5035_v25, %v5078_v51 }
0x2890   :  { %4553 = vmatprep.subr.bf16.mxu0 %v4779_v0  ;;  %v2609_v14 = vmul.f32 %v5535_v57, %v2608_v10 }
0x2893   :  { %4555 = vmatpush3.bf16.msra.mxu0 %v5372_v40 }
0x2894   :  { %4556 = vmatprep.subr.bf16.mxu0 %v4779_v0 }
0x2897   :  { %4558 = vmatpush3.bf16.msra.mxu0 %v5382_v47 }
0x2898   :  { %4571 = vmatprep.subr.bf16.mxu0 %v4779_v0 }
0x295d   :  { %v2595_v31 = vpop.f32.mrb[40].mxu0 }
0x295e   :  { %v2599_v35 = vadd.f32 %v2595_v31, %v5062_v42  ;;  %v4218_v20 = vpop.f32.mrb[41].mxu0 }
0x2960   :  { %v2610_v13 = vadd.f32 %v2609_v14, %v2599_v35  ;;  %4733 = vtanh.f32 %v2599_v35 }
0x2962   :  { %v2611_v40 = vmul.f32 0.5, %v2610_v13 }
0x2964   :  { %4735 = vtanh.f32 %v2611_v40 }
0x296a   :  { %v4734_v56 = vpop.eup %4733 }
0x296b   :  { %2617 = vrot.lane.b32.xlu0 %v4734_v56, %s4782_s23 }
0x296e   :  { %v4736_v47 = vpop.eup %4735 }
0x296f   :  { %v2613_v18 = vmul.f32 0.5, %v4736_v47 }
0x2971   :  { %v2614_v45 = vadd.f32 0.5, %v2613_v18 }
0x2973   :  { %v2621_v21 = vmul.f32 %v2614_v45, %v2605_v43 }
0x2975   :  { %2623 = vrot.lane.b32.xlu1 %v2621_v21, %s4784_s2 }
0x29dd   :  { %v2618_v37 = vpop.permute.xlu0 %2617 }
0x29de   :  { %v2620_v8 = vmul.f32 %v2618_v37, %v2614_v45 }
0x29e7   :  { %v2624_v61 = vpop.permute.xlu1 %2623 }
0x29e8   :  { %v2626_v42 = vadd.f32 %v2624_v61, %v2620_v8 }
0x29ea   :  { %4737 = vtanh.f32 %v2626_v42  ;;  %2635 = vrot.lane.b32.xlu1 %v2626_v42, %s4783_s24 }
0x29f4   :  { %v4738_v49 = vpop.eup %4737 }
0x29f5   :  { %2629 = vrot.lane.b32.xlu0 %v4738_v49, %s4783_s24 }
0x2a5c   :  { %v2636_v59 = vpop.permute.xlu1 %2635 }
0x2a5d   :  { %2638 = vst.msk [vmem:[#allocation5] sm:$0xff] %vm732_vm6, %v2636_v59 }
0x2a64   :  { %v2648_v58 = vld [vmem:[#allocation5] sm:$0xff] }
0x2a65   :  { %2732 = vrot.lane.b32.xlu1 %v2648_v58, %s4783_s24  ;;  %2729 = vrot.lane.b32.xlu0 %v2648_v58, %s4782_s23 }
0x2a67   :  { %v2630_v44 = vpop.permute.xlu0 %2629 }
0x2a68   :  { %v2632_v19 = vmul.f32 %v2630_v44, %v2614_v45 }
0x2a6a   :  { %2633 = vst.msk [vmem:[#allocation4] sm:$0xff] %vm732_vm6, %v2632_v19 }
0x2a71   :  { %v2649_v63 = vld [vmem:[#allocation4] sm:$0xff] }
0x2a72   :  { %4228 = vmatmul.mubr.msk.f32.vlgmr.msra.gmra.mrb[18].mxu1 %vm369_vm3, %v2649_v63  ;;  %2641 = vst.msk [vmem:[#allocation3 + $0x28] sm:$0xff] %vm33_vm0, %v2649_v63 }
0x2a73   :  { %4561 = vmatpush3.bf16.msra.mxu1 %v5481_v2  ;;  %4265 = vmatprep.mubr.msk.f32.mxu1 %vm4781_vm1, %v4780_v4 }
0x2a74   :  { %4562 = vmatprep.subr.bf16.mxu1 %v4779_v0 }
0x2a77   :  { %4564 = vmatpush3.bf16.msra.mxu1 %v5487_v6 }
0x2a78   :  { %4565 = vmatprep.subr.bf16.mxu1 %v4779_v0 }
0x2a7b   :  { %4567 = vmatpush3.bf16.msra.mxu1 %v5498_v32 }
0x2a7c   :  { %4568 = vmatprep.subr.bf16.mxu1 %v4779_v0 }
0x2a7f   :  { %4570 = vmatpush3.bf16.msra.mxu1 %v5508_v34 }
0x2a80   :  { %4577 = vmatprep.subr.bf16.mxu1 %v4779_v0 }
0x2ad7   :  { %v2730_v11 = vpop.permute.xlu0 %2729  ;;  %v2733_v1 = vpop.permute.xlu1 %2732 }
0x2ad8   :  { %v2735_v2 = vsel %vm369_vm3, %v2648_v58, %v2730_v11 }
0x2ad9   :  { %v2736_v3 = vsel %vm452_vm4, %v2735_v2, %v2733_v1 }
0x2ada   :  { %v2737_v53 = vmul.f32 %v5338_v54, %v2736_v3 }
0x2b45   :  { %v2723_v6 = vpop.f32.mrb[18].mxu1 }
0x2b46   :  { %v2727_v12 = vadd.f32 %v2723_v6, %v195_v62  ;;  %v4229_v32 = vpop.f32.mrb[19].mxu1 }
0x2b48   :  { %v2738_v5 = vadd.f32 %v2737_v53, %v2727_v12  ;;  %4739 = vtanh.f32 %v2727_v12 }
0x2b4a   :  { %v2739_v16 = vmul.f32 0.5, %v2738_v5 }
0x2b4c   :  { %4741 = vtanh.f32 %v2739_v16 }
0x2b52   :  { %v4740_v34 = vpop.eup %4739 }
0x2b53   :  { %2745 = vrot.lane.b32.xlu0 %v4740_v34, %s4782_s23 }
0x2b56   :  { %v4742_v15 = vpop.eup %4741 }
0x2b57   :  { %v2741_v7 = vmul.f32 0.5, %v4742_v15 }
0x2b59   :  { %v2742_v55 = vadd.f32 0.5, %v2741_v7 }
0x2b5b   :  { %v2749_v23 = vmul.f32 %v2742_v55, %v2730_v11 }
0x2b5d   :  { %2751 = vrot.lane.b32.xlu1 %v2749_v23, %s4784_s2 }
0x2bc5   :  { %v2746_v28 = vpop.permute.xlu0 %2745 }
0x2bc6   :  { %v2748_v24 = vmul.f32 %v2746_v28, %v2742_v55 }
0x2bcf   :  { %v2752_v27 = vpop.permute.xlu1 %2751 }
0x2bd0   :  { %v2754_v9 = vadd.f32 %v2752_v27, %v2748_v24  ;;  %v3030_v27 = vld [vmem:[%s5885_s3] sm:$0xff] }
0x2bd2   :  { %4743 = vtanh.f32 %v2754_v9  ;;  %2766 = vst.msk [vmem:[#allocation5] sm:$0xff] %vm369_vm3, %v2754_v9  ;;  %v3031_v9 = vld [vmem:[%s5885_s3 + $0x8] sm:$0xff] }
0x2bd9   :  { %v2767_v26 = vld [vmem:[#allocation5] sm:$0xff] }
0x2bdc   :  { %v4744_v54 = vpop.eup %4743 }
0x2bdd   :  { %2757 = vrot.lane.b32.xlu0 %v4744_v54, %s4783_s24  ;;  %v4572_v54 = vpack.c.bf16 %v3031_v9, %v3030_v27  ;;  %v3415_v27 = vld [vmem:[%s5890_s6 + $0x28] sm:$0xff]  ;;  %v3402_v9 = vld [vmem:[#allocation3] sm:$0xff] }
0x2be1   :  { %2852 = vrot.lane.b32.xlu0 %v2767_v26, %s4784_s2 }
0x2c4f   :  { %v2758_v36 = vpop.permute.xlu0 %2757 }
0x2c50   :  { %v2760_v17 = vmul.f32 %v2758_v36, %v2742_v55  ;;  %v3033_v36 = vld [vmem:[%s5885_s3 + $0x18] sm:$0xff] }
0x2c52   :  { %2762 = vrot.lane.b32.xlu1 %v2760_v17, %s4783_s24 }
0x2c53   :  { %v2853_v41 = vpop.permute.xlu0 %2852 }
0x2c54   :  { %v2858_v43 = vsel %vm369_vm3, %v2853_v41, %v2767_v26 }
0x2c56   :  { %2855 = vrot.lane.b32.xlu1 %v2767_v26, %s4782_s23 }
0x2cc4   :  { %v2763_v38 = vpop.permute.xlu1 %2762 }
0x2cc5   :  { %2765 = vst.msk [vmem:[#allocation4] sm:$0xff] %vm369_vm3, %v2763_v38 }
0x2cc8   :  { %v2856_v52 = vpop.permute.xlu1 %2855 }
0x2cc9   :  { %v2859_v50 = vsel %vm452_vm4, %v2858_v43, %v2856_v52 }
0x2cca   :  { %v2860_v31 = vmul.f32 %v5465_v60, %v2859_v50 }
0x2ccc   :  { %v2768_v39 = vld [vmem:[#allocation4] sm:$0xff] }
0x2ccd   :  { %4247 = vmatmul.mubr.msk.f32.vlgmr.msra.gmra.mrb[42].mxu0 %vm452_vm4, %v2768_v39 }
0x2cce   :  { %4276 = vmatprep.mubr.msk.f32.mxu0 %vm4781_vm1, %v4780_v4  ;;  %4573 = vmatpush3.bf16.msra.mxu0 %v4572_v54 }
0x2ccf   :  { %4574 = vmatprep.subr.bf16.mxu0 %v4779_v0 }
0x2da0   :  { %v2846_v10 = vpop.f32.mrb[42].mxu0 }
0x2da1   :  { %v2850_v35 = vadd.f32 %v2846_v10, %v197_v33  ;;  %v4248_v14 = vpop.f32.mrb[43].mxu0 }
0x2da2   :  { %v201_v14 = vadd.f32 %v5038_v29, %v4892_v22 }
0x2da3   :  { %v2861_v20 = vadd.f32 %v2860_v31, %v2850_v35  ;;  %4745 = vtanh.f32 %v2850_v35 }
0x2da5   :  { %v2862_v13 = vmul.f32 0.5, %v2861_v20 }
0x2da7   :  { %4747 = vtanh.f32 %v2862_v13 }
0x2dad   :  { %v4746_v40 = vpop.eup %4745 }
0x2dae   :  { %2868 = vrot.lane.b32.xlu0 %v4746_v40, %s4782_s23  ;;  %v4778_v40 = vld [vmem:[%s5888_s5] ss:$0 sm:$0xff] }
0x2db1   :  { %v4748_v56 = vpop.eup %4747 }
0x2db2   :  { %v2864_v47 = vmul.f32 0.5, %v4748_v56 }
0x2db4   :  { %v2865_v18 = vadd.f32 0.5, %v2864_v47 }
0x2db6   :  { %v2872_v45 = vmul.f32 %v2865_v18, %v2767_v26  ;;  %v3032_v26 = vld [vmem:[%s5885_s3 + $0x10] sm:$0xff] }
0x2db7   :  { %v4575_v17 = vpack.c.bf16 %v3033_v36, %v3032_v26  ;;  %v3416_v26 = vld [vmem:[%s5890_s6 + $0x30] sm:$0xff]  ;;  %v3417_v36 = vld [vmem:[%s5890_s6 + $0x38] sm:$0xff] }
0x2db8   :  { %2874 = vrot.lane.b32.xlu1 %v2872_v45, %s4784_s2 }
0x2db9   :  { %4576 = vmatpush3.bf16.msra.mxu0 %v4575_v17  ;;  %v4613_v17 = vpack.c.bf16 %v3417_v36, %v3416_v26  ;;  %v3684_v26 = vld [vmem:[%s5889_s4 + $0x78] sm:$0xff] }
0x2dba   :  { %4589 = vmatprep.subr.bf16.mxu0 %v4779_v0 }
0x2e20   :  { %v2869_v21 = vpop.permute.xlu0 %2868 }
0x2e21   :  { %v2871_v25 = vmul.f32 %v2869_v21, %v2865_v18 }
0x2e2a   :  { %v2875_v37 = vpop.permute.xlu1 %2874 }
0x2e2b   :  { %v2877_v8 = vadd.f32 %v2875_v37, %v2871_v25 }
0x2e2d   :  { %4749 = vtanh.f32 %v2877_v8 }
0x2e37   :  { %v4750_v61 = vpop.eup %4749 }
0x2e38   :  { %2880 = vrot.lane.b32.xlu0 %v4750_v61, %s4783_s24 }
0x2eaa   :  { %v2881_v42 = vpop.permute.xlu0 %2880 }
0x2eab   :  { %v2883_v49 = vmul.f32 %v2881_v42, %v2865_v18 }
0x2ead   :  { %2885 = vrot.lane.b32.xlu1 %v2883_v49, %s4784_s2  ;;  %v3149_v49 = vld [vmem:[%s5889_s4] sm:$0xff] }
0x2eb1   :  { %2890 = vrot.lane.b32.xlu1 %v2877_v8, %s4782_s23 }
0x2f1f   :  { %v2886_v59 = vpop.permute.xlu1 %2885 }
0x2f20   :  { %2888 = vst.msk [vmem:[#allocation4] sm:$0xff] %vm605_vm5, %v2886_v59  ;;  %v3150_v59 = vld [vmem:[%s5889_s4 + $0x8] sm:$0xff] }
0x2f23   :  { %v2891_v58 = vpop.permute.xlu1 %2890 }
0x2f24   :  { %2893 = vst.msk [vmem:[#allocation5] sm:$0xff] %vm605_vm5, %v2891_v58  ;;  %v3151_v58 = vld [vmem:[%s5889_s4 + $0x10] sm:$0xff] }
0x2f27   :  { %v2895_v44 = vld [vmem:[#allocation4] sm:$0xff] }
0x2f28   :  { %2905 = vrot.lane.b32.xlu0 %v2895_v44, %s4784_s2  ;;  %v4578_v44 = vpack.c.bf16 %v3150_v59, %v3149_v49  ;;  %v5792_v49 = vld [vmem:[%s5891_s7] ss:$0 sm:$0xff] }
0x2f2b   :  { %v2894_v19 = vld [vmem:[#allocation5] sm:$0xff] }
0x2f2c   :  { %2984 = vrot.lane.b32.xlu1 %v2894_v19, %s4784_s2  ;;  %2981 = vrot.lane.b32.xlu0 %v2894_v19, %s4783_s24 }
0x2f9a   :  { %v2906_v63 = vpop.permute.xlu0 %2905 }
0x2f9b   :  { %4266 = vmatmul.mubr.msk.f32.vlgmr.msra.gmra.mrb[20].mxu1 %vm452_vm4, %v2906_v63 }
0x2f9c   :  { %4295 = vmatprep.mubr.msk.f32.mxu1 %vm4781_vm1, %v4780_v4  ;;  %4579 = vmatpush3.bf16.msra.mxu1 %v4578_v44 }
0x2f9d   :  { %4580 = vmatprep.subr.bf16.mxu1 %v4779_v0 }
0x2f9e   :  { %v2985_v11 = vpop.permute.xlu1 %2984  ;;  %v2982_v1 = vpop.permute.xlu0 %2981 }
0x2f9f   :  { %v2987_v2 = vsel %vm369_vm3, %v2982_v1, %v2985_v11 }
0x2fa0   :  { %v2988_v3 = vsel %vm452_vm4, %v2987_v2, %v2894_v19  ;;  %v3152_v19 = vld [vmem:[%s5889_s4 + $0x18] sm:$0xff]  ;;  %v3153_v2 = vld [vmem:[%s5889_s4 + $0x20] sm:$0xff] }
0x2fa1   :  { %v2989_v12 = vmul.f32 %v5535_v57, %v2988_v3  ;;  %v4581_v63 = vpack.c.bf16 %v3152_v19, %v3151_v58  ;;  %v3154_v3 = vld [vmem:[%s5889_s4 + $0x28] sm:$0xff] }
0x2fa3   :  { %4582 = vmatpush3.bf16.msra.mxu1 %v4581_v63 }
0x2fa4   :  { %4583 = vmatprep.subr.bf16.mxu1 %v4779_v0 }
0x306e   :  { %v2975_v62 = vpop.f32.mrb[20].mxu1 }
0x306f   :  { %v2979_v6 = vadd.f32 %v2975_v62, %v5074_v48  ;;  %v4267_v53 = vpop.f32.mrb[21].mxu1  ;;  %v4584_v62 = vpack.c.bf16 %v3154_v3, %v3153_v2 }
0x3071   :  { %v2990_v32 = vadd.f32 %v2989_v12, %v2979_v6  ;;  %4751 = vtanh.f32 %v2979_v6  ;;  %4585 = vmatpush3.bf16.msra.mxu1 %v4584_v62  ;;  %v3155_v6 = vld [vmem:[%s5889_s4 + $0x30] sm:$0xff]  ;;  %v3156_v12 = vld [vmem:[%s5889_s4 + $0x38] sm:$0xff] }
0x3072   :  { %4586 = vmatprep.subr.bf16.mxu1 %v4779_v0  ;;  %v4587_v53 = vpack.c.bf16 %v3156_v12, %v3155_v6 }
0x3073   :  { %v2991_v5 = vmul.f32 0.5, %v2990_v32  ;;  %v3410_v32 = vld [vmem:[%s5890_s6] sm:$0xff] }
0x3075   :  { %4753 = vtanh.f32 %v2991_v5  ;;  %4588 = vmatpush3.bf16.msra.mxu1 %v4587_v53  ;;  %v3411_v5 = vld [vmem:[%s5890_s6 + $0x8] sm:$0xff] }
0x307b   :  { %v4752_v16 = vpop.eup %4751 }
0x307c   :  { %2997 = vrot.lane.b32.xlu0 %v4752_v16, %s4782_s23  ;;  %v4601_v16 = vpack.c.bf16 %v3411_v5, %v3410_v32 }
0x307e   :  { %4602 = vmatprep.subr.bf16.mxu1 %v4601_v16 }
0x307f   :  { %v4754_v34 = vpop.eup %4753 }
0x3080   :  { %v2993_v15 = vmul.f32 0.5, %v4754_v34 }
0x3082   :  { %v2994_v7 = vadd.f32 0.5, %v2993_v15 }
0x3084   :  { %v3001_v55 = vmul.f32 %v2994_v7, %v2985_v11 }
0x3086   :  { %3003 = vrot.lane.b32.xlu1 %v3001_v55, %s4784_s2  ;;  %v3412_v55 = vld [vmem:[%s5890_s6 + $0x10] sm:$0xff] }
0x30ee   :  { %v2998_v23 = vpop.permute.xlu0 %2997 }
0x30ef   :  { %v3000_v28 = vmul.f32 %v2998_v23, %v2994_v7  ;;  %v3413_v23 = vld [vmem:[%s5890_s6 + $0x18] sm:$0xff] }
0x30f8   :  { %v3004_v24 = vpop.permute.xlu1 %3003 }
0x30f9   :  { %v3006_v48 = vadd.f32 %v3004_v24, %v3000_v28  ;;  %v4605_v28 = vpack.c.bf16 %v3413_v23, %v3412_v55  ;;  %v3679_v55 = vld [vmem:[%s5889_s4 + $0x50] sm:$0xff] }
0x30fb   :  { %4755 = vtanh.f32 %v3006_v48  ;;  %3015 = vrot.lane.b32.xlu1 %v3006_v48, %s4783_s24  ;;  %v3414_v48 = vld [vmem:[%s5890_s6 + $0x20] sm:$0xff] }
0x30fc   :  { %v4609_v54 = vpack.c.bf16 %v3415_v27, %v3414_v48  ;;  %v3681_v48 = vld [vmem:[%s5889_s4 + $0x60] sm:$0xff]  ;;  %v3682_v27 = vld [vmem:[%s5889_s4 + $0x68] sm:$0xff] }
0x3105   :  { %v4756_v38 = vpop.eup %4755 }
0x3106   :  { %3009 = vrot.lane.b32.xlu0 %v4756_v38, %s4783_s24  ;;  %v3418_v38 = vld [vmem:[%s5890_s6 + $0x40] sm:$0xff] }
0x316d   :  { %v3016_v39 = vpop.permute.xlu1 %3015 }
0x316e   :  { %3018 = vst.msk [vmem:[#allocation5] sm:$0xff] %vm732_vm6, %v3016_v39  ;;  %v3419_v39 = vld [vmem:[%s5890_s6 + $0x48] sm:$0xff] }
0x3175   :  { %v3028_v41 = vld [vmem:[#allocation5] sm:$0xff] }
0x3176   :  { %3112 = vrot.lane.b32.xlu1 %v3028_v41, %s4783_s24  ;;  %3109 = vrot.lane.b32.xlu0 %v3028_v41, %s4782_s23 }
0x3178   :  { %v3010_v52 = vpop.permute.xlu0 %3009 }
0x3179   :  { %v3012_v43 = vmul.f32 %v3010_v52, %v2994_v7  ;;  %v3420_v52 = vld [vmem:[%s5890_s6 + $0x50] sm:$0xff] }
0x317b   :  { %3013 = vst.msk [vmem:[#allocation4] sm:$0xff] %vm732_vm6, %v3012_v43  ;;  %v3421_v43 = vld [vmem:[%s5890_s6 + $0x58] sm:$0xff] }
0x3182   :  { %v3029_v50 = vld [vmem:[#allocation4] sm:$0xff] }
0x3183   :  { %4277 = vmatmul.mubr.msk.f32.vlgmr.msra.gmra.mrb[44].mxu0 %vm369_vm3, %v3029_v50  ;;  %3021 = vst.msk [vmem:[#allocation3 + $0x30] sm:$0xff] %vm33_vm0, %v3029_v50  ;;  %v4621_v50 = vpack.c.bf16 %v3421_v43, %v3420_v52 }
0x3184   :  { %4314 = vmatprep.mubr.msk.f32.mxu0 %vm4781_vm1, %v4780_v4 }
0x31e8   :  { %v3110_v33 = vpop.permute.xlu0 %3109  ;;  %v3113_v10 = vpop.permute.xlu1 %3112 }
0x31e9   :  { %v3115_v31 = vsel %vm369_vm3, %v3028_v41, %v3110_v33  ;;  %v4617_v41 = vpack.c.bf16 %v3419_v39, %v3418_v38 }
0x31ea   :  { %v3116_v35 = vsel %vm452_vm4, %v3115_v31, %v3113_v10  ;;  %v3404_v10 = vld [vmem:[#allocation3 + $0x10] sm:$0xff]  ;;  %v3405_v31 = vld [vmem:[#allocation3 + $0x18] sm:$0xff] }
0x31eb   :  { %v3117_v56 = vmul.f32 %v4778_v40, %v3116_v35  ;;  %v3406_v35 = vld [vmem:[#allocation3 + $0x20] sm:$0xff] }
0x3256   :  { %v3103_v20 = vpop.f32.mrb[44].mxu0 }
0x3257   :  { %v3107_v13 = vadd.f32 %v3103_v20, %v201_v14  ;;  %v4278_v47 = vpop.f32.mrb[45].mxu0  ;;  %v3407_v14 = vld [vmem:[#allocation3 + $0x28] sm:$0xff]  ;;  %v3408_v20 = vld [vmem:[#allocation3 + $0x30] sm:$0xff] }
0x3259   :  { %v3118_v18 = vadd.f32 %v3117_v56, %v3107_v13  ;;  %4757 = vtanh.f32 %v3107_v13 }
0x325b   :  { %v3119_v4 = vmul.f32 0.5, %v3118_v18  ;;  %v203_v18 = vadd.f32 %v5040_v30, %v5078_v51 }
0x325d   :  { %4759 = vtanh.f32 %v3119_v4 }
0x3263   :  { %v4758_v45 = vpop.eup %4757 }
0x3264   :  { %3125 = vrot.lane.b32.xlu0 %v4758_v45, %s4782_s23 }
0x3267   :  { %v4760_v21 = vpop.eup %4759 }
0x3268   :  { %v3121_v25 = vmul.f32 0.5, %v4760_v21 }
0x326a   :  { %v3122_v37 = vadd.f32 0.5, %v3121_v25 }
0x326c   :  { %v3129_v8 = vmul.f32 %v3122_v37, %v3110_v33  ;;  %v3403_v33 = vld [vmem:[#allocation3 + $0x8] sm:$0xff] }
0x326e   :  { %3131 = vrot.lane.b32.xlu1 %v3129_v8, %s4784_s2 }
0x32d6   :  { %v3126_v22 = vpop.permute.xlu0 %3125 }
0x32d7   :  { %v3128_v29 = vmul.f32 %v3126_v22, %v3122_v37 }
0x32e0   :  { %v3132_v61 = vpop.permute.xlu1 %3131 }
0x32e1   :  { %v3134_v42 = vadd.f32 %v3132_v61, %v3128_v29 }
0x32e3   :  { %4761 = vtanh.f32 %v3134_v42  ;;  %3146 = vst.msk [vmem:[#allocation5] sm:$0xff] %vm369_vm3, %v3134_v42 }
0x32ea   :  { %v5717_v1 = vld [vmem:[#allocation5] sm:$0xff] }
0x32ed   :  { %v4762_v11 = vpop.eup %4761 }
0x32ee   :  { %3137 = vrot.lane.b32.xlu0 %v4762_v11, %s4783_s24 }
0x32f2   :  { %3232 = vrot.lane.b32.xlu0 %v5717_v1, %s4784_s2 }
0x3360   :  { %v3138_v34 = vpop.permute.xlu0 %3137 }
0x3361   :  { %v3140_v15 = vmul.f32 %v3138_v34, %v3122_v37 }
0x3363   :  { %3142 = vrot.lane.b32.xlu1 %v3140_v15, %s4783_s24  ;;  %v3677_v15 = vld [vmem:[%s5889_s4 + $0x40] sm:$0xff] }
0x3364   :  { %v3233_v13 = vpop.permute.xlu0 %3232 }
0x3365   :  { %v3238_v56 = vsel %vm369_vm3, %v3233_v13, %v5717_v1 }
0x3367   :  { %3235 = vrot.lane.b32.xlu1 %v5717_v1, %s4782_s23 }
0x33d5   :  { %v3143_v7 = vpop.permute.xlu1 %3142 }
0x33d6   :  { %3145 = vst.msk [vmem:[#allocation4] sm:$0xff] %vm369_vm3, %v3143_v7  ;;  %v3678_v7 = vld [vmem:[%s5889_s4 + $0x48] sm:$0xff] }
0x33d7   :  { %v4590_v23 = vpack.c.bf16 %v3678_v7, %v3677_v15 }
0x33d9   :  { %v3236_v40 = vpop.permute.xlu1 %3235  ;;  %4591 = vmatpush3.bf16.msra.mxu0 %v4590_v23 }
0x33da   :  { %v3239_v47 = vsel %vm452_vm4, %v3238_v56, %v3236_v40  ;;  %4592 = vmatprep.subr.bf16.mxu0 %v4779_v0 }
0x33db   :  { %v3240_v45 = vmul.f32 %v5465_v60, %v3239_v47 }
0x33dd   :  { %v3148_v24 = vld [vmem:[#allocation4] sm:$0xff] }
0x33de   :  { %4296 = vmatmul.mubr.msk.f32.vlgmr.msra.gmra.mrb[22].mxu1 %vm452_vm4, %v3148_v24 }
0x33df   :  { %4604 = vmatpush3.bf16.msra.mxu1 %v4601_v16  ;;  %4341 = vmatprep.mubr.msk.f32.mxu1 %vm33_vm0, %v3402_v9  ;;  %v4596_v9 = vpack.c.bf16 %v3682_v27, %v3681_v48 }
0x33e0   :  { %4606 = vmatprep.subr.bf16.mxu1 %v4605_v28 }
0x33e3   :  { %4608 = vmatpush3.bf16.msra.mxu1 %v4605_v28  ;;  %v3680_v28 = vld [vmem:[%s5889_s4 + $0x58] sm:$0xff] }
0x33e4   :  { %4610 = vmatprep.subr.bf16.mxu1 %v4609_v54  ;;  %v4593_v24 = vpack.c.bf16 %v3680_v28, %v3679_v55 }
0x33e6   :  { %4594 = vmatpush3.bf16.msra.mxu0 %v4593_v24 }
0x33e7   :  { %4612 = vmatpush3.bf16.msra.mxu1 %v4609_v54  ;;  %4595 = vmatprep.subr.bf16.mxu0 %v4779_v0  ;;  %v3683_v54 = vld [vmem:[%s5889_s4 + $0x70] sm:$0xff] }
0x33e8   :  { %4614 = vmatprep.subr.bf16.mxu1 %v4613_v17  ;;  %v4599_v36 = vpack.c.bf16 %v3684_v26, %v3683_v54 }
0x33ea   :  { %4597 = vmatpush3.bf16.msra.mxu0 %v4596_v9 }
0x33eb   :  { %4616 = vmatpush3.bf16.msra.mxu1 %v4613_v17  ;;  %4598 = vmatprep.subr.bf16.mxu0 %v4779_v0 }
0x33ec   :  { %4618 = vmatprep.subr.bf16.mxu1 %v4617_v41 }
0x33ee   :  { %4600 = vmatpush3.bf16.msra.mxu0 %v4599_v36 }
0x33ef   :  { %4620 = vmatpush3.bf16.msra.mxu1 %v4617_v41 }
0x33f0   :  { %4622 = vmatprep.subr.bf16.mxu1 %v4621_v50 }
0x33f3   :  { %4624 = vmatpush3.bf16.msra.mxu1 %v4621_v50 }
0x33f6   :  { %4342 = vmatmul.mubr.msk.f32.vlgmr.msra.gmra.mrb[24].mxu1 %vm33_vm0, %v3403_v33 }
0x33f7   :  { %4344 = vmatprep.mubr.msk.f32.mxu1 %vm33_vm0, %v3404_v10 }
0x33fa   :  { %4345 = vmatmul.mubr.msk.f32.gmra.mrb[26].mxu1 %vm33_vm0, %v3405_v31 }
0x33fb   :  { %4347 = vmatprep.mubr.msk.f32.mxu1 %vm33_vm0, %v3406_v35 }
0x33fe   :  { %4348 = vmatmul.mubr.msk.f32.gmra.mrb[28].mxu1 %vm33_vm0, %v3407_v14 }
0x33ff   :  { %4350 = vmatprep.mubr.msk.f32.mxu1 %vm33_vm0, %v3408_v20 }
0x34b1   :  { %v3226_v4 = vpop.f32.mrb[22].mxu1 }
0x34b2   :  { %v3230_v21 = vadd.f32 %v3226_v4, %v203_v18  ;;  %v4297_v25 = vpop.f32.mrb[23].mxu1 }
0x34b4   :  { %v3241_v37 = vadd.f32 %v3240_v45, %v3230_v21  ;;  %4763 = vtanh.f32 %v3230_v21 }
0x34b6   :  { %v3242_v8 = vmul.f32 0.5, %v3241_v37 }
0x34b8   :  { %4765 = vtanh.f32 %v3242_v8 }
0x34be   :  { %v4764_v22 = vpop.eup %4763 }
0x34bf   :  { %3248 = vrot.lane.b32.xlu0 %v4764_v22, %s4782_s23 }
0x34c2   :  { %v4766_v29 = vpop.eup %4765 }
0x34c3   :  { %v3244_v61 = vmul.f32 0.5, %v4766_v29 }
0x34c5   :  { %v3245_v42 = vadd.f32 0.5, %v3244_v61 }
0x34c7   :  { %v3252_v30 = vmul.f32 %v3245_v42, %v5717_v1 }
0x34c9   :  { %v4343_v51 = vpop.f32.mrb[24].mxu1  ;;  %3254 = vrot.lane.b32.xlu1 %v3252_v30, %s4784_s2 }
0x34ca   :  { %v3525_v60 = vadd.f32 %v4343_v51, %v5792_v49  ;;  %v3519_v59 = vpop.f32.mrb[25].mxu1 }
0x34cb   :  { %v3520_v58 = vadd.f32 %v5792_v49, %v3519_v59 }
0x34cc   :  { %3559 = vst.msk [vmem:[%s5892_s8 + $0x8] sm:$0xff] %vm369_vm3, %v3525_v60 }
0x34cd   :  { %3558 = vst.msk [vmem:[%s5892_s8] sm:$0xff] %vm369_vm3, %v3520_v58  ;;  %v4346_v44 = vpop.f32.mrb[26].mxu1 }
0x34ce   :  { %v3535_v19 = vadd.f32 %v4346_v44, %v5792_v49  ;;  %v3529_v63 = vpop.f32.mrb[27].mxu1 }
0x34cf   :  { %v3530_v11 = vadd.f32 %v5792_v49, %v3529_v63 }
0x34d0   :  { %3561 = vst.msk [vmem:[%s5892_s8 + $0x18] sm:$0xff] %vm369_vm3, %v3535_v19 }
0x34d1   :  { %3560 = vst.msk [vmem:[%s5892_s8 + $0x10] sm:$0xff] %vm369_vm3, %v3530_v11  ;;  %v4349_v1 = vpop.f32.mrb[28].mxu1 }
0x34d2   :  { %v3545_v2 = vadd.f32 %v4349_v1, %v5792_v49  ;;  %v3539_v3 = vpop.f32.mrb[29].mxu1 }
0x34d3   :  { %v3540_v62 = vadd.f32 %v5792_v49, %v3539_v3 }
0x34d4   :  { %3563 = vst.msk [vmem:[%s5892_s8 + $0x28] sm:$0xff] %vm369_vm3, %v3545_v2 }
0x34d5   :  { %3562 = vst.msk [vmem:[%s5892_s8 + $0x20] sm:$0xff] %vm369_vm3, %v3540_v62 }
0x3531   :  { %v3249_v6 = vpop.permute.xlu0 %3248 }
0x3532   :  { %v3251_v12 = vmul.f32 %v3249_v6, %v3245_v42 }
0x353b   :  { %v3255_v53 = vpop.permute.xlu1 %3254 }
0x353c   :  { %v3257_v32 = vadd.f32 %v3255_v53, %v3251_v12 }
0x353e   :  { %4767 = vtanh.f32 %v3257_v32 }
0x3548   :  { %v4768_v5 = vpop.eup %4767 }
0x3549   :  { %3260 = vrot.lane.b32.xlu0 %v4768_v5, %s4783_s24 }
0x35bb   :  { %v3261_v16 = vpop.permute.xlu0 %3260 }
0x35bc   :  { %v3263_v34 = vmul.f32 %v3261_v16, %v3245_v42 }
0x35be   :  { %3265 = vrot.lane.b32.xlu1 %v3263_v34, %s4784_s2 }
0x35c2   :  { %3270 = vrot.lane.b32.xlu1 %v3257_v32, %s4782_s23 }
0x3630   :  { %v3266_v17 = vpop.permute.xlu1 %3265 }
0x3631   :  { %3268 = vst.msk [vmem:[#allocation4] sm:$0xff] %vm605_vm5, %v3266_v17 }
0x3634   :  { %v3271_v38 = vpop.permute.xlu1 %3270 }
0x3635   :  { %3273 = vst.msk [vmem:[#allocation5] sm:$0xff] %vm605_vm5, %v3271_v38 }
0x3638   :  { %v3275_v39 = vld [vmem:[#allocation4] sm:$0xff] }
0x3639   :  { %3285 = vrot.lane.b32.xlu0 %v3275_v39, %s4784_s2 }
0x363c   :  { %v3274_v41 = vld [vmem:[#allocation5] sm:$0xff] }
0x363d   :  { %3364 = vrot.lane.b32.xlu1 %v3274_v41, %s4784_s2  ;;  %3361 = vrot.lane.b32.xlu0 %v3274_v41, %s4783_s24 }
0x36ab   :  { %v3286_v52 = vpop.permute.xlu0 %3285 }
0x36ac   :  { %4315 = vmatmul.mubr.msk.f32.vlgmr.msra.gmra.mrb[46].mxu0 %vm452_vm4, %v3286_v52 }
0x36af   :  { %v3365_v43 = vpop.permute.xlu1 %3364  ;;  %v3362_v0 = vpop.permute.xlu0 %3361 }
0x36b0   :  { %v3367_v50 = vsel %vm369_vm3, %v3362_v0, %v3365_v43 }
0x36b1   :  { %v3368_v33 = vsel %vm452_vm4, %v3367_v50, %v3274_v41 }
0x36b2   :  { %v3369_v35 = vmul.f32 %v5535_v57, %v3368_v33 }
0x377f   :  { %v3355_v10 = vpop.f32.mrb[46].mxu0 }
0x3780   :  { %v3359_v31 = vadd.f32 %v3355_v10, %v5070_v46  ;;  %v4316_v14 = vpop.f32.mrb[47].mxu0 }
0x3782   :  { %v3370_v20 = vadd.f32 %v3369_v35, %v3359_v31  ;;  %4769 = vtanh.f32 %v3359_v31 }
0x3784   :  { %v3371_v13 = vmul.f32 0.5, %v3370_v20 }
0x3786   :  { %4771 = vtanh.f32 %v3371_v13 }
0x378c   :  { %v4770_v40 = vpop.eup %4769 }
0x378d   :  { %3377 = vrot.lane.b32.xlu0 %v4770_v40, %s4782_s23 }
0x3790   :  { %v4772_v56 = vpop.eup %4771 }
0x3791   :  { %v3373_v47 = vmul.f32 0.5, %v4772_v56 }
0x3793   :  { %v3374_v18 = vadd.f32 0.5, %v3373_v47 }
0x3795   :  { %v3381_v4 = vmul.f32 %v3374_v18, %v3365_v43 }
0x3797   :  { %3383 = vrot.lane.b32.xlu1 %v3381_v4, %s4784_s2 }
0x37ff   :  { %v3378_v45 = vpop.permute.xlu0 %3377 }
0x3800   :  { %v3380_v21 = vmul.f32 %v3378_v45, %v3374_v18 }
0x3809   :  { %v3384_v25 = vpop.permute.xlu1 %3383 }
0x380a   :  { %v3386_v46 = vadd.f32 %v3384_v25, %v3380_v21 }
0x380c   :  { %4773 = vtanh.f32 %v3386_v46  ;;  %3395 = vrot.lane.b32.xlu1 %v3386_v46, %s4783_s24 }
0x3816   :  { %v4774_v57 = vpop.eup %4773 }
0x3817   :  { %3389 = vrot.lane.b32.xlu0 %v4774_v57, %s4783_s24 }
0x387e   :  { %v3396_v37 = vpop.permute.xlu1 %3395 }
0x387f   :  { %3398 = vst.msk [vmem:[#allocation5] sm:$0xff] %vm732_vm6, %v3396_v37 }
0x3889   :  { %v3390_v8 = vpop.permute.xlu0 %3389 }
0x388a   :  { %v3392_v22 = vmul.f32 %v3390_v8, %v3374_v18 }
0x388c   :  { %3393 = vst.msk [vmem:[#allocation4] sm:$0xff] %vm732_vm6, %v3392_v22 }
0x3893   :  { %v3399_v29 = vld [vmem:[#allocation4] sm:$0xff] }
0x3894   :  { %3401 = vst.msk [vmem:[#allocation3 + $0x38] sm:$0xff] %vm33_vm0, %v3399_v29 }
0x389b   :  { %v3409_v61 = vld [vmem:[#allocation3 + $0x38] sm:$0xff] }
0x389c   :  { %4351 = vmatmul.mubr.msk.f32.gmra.mrb[30].mxu1 %vm33_vm0, %v3409_v61 }
0x396f   :  { %v4352_v42 = vpop.f32.mrb[30].mxu1 }
0x3970   :  { %v3555_v30 = vadd.f32 %v4352_v42, %v5792_v49  ;;  %v3549_v51 = vpop.f32.mrb[31].mxu1 }
0x3971   :  { %v3550_v60 = vadd.f32 %v5792_v49, %v3549_v51 }
0x3972   :  { %3565 = vst.msk [vmem:[%s5892_s8 + $0x38] sm:$0xff] %vm369_vm3, %v3555_v30 }
0x3973   :  { %3564 = vst.msk [vmem:[%s5892_s8 + $0x30] sm:$0xff] %vm369_vm3, %v3550_v60 }

</bundles_post_ra>
